<compile_context>
chip_gen: v7x
topology: tpu7x:2x2x1
jax: 0.10.0
libtpu: 0.0.40
codegen_flags: <defaults>
</compile_context>

<pallas_src>
import functools

import jax
import jax.numpy as jnp
import numpy as np
from jax.experimental import pallas as pl
from jax.experimental.pallas import tpu as pltpu


_ROW_ALIGN = 64                      # conv-output rows per block padded to this
_LANE = 128
_VMEM_LIMIT = 32 * 1024 * 1024       # explicit scoped-VMEM limit for all calls


def _round_up(x, m):
    return (x + m - 1) // m * m


def _tile_bytes(rows, cols, itemsize):
    """Conservative VMEM footprint of a (rows, cols) tile after (8,128) padding."""
    return _round_up(max(rows, 1), 8) * _round_up(max(cols, 1), _LANE) * itemsize


def _pick_batch_block(n, r_img, cin, cout, shift_max, step_budget):
    """Largest divisor of the batch whose per-grid-step VMEM footprint fits the
    budget; keeps >= 2 grid steps when N >= 2 so both v7x TensorCores get work."""
    best = 1
    for b in range(1, n + 1):
        if n % b:
            continue
        if n // b < 2 and n >= 2:
            continue
        r_out = _round_up(b * r_img, _ROW_ALIGN)
        r_in = _round_up(r_out + shift_max, 8)
        step = (2 * _tile_bytes(r_in, cin, 2)        # double-buffered bf16 input
                + 2 * _tile_bytes(r_out, cout, 4)    # conv block / f32 accumulator
                + _tile_bytes(r_out, 1, 4))          # resident validity mask
        if step <= step_budget:
            best = b
    # TODO(synk): intra-image row tiling (halo rows) when a single image blows
    #             the per-step budget; not needed at UNet-block sizes.
    return best


def _pick_row_tile(rows, cap_rows, min_tiles):
    """Largest multiple-of-8 divisor of `rows` that is <= cap_rows and leaves at
    least `min_tiles` tiles.  `rows` is a multiple of _ROW_ALIGN by construction,
    so an 8-aligned tile always exists -- never falls back to a whole-array block."""
    cap = max(8, min(cap_rows, rows // max(1, min_tiles)))
    best = 8
    d = 8
    while d <= cap:
        if rows % d == 0:
            best = d
        d += 8
    return best


def _conv_taps(x_ref, w_ref, shifts, n_rows):
    """sum_t x[shift_t : shift_t + n_rows, :] @ w[t]  -> (n_rows, Cout) f32."""
    acc = jnp.dot(x_ref[shifts[0]:shifts[0] + n_rows, :], w_ref[0],
                  preferred_element_type=jnp.float32)
    for t in range(1, len(shifts)):
        s = shifts[t]
        acc = acc + jnp.dot(x_ref[s:s + n_rows, :], w_ref[t],
                            preferred_element_type=jnp.float32)
    return acc


def _fused_conv_bn_relu_kernel(x_ref, w_ref, mask_ref, gamma_ref, beta_ref,
                               o_ref, sum_ref, ssq_ref, *,
                               shifts, r_blk_out, count, eps, with_nonlinearity):
    # x_ref    : (R_blk_in, Cin) bf16  padded flat rows of this batch block
    # w_ref    : (KH*KW, Cin, Cout) bf16 raw taps (resident, tiny)
    # mask_ref : (R_blk_out, 1) f32    1.0 on valid (non-padding) output rows
    # o_ref    : (NB*R_blk_out, Cout) f32  FULL conv output, resident in VMEM
    # sum/ssq  : (1, Cout) f32 scratch accumulated across the (arbitrary) grid
    i = pl.program_id(0)

    acc = _conv_taps(x_ref, w_ref, shifts, r_blk_out)          # f32 accumulation
    masked = acc * mask_ref[...]

    @pl.when(i == 0)
    def _init():
        sum_ref[...] = jnp.zeros_like(sum_ref)
        ssq_ref[...] = jnp.zeros_like(ssq_ref)

    sum_ref[...] += jnp.sum(masked, axis=0, keepdims=True)
    # TODO(synk): one-pass E[y^2]-E[y]^2 can cancel badly for large-mean conv
    #             outputs; switch to a shifted/two-pass variance if that regime matters.
    ssq_ref[...] += jnp.sum(acc * masked, axis=0, keepdims=True)

    row0 = pl.multiple_of(i * r_blk_out, 8)
    o_ref[pl.ds(row0, r_blk_out), :] = acc

    @pl.when(i == pl.num_programs(0) - 1)
    def _finalize():
        inv_count = 1.0 / count
        mean = sum_ref[...] * inv_count
        var = jnp.maximum(ssq_ref[...] * inv_count - mean * mean, 0.0)
        inv_std = jax.lax.rsqrt(var + eps)
        scale = gamma_ref[...] * inv_std                        # (1, Cout)
        shift = beta_ref[...] - mean * scale

        def _apply(c, carry):                                   # chunked in-place BN
            r0 = pl.multiple_of(c * r_blk_out, 8)
            blk = o_ref[pl.ds(r0, r_blk_out), :] * scale + shift
            if with_nonlinearity:
                blk = jnp.maximum(blk, 0.0)
            o_ref[pl.ds(r0, r_blk_out), :] = blk
            return carry

        jax.lax.fori_loop(0, pl.num_programs(0), _apply, 0)


def _conv_stats_kernel(x_ref, w_ref, mask_ref, y_ref, sum_ref, ssq_ref, *,
                       shifts, r_blk_out):
    acc = _conv_taps(x_ref, w_ref, shifts, r_blk_out)
    masked = acc * mask_ref[...]
    y_ref[...] = acc.astype(y_ref.dtype)      # bf16 intermediate halves HBM traffic
    sum_ref[...] = jnp.sum(masked, axis=0, keepdims=True)
    ssq_ref[...] = jnp.sum(acc * masked, axis=0, keepdims=True)


def _bn_affine_relu_kernel(y_ref, scale_ref, shift_ref, o_ref, *, with_nonlinearity):
    out = y_ref[...].astype(jnp.float32) * scale_ref[...] + shift_ref[...]
    if with_nonlinearity:
        out = jnp.maximum(out, 0.0)
    o_ref[...] = out


def conv_block_forward(x, w, b, gamma, beta, *, padding=1, kernel_size=3,
                       stride=1, with_nonlinearity=True, eps=1e-5,
                       compute_dtype=jnp.bfloat16,
                       max_fused_bytes=10 * 1024 * 1024):
    """x: (N, Cin, H, W); w: (Cout, Cin, KH, KW); b/gamma/beta: (Cout,)."""
    assert stride == 1, "ConvBlock default stride=1 implemented"
    del b  # conv bias is cancelled exactly by training-mode BN mean subtraction
    N, Cin, H, W = x.shape
    Cout = w.shape[0]
    KH = KW = kernel_size
    Hpad, Wpad = H + 2 * padding, W + 2 * padding
    Hp, Wp = Hpad - KH + 1, Wpad - KW + 1
    R_img = Hpad * Wpad                       # conv-output rows per image (padded grid)
    shift_max = (KH - 1) * Wpad + (KW - 1)
    shifts = tuple(kh * Wpad + kw for kh in range(KH) for kw in range(KW))

    # ---- batch blocking: M per matmul = B_blk * R_img rows -------------------
    B_blk = _pick_batch_block(N, R_img, Cin, Cout, shift_max,
                              step_budget=6 * 1024 * 1024)
    NB = N // B_blk
    R_blk = B_blk * R_img
    R_blk_out = _round_up(R_blk, _ROW_ALIGN)
    R_blk_in = _round_up(R_blk_out + shift_max, 8)

    # ---- glue: NHWC pad + flatten to per-block (rows, Cin) bf16 slabs --------
    x_nhwc = jnp.transpose(x, (0, 2, 3, 1)).astype(compute_dtype)
    xp = jnp.pad(x_nhwc, ((0, 0), (padding, padding), (padding, padding), (0, 0)))
    x_blk = xp.reshape(NB, R_blk, Cin)
    x_blk = jnp.pad(x_blk, ((0, 0), (0, R_blk_in - R_blk), (0, 0)))

    # ---- glue: raw per-tap weights (KH*KW, Cin, Cout) bf16, a few KB ---------
    w_taps = jnp.transpose(w, (2, 3, 1, 0)).reshape(KH * KW, Cin, Cout)
    w_taps = w_taps.astype(compute_dtype)

    # ---- validity mask for one block (identical for all blocks, resident) ----
    rr = np.arange(R_blk_out)
    r_in = rr % R_img
    hh, ww = r_in // Wpad, r_in % Wpad
    valid = (rr < R_blk) & (hh < Hp) & (ww < Wp)
    mask = jnp.asarray(valid.astype(np.float32)).reshape(1, R_blk_out, 1)

    gamma_row = gamma.astype(jnp.float32).reshape(1, Cout)
    beta_row = beta.astype(jnp.float32).reshape(1, Cout)
    count = float(N * Hp * Wp)

    resident_bytes = _tile_bytes(NB * R_blk_out, Cout, 4)
    step_bytes = 2 * _tile_bytes(R_blk_in, Cin, 2) + _tile_bytes(R_blk_out, 1, 4)
    fused = (resident_bytes + step_bytes) <= max_fused_bytes

    if fused:
        # ---- single kernel: conv + stats + in-place BN/ReLU (output resident) -
        out_flat = pl.pallas_call(
            functools.partial(_fused_conv_bn_relu_kernel, shifts=shifts,
                              r_blk_out=R_blk_out, count=count, eps=eps,
                              with_nonlinearity=with_nonlinearity),
            out_shape=jax.ShapeDtypeStruct((NB * R_blk_out, Cout), jnp.float32),
            grid_spec=pltpu.PrefetchScalarGridSpec(
                num_scalar_prefetch=0,
                grid=(NB,),
                in_specs=[
                    pl.BlockSpec((None, R_blk_in, Cin), lambda i: (i, 0, 0)),
                    pl.BlockSpec((KH * KW, Cin, Cout), lambda i: (0, 0, 0)),
                    pl.BlockSpec((None, R_blk_out, 1), lambda i: (0, 0, 0)),
                    pl.BlockSpec((1, Cout), lambda i: (0, 0)),
                    pl.BlockSpec((1, Cout), lambda i: (0, 0)),
                ],
                out_specs=pl.BlockSpec((NB * R_blk_out, Cout), lambda i: (0, 0)),
                scratch_shapes=[pltpu.VMEM((1, Cout), jnp.float32),
                                pltpu.VMEM((1, Cout), jnp.float32)],
            ),
            compiler_params=pltpu.CompilerParams(
                dimension_semantics=("arbitrary",),
                vmem_limit_bytes=_VMEM_LIMIT),
        )(x_blk, w_taps, mask, gamma_row, beta_row)
        out3 = out_flat.reshape(NB, R_blk_out, Cout)
    else:
        # ---- pass 1: conv + per-block BN partial stats (parallel over blocks) -
        conv_out, s1, s2 = pl.pallas_call(
            functools.partial(_conv_stats_kernel, shifts=shifts,
                              r_blk_out=R_blk_out),
            out_shape=(
                jax.ShapeDtypeStruct((NB, R_blk_out, Cout), jnp.bfloat16),
                jax.ShapeDtypeStruct((NB, 1, Cout), jnp.float32),
                jax.ShapeDtypeStruct((NB, 1, Cout), jnp.float32),
            ),
            grid_spec=pltpu.PrefetchScalarGridSpec(
                num_scalar_prefetch=0,
                grid=(NB,),
                in_specs=[
                    pl.BlockSpec((None, R_blk_in, Cin), lambda i: (i, 0, 0)),
                    pl.BlockSpec((KH * KW, Cin, Cout), lambda i: (0, 0, 0)),
                    pl.BlockSpec((None, R_blk_out, 1), lambda i: (0, 0, 0)),
                ],
                out_specs=[
                    pl.BlockSpec((None, R_blk_out, Cout), lambda i: (i, 0, 0)),
                    pl.BlockSpec((None, 1, Cout), lambda i: (i, 0, 0)),
                    pl.BlockSpec((None, 1, Cout), lambda i: (i, 0, 0)),
                ],
            ),
            compiler_params=pltpu.CompilerParams(
                dimension_semantics=("parallel",),
                vmem_limit_bytes=_VMEM_LIMIT),
        )(x_blk, w_taps, mask)

        # ---- fold stats -> per-channel scale/shift (tiny, f32) ----------------
        sum_c = s1.reshape(NB, Cout).sum(axis=0)
        ssq_c = s2.reshape(NB, Cout).sum(axis=0)
        mean = sum_c / count
        var = jnp.maximum(ssq_c / count - mean * mean, 0.0)
        inv_std = jax.lax.rsqrt(var + eps)
        scale_row = (gamma.astype(jnp.float32) * inv_std).reshape(1, Cout)
        shift_row = (beta.astype(jnp.float32)
                     - mean * gamma.astype(jnp.float32) * inv_std).reshape(1, Cout)

        # ---- pass 2: tiled, pipelined scale*y + shift (+ReLU) -----------------
        # TODO(synk): when Cout < 128, fold rows into lanes (free row-major
        #             reshape) for fully lane-dense stores.
        bytes_per_row = _round_up(Cout, _LANE) * (2 + 4) * 2
        cap_rows = max(8, (8 * 1024 * 1024) // bytes_per_row)
        tr = _pick_row_tile(R_blk_out, cap_rows, min_tiles=1 if NB >= 2 else 2)
        out3 = pl.pallas_call(
            functools.partial(_bn_affine_relu_kernel,
                              with_nonlinearity=with_nonlinearity),
            out_shape=jax.ShapeDtypeStruct((NB, R_blk_out, Cout), jnp.float32),
            grid_spec=pltpu.PrefetchScalarGridSpec(
                num_scalar_prefetch=0,
                grid=(NB, R_blk_out // tr),
                in_specs=[
                    pl.BlockSpec((None, tr, Cout), lambda i, j: (i, j, 0)),
                    pl.BlockSpec((1, Cout), lambda i, j: (0, 0)),
                    pl.BlockSpec((1, Cout), lambda i, j: (0, 0)),
                ],
                out_specs=pl.BlockSpec((None, tr, Cout), lambda i, j: (i, j, 0)),
            ),
            compiler_params=pltpu.CompilerParams(
                dimension_semantics=("parallel", "parallel"),
                vmem_limit_bytes=_VMEM_LIMIT),
        )(conv_out, scale_row, shift_row)

    # ---- glue: drop per-block row padding, slice valid spatial, back to NCHW --
    out = out3[:, :R_blk, :].reshape(N, Hpad, Wpad, Cout)[:, :Hp, :Wp, :]
    return jnp.transpose(out, (0, 3, 1, 2))


def _reference(x, w, b, gamma, beta, eps=1e-5, with_nonlinearity=True):
    y = jax.lax.conv_general_dilated(
        x, w, window_strides=(1, 1), padding=((1, 1), (1, 1)),
        dimension_numbers=("NCHW", "OIHW", "NCHW"))
    y = y + b.reshape(1, -1, 1, 1)
    mean = y.mean(axis=(0, 2, 3), keepdims=True)
    var = jnp.square(y - mean).mean(axis=(0, 2, 3), keepdims=True)
    y = (y - mean) * jax.lax.rsqrt(var + eps) * gamma.reshape(1, -1, 1, 1) \
        + beta.reshape(1, -1, 1, 1)
    if with_nonlinearity:
        y = jnp.maximum(y, 0.0)
    return y


if __name__ == "__main__":
    N, Cin, H, W = 2, 4, 16, 16
    Cout, KS = 8, 3

    key = jax.random.PRNGKey(0)
    kx, kw, kb, kg, kbeta = jax.random.split(key, 5)

    x = jax.random.normal(kx, (N, Cin, H, W), dtype=jnp.float32)
    w = jax.random.normal(kw, (Cout, Cin, KS, KS), dtype=jnp.float32) * 0.1
    b = jax.random.normal(kb, (Cout,), dtype=jnp.float32) * 0.1
    gamma = 1.0 + 0.1 * jax.random.normal(kg, (Cout,), dtype=jnp.float32)
    beta = 0.1 * jax.random.normal(kbeta, (Cout,), dtype=jnp.float32)

    ref = _reference(x, w, b, gamma, beta)

    # fused single-kernel path (activations stay resident in VMEM)
    fwd = jax.jit(functools.partial(conv_block_forward, with_nonlinearity=True))
    out = jax.block_until_ready(fwd(x, w, b, gamma, beta))
    assert out.shape == (N, Cout, H, W)
    # bf16 MXU feeds -> loosened tolerance vs the f32 reference
    assert jnp.allclose(out, ref, atol=5e-2, rtol=5e-2), \
        f"fused max err {jnp.max(jnp.abs(out - ref))}"

    # two-pass tiled path, forced, to exercise the large-activation fallback
    fwd2 = jax.jit(functools.partial(conv_block_forward, with_nonlinearity=True,
                                     max_fused_bytes=0))
    out2 = jax.block_until_ready(fwd2(x, w, b, gamma, beta))
    assert jnp.allclose(out2, ref, atol=5e-2, rtol=5e-2), \
        f"two-pass max err {jnp.max(jnp.abs(out2 - ref))}"

    print("KERNEL_OK")
</pallas_src>

<mosaic_0001>
module attributes {stable_mosaic.version = 11 : i64} {
  func.func @_fused_conv_bn_relu_kernel(%arg0: i32, %arg1: memref<1x424x4xbf16, #tpu.memory_space<vmem>>, %arg2: memref<9x4x8xbf16, #tpu.memory_space<vmem>>, %arg3: memref<1x384x1xf32, #tpu.memory_space<vmem>>, %arg4: memref<1x8xf32, #tpu.memory_space<vmem>>, %arg5: memref<1x8xf32, #tpu.memory_space<vmem>>, %arg6: memref<768x8xf32, #tpu.memory_space<vmem>>, %arg7: memref<1x8xf32, #tpu.memory_space<vmem>>, %arg8: memref<1x8xf32, #tpu.memory_space<vmem>>) attributes {dimension_semantics = [#tpu.dimension_semantics<arbitrary>], iteration_bounds = array<i64: 2>, scalar_prefetch = 0 : i64, scratch_operands = 2 : i64, tpu.core_type = #tpu.core_type<tc>, window_params = [{transform_indices = @transform_0, window_bounds = array<i64: 1, 424, 4>}, {pipeline_mode = #tpu.pipeline_mode<synchronous>, transform_indices = @transform_1, window_bounds = array<i64: 9, 4, 8>}, {pipeline_mode = #tpu.pipeline_mode<synchronous>, transform_indices = @transform_2, window_bounds = array<i64: 1, 384, 1>}, {pipeline_mode = #tpu.pipeline_mode<synchronous>, transform_indices = @transform_3, window_bounds = array<i64: 1, 8>}, {pipeline_mode = #tpu.pipeline_mode<synchronous>, transform_indices = @transform_4, window_bounds = array<i64: 1, 8>}, {pipeline_mode = #tpu.pipeline_mode<synchronous>, transform_indices = @transform_5, window_bounds = array<i64: 768, 8>}]} {
    %c0 = arith.constant 0 : index
    %c0_0 = arith.constant 0 : index
    %c0_1 = arith.constant 0 : index
    %0 = vector.load %arg1[%c0, %c0_0, %c0_1] : memref<1x424x4xbf16, #tpu.memory_space<vmem>>, vector<1x384x4xbf16>
    %1 = vector.shape_cast %0 : vector<1x384x4xbf16> to vector<384x4xbf16>
    %c0_2 = arith.constant 0 : index
    %c0_3 = arith.constant 0 : index
    %c0_4 = arith.constant 0 : index
    %2 = vector.load %arg2[%c0_2, %c0_3, %c0_4] : memref<9x4x8xbf16, #tpu.memory_space<vmem>>, vector<1x4x8xbf16>
    %3 = vector.shape_cast %2 : vector<1x4x8xbf16> to vector<4x8xbf16>
    %cst = arith.constant dense<0.000000e+00> : vector<384x8xf32>
    %4 = tpu.matmul %1, %3, %cst {dimension_numbers = #tpu.dot_dimension_numbers<[1], [0], [0], [1], [0, 0, 1, 1], [], []>} : vector<384x4xbf16>, vector<4x8xbf16>, vector<384x8xf32> -> vector<384x8xf32>
    %c0_5 = arith.constant 0 : index
    %c1 = arith.constant 1 : index
    %c0_6 = arith.constant 0 : index
    %5 = vector.load %arg1[%c0_5, %c1, %c0_6] : memref<1x424x4xbf16, #tpu.memory_space<vmem>>, vector<1x384x4xbf16>
    %6 = vector.shape_cast %5 : vector<1x384x4xbf16> to vector<384x4xbf16>
    %c1_7 = arith.constant 1 : index
    %c0_8 = arith.constant 0 : index
    %c0_9 = arith.constant 0 : index
    %7 = vector.load %arg2[%c1_7, %c0_8, %c0_9] : memref<9x4x8xbf16, #tpu.memory_space<vmem>>, vector<1x4x8xbf16>
    %8 = vector.shape_cast %7 : vector<1x4x8xbf16> to vector<4x8xbf16>
    %cst_10 = arith.constant dense<0.000000e+00> : vector<384x8xf32>
    %9 = tpu.matmul %6, %8, %cst_10 {dimension_numbers = #tpu.dot_dimension_numbers<[1], [0], [0], [1], [0, 0, 1, 1], [], []>} : vector<384x4xbf16>, vector<4x8xbf16>, vector<384x8xf32> -> vector<384x8xf32>
    %10 = arith.addf %4, %9 : vector<384x8xf32>
    %c0_11 = arith.constant 0 : index
    %c2 = arith.constant 2 : index
    %c0_12 = arith.constant 0 : index
    %11 = vector.load %arg1[%c0_11, %c2, %c0_12] : memref<1x424x4xbf16, #tpu.memory_space<vmem>>, vector<1x384x4xbf16>
    %12 = vector.shape_cast %11 : vector<1x384x4xbf16> to vector<384x4xbf16>
    %c2_13 = arith.constant 2 : index
    %c0_14 = arith.constant 0 : index
    %c0_15 = arith.constant 0 : index
    %13 = vector.load %arg2[%c2_13, %c0_14, %c0_15] : memref<9x4x8xbf16, #tpu.memory_space<vmem>>, vector<1x4x8xbf16>
    %14 = vector.shape_cast %13 : vector<1x4x8xbf16> to vector<4x8xbf16>
    %cst_16 = arith.constant dense<0.000000e+00> : vector<384x8xf32>
    %15 = tpu.matmul %12, %14, %cst_16 {dimension_numbers = #tpu.dot_dimension_numbers<[1], [0], [0], [1], [0, 0, 1, 1], [], []>} : vector<384x4xbf16>, vector<4x8xbf16>, vector<384x8xf32> -> vector<384x8xf32>
    %16 = arith.addf %10, %15 : vector<384x8xf32>
    %c0_17 = arith.constant 0 : index
    %c18 = arith.constant 18 : index
    %c0_18 = arith.constant 0 : index
    %17 = vector.load %arg1[%c0_17, %c18, %c0_18] : memref<1x424x4xbf16, #tpu.memory_space<vmem>>, vector<1x384x4xbf16>
    %18 = vector.shape_cast %17 : vector<1x384x4xbf16> to vector<384x4xbf16>
    %c3 = arith.constant 3 : index
    %c0_19 = arith.constant 0 : index
    %c0_20 = arith.constant 0 : index
    %19 = vector.load %arg2[%c3, %c0_19, %c0_20] : memref<9x4x8xbf16, #tpu.memory_space<vmem>>, vector<1x4x8xbf16>
    %20 = vector.shape_cast %19 : vector<1x4x8xbf16> to vector<4x8xbf16>
    %cst_21 = arith.constant dense<0.000000e+00> : vector<384x8xf32>
    %21 = tpu.matmul %18, %20, %cst_21 {dimension_numbers = #tpu.dot_dimension_numbers<[1], [0], [0], [1], [0, 0, 1, 1], [], []>} : vector<384x4xbf16>, vector<4x8xbf16>, vector<384x8xf32> -> vector<384x8xf32>
    %22 = arith.addf %16, %21 : vector<384x8xf32>
    %c0_22 = arith.constant 0 : index
    %c19 = arith.constant 19 : index
    %c0_23 = arith.constant 0 : index
    %23 = vector.load %arg1[%c0_22, %c19, %c0_23] : memref<1x424x4xbf16, #tpu.memory_space<vmem>>, vector<1x384x4xbf16>
    %24 = vector.shape_cast %23 : vector<1x384x4xbf16> to vector<384x4xbf16>
    %c4 = arith.constant 4 : index
    %c0_24 = arith.constant 0 : index
    %c0_25 = arith.constant 0 : index
    %25 = vector.load %arg2[%c4, %c0_24, %c0_25] : memref<9x4x8xbf16, #tpu.memory_space<vmem>>, vector<1x4x8xbf16>
    %26 = vector.shape_cast %25 : vector<1x4x8xbf16> to vector<4x8xbf16>
    %cst_26 = arith.constant dense<0.000000e+00> : vector<384x8xf32>
    %27 = tpu.matmul %24, %26, %cst_26 {dimension_numbers = #tpu.dot_dimension_numbers<[1], [0], [0], [1], [0, 0, 1, 1], [], []>} : vector<384x4xbf16>, vector<4x8xbf16>, vector<384x8xf32> -> vector<384x8xf32>
    %28 = arith.addf %22, %27 : vector<384x8xf32>
    %c0_27 = arith.constant 0 : index
    %c20 = arith.constant 20 : index
    %c0_28 = arith.constant 0 : index
    %29 = vector.load %arg1[%c0_27, %c20, %c0_28] : memref<1x424x4xbf16, #tpu.memory_space<vmem>>, vector<1x384x4xbf16>
    %30 = vector.shape_cast %29 : vector<1x384x4xbf16> to vector<384x4xbf16>
    %c5 = arith.constant 5 : index
    %c0_29 = arith.constant 0 : index
    %c0_30 = arith.constant 0 : index
    %31 = vector.load %arg2[%c5, %c0_29, %c0_30] : memref<9x4x8xbf16, #tpu.memory_space<vmem>>, vector<1x4x8xbf16>
    %32 = vector.shape_cast %31 : vector<1x4x8xbf16> to vector<4x8xbf16>
    %cst_31 = arith.constant dense<0.000000e+00> : vector<384x8xf32>
    %33 = tpu.matmul %30, %32, %cst_31 {dimension_numbers = #tpu.dot_dimension_numbers<[1], [0], [0], [1], [0, 0, 1, 1], [], []>} : vector<384x4xbf16>, vector<4x8xbf16>, vector<384x8xf32> -> vector<384x8xf32>
    %34 = arith.addf %28, %33 : vector<384x8xf32>
    %c0_32 = arith.constant 0 : index
    %c36 = arith.constant 36 : index
    %c0_33 = arith.constant 0 : index
    %35 = vector.load %arg1[%c0_32, %c36, %c0_33] : memref<1x424x4xbf16, #tpu.memory_space<vmem>>, vector<1x384x4xbf16>
    %36 = vector.shape_cast %35 : vector<1x384x4xbf16> to vector<384x4xbf16>
    %c6 = arith.constant 6 : index
    %c0_34 = arith.constant 0 : index
    %c0_35 = arith.constant 0 : index
    %37 = vector.load %arg2[%c6, %c0_34, %c0_35] : memref<9x4x8xbf16, #tpu.memory_space<vmem>>, vector<1x4x8xbf16>
    %38 = vector.shape_cast %37 : vector<1x4x8xbf16> to vector<4x8xbf16>
    %cst_36 = arith.constant dense<0.000000e+00> : vector<384x8xf32>
    %39 = tpu.matmul %36, %38, %cst_36 {dimension_numbers = #tpu.dot_dimension_numbers<[1], [0], [0], [1], [0, 0, 1, 1], [], []>} : vector<384x4xbf16>, vector<4x8xbf16>, vector<384x8xf32> -> vector<384x8xf32>
    %40 = arith.addf %34, %39 : vector<384x8xf32>
    %c0_37 = arith.constant 0 : index
    %c37 = arith.constant 37 : index
    %c0_38 = arith.constant 0 : index
    %41 = vector.load %arg1[%c0_37, %c37, %c0_38] : memref<1x424x4xbf16, #tpu.memory_space<vmem>>, vector<1x384x4xbf16>
    %42 = vector.shape_cast %41 : vector<1x384x4xbf16> to vector<384x4xbf16>
    %c7 = arith.constant 7 : index
    %c0_39 = arith.constant 0 : index
    %c0_40 = arith.constant 0 : index
    %43 = vector.load %arg2[%c7, %c0_39, %c0_40] : memref<9x4x8xbf16, #tpu.memory_space<vmem>>, vector<1x4x8xbf16>
    %44 = vector.shape_cast %43 : vector<1x4x8xbf16> to vector<4x8xbf16>
    %cst_41 = arith.constant dense<0.000000e+00> : vector<384x8xf32>
    %45 = tpu.matmul %42, %44, %cst_41 {dimension_numbers = #tpu.dot_dimension_numbers<[1], [0], [0], [1], [0, 0, 1, 1], [], []>} : vector<384x4xbf16>, vector<4x8xbf16>, vector<384x8xf32> -> vector<384x8xf32>
    %46 = arith.addf %40, %45 : vector<384x8xf32>
    %c0_42 = arith.constant 0 : index
    %c38 = arith.constant 38 : index
    %c0_43 = arith.constant 0 : index
    %47 = vector.load %arg1[%c0_42, %c38, %c0_43] : memref<1x424x4xbf16, #tpu.memory_space<vmem>>, vector<1x384x4xbf16>
    %48 = vector.shape_cast %47 : vector<1x384x4xbf16> to vector<384x4xbf16>
    %c8 = arith.constant 8 : index
    %c0_44 = arith.constant 0 : index
    %c0_45 = arith.constant 0 : index
    %49 = vector.load %arg2[%c8, %c0_44, %c0_45] : memref<9x4x8xbf16, #tpu.memory_space<vmem>>, vector<1x4x8xbf16>
    %50 = vector.shape_cast %49 : vector<1x4x8xbf16> to vector<4x8xbf16>
    %cst_46 = arith.constant dense<0.000000e+00> : vector<384x8xf32>
    %51 = tpu.matmul %48, %50, %cst_46 {dimension_numbers = #tpu.dot_dimension_numbers<[1], [0], [0], [1], [0, 0, 1, 1], [], []>} : vector<384x4xbf16>, vector<4x8xbf16>, vector<384x8xf32> -> vector<384x8xf32>
    %52 = arith.addf %46, %51 : vector<384x8xf32>
    %c0_47 = arith.constant 0 : index
    %c0_48 = arith.constant 0 : index
    %c0_49 = arith.constant 0 : index
    %53 = vector.load %arg3[%c0_47, %c0_48, %c0_49] : memref<1x384x1xf32, #tpu.memory_space<vmem>>, vector<1x384x1xf32>
    %54 = vector.shape_cast %53 : vector<1x384x1xf32> to vector<384x1xf32>
    %55 = vector.broadcast %54 : vector<384x1xf32> to vector<384x8xf32>
    %56 = arith.mulf %52, %55 : vector<384x8xf32>
    %c0_i32 = arith.constant 0 : i32
    %57 = arith.cmpi eq, %arg0, %c0_i32 : i32
    %58 = arith.extui %57 : i1 to i32
    %c0_i32_50 = arith.constant 0 : i32
    %59 = arith.cmpi ne, %58, %c0_i32_50 : i32
    scf.if %59 {
      %cst_63 = arith.constant 0.000000e+00 : f32
      %78 = vector.broadcast %cst_63 : f32 to vector<1x8xf32>
      %c0_64 = arith.constant 0 : index
      %c0_65 = arith.constant 0 : index
      %79 = vector.load %arg7[%c0_64, %c0_65] : memref<1x8xf32, #tpu.memory_space<vmem>>, vector<1x8xf32>
      tpu.vector_store %arg7[%c0_64, %c0_65], %78 {strides = array<i32>} : memref<1x8xf32, #tpu.memory_space<vmem>>, vector<1x8xf32>,
      %cst_66 = arith.constant 0.000000e+00 : f32
      %80 = vector.broadcast %cst_66 : f32 to vector<1x8xf32>
      %c0_67 = arith.constant 0 : index
      %c0_68 = arith.constant 0 : index
      %81 = vector.load %arg8[%c0_67, %c0_68] : memref<1x8xf32, #tpu.memory_space<vmem>>, vector<1x8xf32>
      tpu.vector_store %arg8[%c0_67, %c0_68], %80 {strides = array<i32>} : memref<1x8xf32, #tpu.memory_space<vmem>>, vector<1x8xf32>,
    } else {
    }
    %c0_51 = arith.constant 0 : index
    %c0_52 = arith.constant 0 : index
    %60 = vector.load %arg7[%c0_51, %c0_52] : memref<1x8xf32, #tpu.memory_space<vmem>>, vector<1x8xf32>
    %cst_53 = arith.constant dense<0.000000e+00> : vector<8xf32>
    %61 = vector.multi_reduction <add>, %56, %cst_53 [0] : vector<384x8xf32> to vector<8xf32>
    %62 = vector.shape_cast %61 : vector<8xf32> to vector<1x8xf32>
    %63 = arith.addf %60, %62 : vector<1x8xf32>
    %c0_54 = arith.constant 0 : index
    %c0_55 = arith.constant 0 : index
    %64 = vector.load %arg7[%c0_54, %c0_55] : memref<1x8xf32, #tpu.memory_space<vmem>>, vector<1x8xf32>
    tpu.vector_store %arg7[%c0_54, %c0_55], %63 {strides = array<i32>} : memref<1x8xf32, #tpu.memory_space<vmem>>, vector<1x8xf32>,
    %c0_56 = arith.constant 0 : index
    %c0_57 = arith.constant 0 : index
    %65 = vector.load %arg8[%c0_56, %c0_57] : memref<1x8xf32, #tpu.memory_space<vmem>>, vector<1x8xf32>
    %66 = arith.mulf %52, %56 : vector<384x8xf32>
    %cst_58 = arith.constant dense<0.000000e+00> : vector<8xf32>
    %67 = vector.multi_reduction <add>, %66, %cst_58 [0] : vector<384x8xf32> to vector<8xf32>
    %68 = vector.shape_cast %67 : vector<8xf32> to vector<1x8xf32>
    %69 = arith.addf %65, %68 : vector<1x8xf32>
    %c0_59 = arith.constant 0 : index
    %c0_60 = arith.constant 0 : index
    %70 = vector.load %arg8[%c0_59, %c0_60] : memref<1x8xf32, #tpu.memory_space<vmem>>, vector<1x8xf32>
    tpu.vector_store %arg8[%c0_59, %c0_60], %69 {strides = array<i32>} : memref<1x8xf32, #tpu.memory_space<vmem>>, vector<1x8xf32>,
    %c384_i32 = arith.constant 384 : i32
    %71 = arith.muli %arg0, %c384_i32 : i32
    %72 = tpu.assume_multiple %71, 8 : i32
    %73 = arith.index_cast %72 : i32 to index
    %c0_61 = arith.constant 0 : index
    %74 = vector.load %arg6[%73, %c0_61] : memref<768x8xf32, #tpu.memory_space<vmem>>, vector<384x8xf32>
    tpu.vector_store %arg6[%73, %c0_61], %52 {strides = array<i32>} : memref<768x8xf32, #tpu.memory_space<vmem>>, vector<384x8xf32>,
    %c1_i32 = arith.constant 1 : i32
    %75 = arith.cmpi eq, %arg0, %c1_i32 : i32
    %76 = arith.extui %75 : i1 to i32
    %c0_i32_62 = arith.constant 0 : i32
    %77 = arith.cmpi ne, %76, %c0_i32_62 : i32
    scf.if %77 {
      %c0_63 = arith.constant 0 : index
      %c0_64 = arith.constant 0 : index
      %78 = vector.load %arg7[%c0_63, %c0_64] : memref<1x8xf32, #tpu.memory_space<vmem>>, vector<1x8xf32>
      %cst_65 = arith.constant 0.001953125 : f32
      %79 = vector.broadcast %cst_65 : f32 to vector<1x8xf32>
      %80 = arith.mulf %78, %79 : vector<1x8xf32>
      %c0_66 = arith.constant 0 : index
      %c0_67 = arith.constant 0 : index
      %81 = vector.load %arg8[%c0_66, %c0_67] : memref<1x8xf32, #tpu.memory_space<vmem>>, vector<1x8xf32>
      %cst_68 = arith.constant 0.001953125 : f32
      %82 = vector.broadcast %cst_68 : f32 to vector<1x8xf32>
      %83 = arith.mulf %81, %82 : vector<1x8xf32>
      %84 = arith.mulf %80, %80 : vector<1x8xf32>
      %85 = arith.subf %83, %84 : vector<1x8xf32>
      %cst_69 = arith.constant 0.000000e+00 : f32
      %86 = vector.broadcast %cst_69 : f32 to vector<1x8xf32>
      %87 = arith.maximumf %85, %86 : vector<1x8xf32>
      %cst_70 = arith.constant 9.99999974E-6 : f32
      %88 = vector.broadcast %cst_70 : f32 to vector<1x8xf32>
      %89 = arith.addf %87, %88 : vector<1x8xf32>
      %90 = math.rsqrt %89 : vector<1x8xf32>
      %c0_71 = arith.constant 0 : index
      %c0_72 = arith.constant 0 : index
      %91 = vector.load %arg4[%c0_71, %c0_72] : memref<1x8xf32, #tpu.memory_space<vmem>>, vector<1x8xf32>
      %92 = arith.mulf %91, %90 : vector<1x8xf32>
      %c0_73 = arith.constant 0 : index
      %c0_74 = arith.constant 0 : index
      %93 = vector.load %arg5[%c0_73, %c0_74] : memref<1x8xf32, #tpu.memory_space<vmem>>, vector<1x8xf32>
      %94 = arith.mulf %80, %92 : vector<1x8xf32>
      %95 = arith.subf %93, %94 : vector<1x8xf32>
      %c0_i32_75 = arith.constant 0 : i32
      %c2_i32 = arith.constant 2 : i32
      %96 = arith.addi %c0_i32_75, %c2_i32 : i32
      %c1_i32_76 = arith.constant 1 : i32
      scf.for %arg9 = %c0_i32_75 to %96 step %c1_i32_76  : i32 {
        %c384_i32_78 = arith.constant 384 : i32
        %97 = arith.muli %arg9, %c384_i32_78 : i32
        %98 = tpu.assume_multiple %97, 8 : i32
        %99 = arith.index_cast %98 : i32 to index
        %c0_79 = arith.constant 0 : index
        %100 = vector.load %arg6[%99, %c0_79] : memref<768x8xf32, #tpu.memory_space<vmem>>, vector<384x8xf32>
        %101 = vector.broadcast %92 : vector<1x8xf32> to vector<384x8xf32>
        %102 = arith.mulf %100, %101 : vector<384x8xf32>
        %103 = vector.broadcast %95 : vector<1x8xf32> to vector<384x8xf32>
        %104 = arith.addf %102, %103 : vector<384x8xf32>
        %cst_80 = arith.constant 0.000000e+00 : f32
        %105 = vector.broadcast %cst_80 : f32 to vector<384x8xf32>
        %106 = arith.maximumf %104, %105 : vector<384x8xf32>
        %107 = arith.index_cast %98 : i32 to index
        %c0_81 = arith.constant 0 : index
        %108 = vector.load %arg6[%107, %c0_81] : memref<768x8xf32, #tpu.memory_space<vmem>>, vector<384x8xf32>
        tpu.vector_store %arg6[%107, %c0_81], %106 {strides = array<i32>} : memref<768x8xf32, #tpu.memory_space<vmem>>, vector<384x8xf32>,
      }
      %c2_i32_77 = arith.constant 2 : i32
    } else {
    }
    return
  }
  func.func @transform_0(%arg0: i32) -> (i32, i32, i32) {
    %c0_i32 = arith.constant 0 : i32
    %c0_i32_0 = arith.constant 0 : i32
    %c0_i32_1 = arith.constant 0 : i32
    return %arg0, %c0_i32, %c0_i32_0 : i32, i32, i32
  }
  func.func @transform_1(%arg0: i32) -> (i32, i32, i32) {
    %c0_i32 = arith.constant 0 : i32
    %c0_i32_0 = arith.constant 0 : i32
    %c0_i32_1 = arith.constant 0 : i32
    %c0_i32_2 = arith.constant 0 : i32
    return %c0_i32, %c0_i32_0, %c0_i32_1 : i32, i32, i32
  }
  func.func @transform_2(%arg0: i32) -> (i32, i32, i32) {
    %c0_i32 = arith.constant 0 : i32
    %c0_i32_0 = arith.constant 0 : i32
    %c0_i32_1 = arith.constant 0 : i32
    %c0_i32_2 = arith.constant 0 : i32
    return %c0_i32, %c0_i32_0, %c0_i32_1 : i32, i32, i32
  }
  func.func @transform_3(%arg0: i32) -> (i32, i32) {
    %c0_i32 = arith.constant 0 : i32
    %c0_i32_0 = arith.constant 0 : i32
    %c0_i32_1 = arith.constant 0 : i32
    return %c0_i32, %c0_i32_0 : i32, i32
  }
  func.func @transform_4(%arg0: i32) -> (i32, i32) {
    %c0_i32 = arith.constant 0 : i32
    %c0_i32_0 = arith.constant 0 : i32
    %c0_i32_1 = arith.constant 0 : i32
    return %c0_i32, %c0_i32_0 : i32, i32
  }
  func.func @transform_5(%arg0: i32) -> (i32, i32) {
    %c0_i32 = arith.constant 0 : i32
    %c0_i32_0 = arith.constant 0 : i32
    %c0_i32_1 = arith.constant 0 : i32
    return %c0_i32, %c0_i32_0 : i32, i32
  }
}

</mosaic_0001>

<bundles_post_ra>
// kernel: conv_block_forward.1
= control target key start
LH: loop header
LB: loop body
LE: loop exit
PB: predicated region body
PF: predicated region fallthrough
CT: control target
= control target key end

     0   :  { %s7234_s18 = smov 0   ;;  %s9370_s0 = inlined_call_operand.vmem [shape: bf16[2,424,4], index: 0, kind: input, shape index: {}]   ;;  %s9371_s1 = inlined_call_operand.vmem [shape: bf16[9,4,8], index: 1, kind: input, shape index: {}]   ;;  %s9372_s2 = inlined_call_operand.vmem [shape: f32[1,384,1], index: 2, kind: input, shape index: {}]   ;;  %s9373_s3 = inlined_call_operand.vmem [shape: f32[1,8], index: 3, kind: input, shape index: {}]   ;;  %s9374_s4 = inlined_call_operand.vmem [shape: f32[1,8], index: 4, kind: input, shape index: {}]   ;;  %s9375_s5 = inlined_call_operand.vmem [shape: f32[768,8], index: 5, kind: output, shape index: {}]  }
   0x1 LB: > { %s7240_s19 = sadd.s32 4294967295, %s7196_s18   ;;  %p5642_p0 = scmp.ge.s32.totalorder %s7196_s18, 1  ;;  %s7196_s18 = sphi %s7234_s18, %s15_s18  }
   0x2   : > { %p182_p1 = scmp.lt.s32.totalorder %s7196_s18, 3 }
   0x4   : > { %p183_p2 = pnand %p5642_p0, %p182_p1 }
   0x6   : > { %186 = sbr.rel (%p183_p2) target bundleno = 907 (0x38b), region = 40 }
   0xd   : > { %v5644_v0 = vld [vmem:[%s9371_s1 + $0x2] sm:$0x3]  ;;  %vm656_vm0 = vcmask 1041408   ;;  %v5794_v1 = vld [vmem:[%s9371_s1 + $0x8] sm:$0x3]  ;;  %p205_p3 = scmp.lt.s32.totalorder %s7240_s19, 1 }
   0xe   : > { %7013 = vmatprep.subr.msk.bf16.mxu1 %vm656_vm0, %v5644_v0  ;;  %7017 = vmatprep.subr.msk.bf16.mxu0 %vm656_vm0, %v5794_v1  ;;  %v658_v2 = vsel %vm656_vm0, %v5644_v0, 0  ;;  %v7255_v3 = vsel %vm656_vm0, %v5794_v1, 0  ;;  %v259_v4 = vld [vmem:[%s9371_s1] sm:$0x3]  ;;  %v5820_v5 = vld [vmem:[%s9371_s1 + $0xa] sm:$0x3] }
   0xf   : > { %6178 = vmatpush3.bf16.msra.mxu1 %v658_v2  ;;  %6378 = vmatpush3.bf16.msra.mxu0 %v7255_v3  ;;  %s206_s24 = scalar_select %p205_p3, %s7240_s19, 1  ;;  %vm386_vm1 = vsmask.f32 7424  ;;  %vm583_vm2 = vcmask 31744   ;;  %v934_v6 = vsel %vm656_vm0, %v259_v4, 0  ;;  %v7282_v12 = vsel %vm656_vm0, %v5820_v5, 0 }
  0x10   : > { %7014 = vmatprep.subr.msk.bf16.mxu1 %vm656_vm0, %v259_v4  ;;  %7019 = vmatprep.subr.msk.bf16.mxu0 %vm656_vm0, %v5820_v5  ;;  %vm2142_vm3 = vsmask.f32 6400  ;;  %v7318_v39 = vld [vmem:[%s9371_s1 + $0x4] sm:$0x3]  ;;  %v7352_v1 = vld [vmem:[%s9371_s1 + $0xc] sm:$0x3] }
  0x11   : > { %s7023_s29 = smul.u32 212, %s206_s24  ;;  %vm2721_vm4 = vcmask 1045504   ;;  %vm1167_vm5 = vcmask 1046528   ;;  %vm3696_vm6 = vsmask.f32 5376  ;;  %vm4275_vm7 = vcmask 1044480  }
  0x12   : > { %p5948_p4 = scmp.ne.s32.totalorder %s7240_s19, 0 }
  0x13   : > { %s7270_s7 = scalar_lea.vmem %s9370_s0, %s7023_s29  ;;  %vm5013_vm8 = vcmask (!%p5948_p4), 57344  }
  0x14   : > { %v211_v7 = vld [vmem:[%s7270_s7] sm:$0xf]  ;;  %v212_v8 = vld [vmem:[%s7270_s7 + $0x4] sm:$0xf]  ;;  %v7278_v10 = vld [vmem:[%s7270_s7 + $0x8] sm:$0xff]  }
  0x15   : > { %v7275_v9 = vcombine.low %v211_v7, %v212_v8  ;;  %v1565_v11 = vld [vmem:[%s7270_s7 + $0x8] sm:$0xe]  ;;  %v7285_v13 = vld [vmem:[%s7270_s7 + $0xc] sm:$0xf]  ;;  %v395_v16 = vshll.u32 %v7278_v10, 16  ;;  %v399_v17 = vshrl.u32 %v7278_v10, 16 }
  0x16   : > { %v7292_v18 = vld [vmem:[%s7270_s7 + $0x10] sm:$0xff]   ;;  %v7298_v20 = vcombine.low %v1565_v11, %v7285_v13  ;;  %v7306_v28 = vld [vmem:[%s7270_s7 + $0x18] sm:$0xff]   ;;  %v7312_v34 = vld [vmem:[%s7270_s7 + $0x20] sm:$0xff]  }
  0x17   : > { %v388_v14 = vshrl.u32 %v7275_v9, 16  ;;  %v390_v15 = vshll.u32 %v7275_v9, 16  ;;  %v7295_v19 = vld [vmem:[%s7270_s7 + $0x10] sm:$0xff]   ;;  %v397_v22 = vrot.slane %v395_v16, 1  ;;  %v2152_v23 = vshrl.u32 %v7292_v18, 16  ;;  %v7309_v33 = vld [vmem:[%s7270_s7 + $0x18] sm:$0xff]  }
  0x18   : > { %v2155_v24 = vshll.u32 %v7292_v18, 16  ;;  %v2144_v25 = vshrl.u32 %v7298_v20, 16  ;;  %v2147_v26 = vshll.u32 %v7298_v20, 16  ;;  %v403_v27 = vshll.u32 %v7295_v19, 16  ;;  %v7327_v48 = vld [vmem:[%s7270_s7 + $0x20] sm:$0xff]   ;;  %v7330_v49 = vld [vmem:[%s7270_s7 + $0x28] sm:$0xff]  }
  0x19   : > { %v392_v21 = vrot.slane %v390_v15, 1  ;;  %v401_v30 = vor.u32 %v399_v17, %v397_v22  ;;  %v2154_v31 = vrot.slane %v2152_v23, 1  ;;  %v2161_v38 = vshrl.u32 %v7306_v28, 16  ;;  %v7336_v54 = vld [vmem:[%s7270_s7 + $0x28] sm:$0xff]   ;;  %v7342_v59 = vld [vmem:[%s7270_s7 + $0x30] sm:$0xff]  }
  0x1a   : > { %v2157_v32 = vrot.slane %v2155_v24, 2  ;;  %v2146_v35 = vrot.slane %v2144_v25, 1  ;;  %v2149_v36 = vrot.slane %v2147_v26, 2  ;;  %v405_v37 = vrot.slane %v403_v27, 1  ;;  %v7347_v0 = vld [vmem:[%s7270_s7 + $0x30] sm:$0xff]  }
  0x1b   : > { %v393_v29 = vor.u32 %v392_v21, %v388_v14  ;;  %v2164_v42 = vshll.u32 %v7306_v28, 16  ;;  %v407_v43 = vshrl.u32 %v7295_v19, 16  ;;  %v2163_v46 = vrot.slane %v2161_v38, 1 }
  0x1c   : > { %v2158_v41 = vor.u32 %v2157_v32, %v2154_v31  ;;  %v2150_v44 = vor.u32 %v2149_v36, %v2146_v35  ;;  %v406_v45 = vsel %vm386_vm1, %v401_v30, %v405_v37  ;;  %v411_v47 = vshll.u32 %v7309_v33, 16  ;;  %v7375_v32 = vld [vmem:[%s7270_s7 + $0x38] sm:$0xff]  }
  0x1d   : > { %v398_v40 = vsel %vm386_vm1, %v393_v29, %v397_v22  ;;  %v2166_v50 = vrot.slane %v2164_v42, 2  ;;  %v409_v51 = vor.u32 %v407_v43, %v405_v37  ;;  %v2170_v52 = vshrl.u32 %v7312_v34, 16  ;;  %v7366_v22 = vld [vmem:[%s7270_s7 + $0x38] sm:$0xff]   ;;  %v7386_v43 = vld [vmem:[%s7270_s7 + $0x40] sm:$0xff]  }
  0x1e   : > { %6179 = vmatprep.mubr.msk.bf16.mxu1 %vm583_vm2, %v398_v40  ;;  %v2173_v53 = vshll.u32 %v7312_v34, 16  ;;  %v2159_v55 = vsel %vm2142_vm3, %v2150_v44, %v2158_v41  ;;  %v413_v56 = vrot.slane %v411_v47, 1  ;;  %v415_v57 = vshrl.u32 %v7309_v33, 16 }
  0x1f   : > { %6180 = vmatmul.mubr.msk.bf16.vlgmr.msra.gmra.mrb[0].mxu1 %vm583_vm2, %v406_v45  ;;  %v419_v58 = vshll.u32 %v7327_v48, 16  ;;  %6379 = vmatprep.mubr.msk.bf16.mxu0 %vm583_vm2, %v2159_v55  ;;  %v2167_v60 = vor.u32 %v2166_v50, %v2163_v46  ;;  %v2172_v61 = vrot.slane %v2170_v52, 1  ;;  %v2179_v63 = vshrl.u32 %v7330_v49, 16  ;;  %v7391_v50 = vld [vmem:[%s7270_s7 + $0x40] sm:$0xff]  }
  0x20   : > { %6228 = vmatpush3.bf16.msra.mxu1 %v934_v6  ;;  %v2175_v62 = vrot.slane %v2173_v53, 2  ;;  %v414_v2 = vsel %vm386_vm1, %v409_v51, %v413_v56  ;;  %v417_v4 = vor.u32 %v415_v57, %v413_v56  ;;  %v2182_v6 = vshll.u32 %v7330_v49, 16 }
  0x21   : > { %7015 = vmatprep.subr.msk.bf16.mxu1 %vm656_vm0, %v7318_v39  ;;  %v421_v5 = vrot.slane %v419_v58, 1  ;;  %v2168_v7 = vsel %vm2142_vm3, %v2158_v41, %v2167_v60  ;;  %6183 = vmatprep.mubr.msk.bf16.mxu1 %vm583_vm2, %v414_v2  ;;  %v2181_v11 = vrot.slane %v2179_v63, 1  ;;  %v423_v14 = vshrl.u32 %v7327_v48, 16 }
  0x22   : > { %v2176_v8 = vor.u32 %v2175_v62, %v2172_v61  ;;  %6380 = vmatmul.mubr.msk.bf16.vlgmr.msra.gmra.mrb[0].mxu0 %vm583_vm2, %v2168_v7  ;;  %v2184_v16 = vrot.slane %v2182_v6, 2  ;;  %v427_v17 = vshll.u32 %v7336_v54, 16  ;;  %v2188_v21 = vshrl.u32 %v7342_v59, 16  ;;  %v7402_v61 = vld [vmem:[%s7270_s7 + $0x48] sm:$0xff]  }
  0x23   : > { %v422_v15 = vsel %vm386_vm1, %v417_v4, %v421_v5  ;;  %6428 = vmatpush3.bf16.msra.mxu0 %v7282_v12  ;;  %v425_v24 = vor.u32 %v423_v14, %v421_v5  ;;  %v2191_v25 = vshll.u32 %v7342_v59, 16  ;;  %v431_v26 = vshrl.u32 %v7336_v54, 16 }
  0x24   : > { %v2177_v23 = vsel %vm2142_vm3, %v2167_v60, %v2176_v8  ;;  %v2185_v27 = vor.u32 %v2184_v16, %v2181_v11  ;;  %v429_v29 = vrot.slane %v427_v17, 1  ;;  %v2190_v30 = vrot.slane %v2188_v21, 1  ;;  %7020 = vmatprep.subr.msk.bf16.mxu0 %vm656_vm0, %v7352_v1  ;;  %v7399_v60 = vld [vmem:[%s7270_s7 + $0x48] sm:$0xff]  }
  0x25   : > { %6383 = vmatprep.mubr.msk.bf16.mxu0 %vm583_vm2, %v2177_v23  ;;  %v435_v31 = vshll.u32 %v7347_v0, 16  ;;  %v2193_v12 = vrot.slane %v2191_v25, 2  ;;  %v2197_v35 = vshrl.u32 %v7366_v22, 16  ;;  %v2200_v36 = vshll.u32 %v7366_v22, 16 }
  0x26   : > { %v439_v37 = vshrl.u32 %v7347_v0, 16  ;;  %v2186_v38 = vsel %vm2142_vm3, %v2176_v8, %v2185_v27  ;;  %v430_v40 = vsel %vm386_vm1, %v425_v24, %v429_v29  ;;  %v433_v41 = vor.u32 %v431_v26, %v429_v29  ;;  %v7411_v8 = vld [vmem:[%s7270_s7 + $0x50] sm:$0xff]  }
  0x27   : > { %6184 = vmatmul.mubr.msk.bf16.gmra.mrb[4].mxu1 %vm583_vm2, %v422_v15  ;;  %v437_v42 = vrot.slane %v435_v31, 1  ;;  %v2194_v44 = vor.u32 %v2193_v12, %v2190_v30  ;;  %v2199_v45 = vrot.slane %v2197_v35, 1  ;;  %v2202_v46 = vrot.slane %v2200_v36, 2  ;;  %v7419_v24 = vld [vmem:[%s7270_s7 + $0x50] sm:$0xff]  }
  0x28   : > { %6187 = vmatprep.mubr.msk.bf16.mxu1 %vm583_vm2, %v430_v40  ;;  %v443_v47 = vshll.u32 %v7375_v32, 16  ;;  %v2206_v52 = vshrl.u32 %v7386_v43, 16  ;;  %v2209_v53 = vshll.u32 %v7386_v43, 16  ;;  %v447_v58 = vshrl.u32 %v7375_v32, 16 }
  0x29   : > { %v441_v51 = vor.u32 %v439_v37, %v437_v42  ;;  %v2195_v55 = vsel %vm2142_vm3, %v2185_v27, %v2194_v44  ;;  %v438_v56 = vsel %vm386_vm1, %v433_v41, %v437_v42  ;;  %v451_v2 = vshll.u32 %v7391_v50, 16  ;;  %v7423_v27 = vld [vmem:[%s7270_s7 + $0x58] sm:$0xff]  }
  0x2a   : > { %v445_v57 = vrot.slane %v443_v47, 1  ;;  %6384 = vmatmul.mubr.msk.bf16.gmra.mrb[4].mxu0 %vm583_vm2, %v2186_v38  ;;  %v2208_v62 = vrot.slane %v2206_v52, 1  ;;  %v2211_v63 = vrot.slane %v2209_v53, 2  ;;  %v455_v4 = vshrl.u32 %v7391_v50, 16  ;;  %v7429_v38 = vld [vmem:[%s7270_s7 + $0x58] sm:$0xff]  }
  0x2b   : > { %6387 = vmatprep.mubr.msk.bf16.mxu0 %vm583_vm2, %v2195_v55  ;;  %v2203_v5 = vor.u32 %v2202_v46, %v2199_v45  ;;  %v2215_v7 = vshrl.u32 %v7399_v60, 16  ;;  %v453_v14 = vrot.slane %v451_v2, 1  ;;  %v2218_v15 = vshll.u32 %v7399_v60, 16  ;;  %v7436_v45 = vld [vmem:[%s7270_s7 + $0x60] sm:$0xff]   ;;  %v7452_v2 = vld [vmem:[%s7270_s7 + $0x68] sm:$0xff]  }
  0x2c   : > { %v446_v6 = vsel %vm386_vm1, %v441_v51, %v445_v57  ;;  %v2212_v11 = vor.u32 %v2211_v63, %v2208_v62  ;;  %v459_v16 = vshll.u32 %v7402_v61, 16  ;;  %v2224_v21 = vshrl.u32 %v7411_v8, 16 }
  0x2d   : > { %v2217_v17 = vrot.slane %v2215_v7, 1  ;;  %v2227_v23 = vshll.u32 %v7411_v8, 16  ;;  %v449_v25 = vor.u32 %v447_v58, %v445_v57  ;;  %v2220_v26 = vrot.slane %v2218_v15, 2  ;;  %v7447_v58 = vld [vmem:[%s7270_s7 + $0x60] sm:$0xff]  }
  0x2e   : > { %v2204_v29 = vsel %vm2142_vm3, %v2194_v44, %v2203_v5  ;;  %v457_v30 = vor.u32 %v455_v4, %v453_v14  ;;  %v461_v31 = vrot.slane %v459_v16, 1  ;;  %v2213_v12 = vsel %vm2142_vm3, %v2203_v5, %v2212_v11 }
  0x2f   : > { %6188 = vmatmul.mubr.msk.bf16.gmra.mrb[8].mxu1 %vm583_vm2, %v438_v56  ;;  %v2226_v35 = vrot.slane %v2224_v21, 1  ;;  %v2229_v36 = vrot.slane %v2227_v23, 2  ;;  %v467_v37 = vshll.u32 %v7419_v24, 16  ;;  %v454_v40 = vsel %vm386_vm1, %v449_v25, %v453_v14  ;;  %v7455_v14 = vld [vmem:[%s7270_s7 + $0x68] sm:$0xff]  }
  0x30   : > { %6191 = vmatprep.mubr.msk.bf16.mxu1 %vm583_vm2, %v446_v6  ;;  %v2221_v41 = vor.u32 %v2220_v26, %v2217_v17  ;;  %v463_v42 = vshrl.u32 %v7402_v61, 16  ;;  %v2233_v44 = vshrl.u32 %v7423_v27, 16  ;;  %v462_v46 = vsel %vm386_vm1, %v457_v30, %v461_v31 }
  0x31   : > { %v2236_v47 = vshll.u32 %v7423_v27, 16  ;;  %v471_v51 = vshrl.u32 %v7419_v24, 16  ;;  %v475_v52 = vshll.u32 %v7429_v38, 16  ;;  %v2230_v53 = vor.u32 %v2229_v36, %v2226_v35 }
  0x32   : > { %6388 = vmatmul.mubr.msk.bf16.gmra.mrb[8].mxu0 %vm583_vm2, %v2204_v29  ;;  %v2242_v55 = vshrl.u32 %v7436_v45, 16  ;;  %v2245_v56 = vshll.u32 %v7436_v45, 16  ;;  %v469_v57 = vrot.slane %v467_v37, 1  ;;  %v2222_v62 = vsel %vm2142_vm3, %v2212_v11, %v2221_v41  ;;  %v2715_v37 = vld [vmem:[%s7270_s7 + $0x8] sm:$0xc] }
  0x33   : > { %6391 = vmatprep.mubr.msk.bf16.mxu0 %vm583_vm2, %v2213_v12  ;;  %v465_v63 = vor.u32 %v463_v42, %v461_v31  ;;  %v2235_v4 = vrot.slane %v2233_v44, 1  ;;  %v2238_v5 = vrot.slane %v2236_v47, 2  ;;  %v477_v7 = vrot.slane %v475_v52, 1  ;;  %v7476_v52 = vld [vmem:[%s7270_s7 + $0x78] sm:$0xff]  }
  0x34   : > { %v473_v6 = vor.u32 %v471_v51, %v469_v57  ;;  %v2231_v15 = vsel %vm2142_vm3, %v2221_v41, %v2230_v53  ;;  %v2244_v16 = vrot.slane %v2242_v55, 1  ;;  %v2247_v17 = vrot.slane %v2245_v56, 2 }
  0x35   : > { %v479_v21 = vshrl.u32 %v7429_v38, 16  ;;  %v483_v11 = vshll.u32 %v7447_v58, 16  ;;  %v470_v23 = vsel %vm386_vm1, %v465_v63, %v469_v57  ;;  %v2251_v25 = vshrl.u32 %v7452_v2, 16 }
  0x36   : > { %v2254_v26 = vshll.u32 %v7452_v2, 16  ;;  %v2239_v29 = vor.u32 %v2238_v5, %v2235_v4  ;;  %v478_v30 = vsel %vm386_vm1, %v473_v6, %v477_v7  ;;  %v487_v31 = vshrl.u32 %v7447_v58, 16 }
  0x37   : > { %6192 = vmatmul.mubr.msk.bf16.gmra.mrb[12].mxu1 %vm583_vm2, %v454_v40  ;;  %v491_v12 = vshll.u32 %v7455_v14, 16  ;;  %v2248_v35 = vor.u32 %v2247_v17, %v2244_v16  ;;  %v485_v36 = vrot.slane %v483_v11, 1  ;;  %v7471_v40 = vld [vmem:[%s7270_s7 + $0x70] sm:$0xff]   ;;  %v481_v41 = vor.u32 %v479_v21, %v477_v7  ;;  %v7493_v16 = vld [vmem:[%s7270_s7 + $0x80] sm:$0xff]  }
  0x38   : > { %6195 = vmatprep.mubr.msk.bf16.mxu1 %vm583_vm2, %v462_v46  ;;  %v2253_v42 = vrot.slane %v2251_v25, 1  ;;  %v2256_v44 = vrot.slane %v2254_v26, 2  ;;  %v2240_v46 = vsel %vm2142_vm3, %v2230_v53, %v2239_v29  ;;  %v5821_v56 = vcombine.low %v2715_v37, %v7285_v13  ;;  %v7499_v25 = vld [vmem:[%s7270_s7 + $0x88] sm:$0xff]  }
  0x39   : > { %v489_v47 = vor.u32 %v487_v31, %v485_v36  ;;  %v493_v51 = vrot.slane %v491_v12, 1  ;;  %v2249_v55 = vsel %vm2142_vm3, %v2239_v29, %v2248_v35  ;;  %v499_v57 = vshll.u32 %v7471_v40, 16 }
  0x3a   : > { %6392 = vmatmul.mubr.msk.bf16.gmra.mrb[12].mxu0 %vm583_vm2, %v2222_v62  ;;  %v486_v62 = vsel %vm386_vm1, %v481_v41, %v485_v36  ;;  %v495_v63 = vshrl.u32 %v7455_v14, 16  ;;  %v7485_v53 = vor.u32 %v2256_v44, %v2253_v42  ;;  %v503_v5 = vshrl.u32 %v7471_v40, 16  ;;  %v7514_v42 = vld [vmem:[%s7270_s7 + $0x90] sm:$0xff]   ;;  %v7517_v44 = vld [vmem:[%s7270_s7 + $0x98] sm:$0xff]  }
  0x3b   : > { %6395 = vmatprep.mubr.msk.bf16.mxu0 %vm583_vm2, %v2231_v15  ;;  %v494_v4 = vsel %vm386_vm1, %v489_v47, %v493_v51  ;;  %v507_v13 = vshll.u32 %v7476_v52, 16  ;;  %v2722_v6 = vrot.slane %v5821_v56, 2  ;;  %v2723_v7 = vrot.slane %v7292_v18, 2 }
  0x3c   : > { %v501_v15 = vrot.slane %v499_v57, 1  ;;  %v497_v17 = vor.u32 %v495_v63, %v493_v51  ;;  %v2258_v21 = vsel %vm2142_vm3, %v2248_v35, %v7485_v53  ;;  %v515_v18 = vshll.u32 %v7493_v16, 16 }
  0x3d   : > { %v2724_v26 = vsel %vm2721_vm4, %v2722_v6, %v2723_v7  ;;  %v511_v31 = vshrl.u32 %v7476_v52, 16  ;;  %v519_v35 = vshrl.u32 %v7493_v16, 16  ;;  %v523_v36 = vshll.u32 %v7499_v25, 16 }
  0x3e   : > { %v505_v11 = vor.u32 %v503_v5, %v501_v15  ;;  %v502_v29 = vsel %vm386_vm1, %v497_v17, %v501_v15  ;;  %v2727_v37 = vrot.slane %v7312_v34, 2  ;;  %v517_v41 = vrot.slane %v515_v18, 1 }
  0x3f   : > { %6196 = vmatmul.mubr.msk.bf16.gmra.mrb[16].mxu1 %vm583_vm2, %v470_v23  ;;  %v509_v23 = vrot.slane %v507_v13, 1  ;;  %v525_v51 = vrot.slane %v523_v36, 1  ;;  %v527_v56 = vshrl.u32 %v7499_v25, 16  ;;  %v531_v57 = vshll.u32 %v7514_v42, 16 }
  0x40   : > { %6199 = vmatprep.mubr.msk.bf16.mxu1 %vm583_vm2, %v478_v30  ;;  %v2725_v30 = vrot.slane %v7306_v28, 2  ;;  %v521_v47 = vor.u32 %v519_v35, %v517_v41  ;;  %v535_v5 = vshrl.u32 %v7514_v42, 16  ;;  %v2731_v13 = vrot.slane %v7342_v59, 2 }
  0x41   : > { %v510_v12 = vsel %vm386_vm1, %v505_v11, %v509_v23  ;;  %v513_v28 = vor.u32 %v511_v31, %v509_v23  ;;  %v533_v6 = vrot.slane %v531_v57, 1  ;;  %v529_v15 = vor.u32 %v527_v56, %v525_v51  ;;  %v7546_v23 = vld [vmem:[%s9371_s1 + $0xe] sm:$0x3] }
  0x42   : > { %6396 = vmatmul.mubr.msk.bf16.gmra.mrb[16].mxu0 %vm583_vm2, %v2240_v46  ;;  %v2726_v46 = vsel %vm2721_vm4, %v2723_v7, %v2725_v30  ;;  %v2728_v34 = vsel %vm2721_vm4, %v2725_v30, %v2727_v37  ;;  %v7536_v7 = vld [vmem:[%s7270_s7 + $0xa0] sm:$0xff]   ;;  %v543_v30 = vshrl.u32 %v7517_v44, 16  ;;  %v2735_v36 = vrot.slane %v7386_v43, 2 }
  0x43   : > { %6399 = vmatprep.mubr.msk.bf16.mxu0 %vm583_vm2, %v2249_v55  ;;  %v3415_v55 = vsel %vm656_vm0, %v7352_v1, 0  ;;  %v518_v63 = vsel %vm386_vm1, %v513_v28, %v517_v41  ;;  %v526_v1 = vsel %vm386_vm1, %v521_v47, %v525_v51  ;;  %v534_v18 = vsel %vm386_vm1, %v529_v15, %v533_v6  ;;  %v7563_v41 = vld [vmem:[%s7270_s7 + $0xb0] sm:$0xff]   ;;  %v7568_v51 = vld [vmem:[%s7270_s7 + $0xb8] sm:$0xff]  }
  0x44   : > { %v2737_v57 = vrot.slane %v7399_v60, 2 }
  0x46   : > { %v2738_v15 = vsel %vm2721_vm4, %v2735_v36, %v2737_v57 }
  0x47   : > { %6200 = vmatmul.mubr.msk.bf16.gmra.mrb[20].mxu1 %vm583_vm2, %v486_v62  ;;  %v539_v62 = vshll.u32 %v7517_v44, 16 }
  0x48   : > { %6203 = vmatprep.mubr.msk.bf16.mxu1 %vm583_vm2, %v494_v4  ;;  %v2729_v4 = vrot.slane %v7330_v49, 2  ;;  %v537_v49 = vor.u32 %v535_v5, %v533_v6  ;;  %v7582_v5 = vld [vmem:[%s7270_s7 + $0xc0] ss:$0 sps:$4 sm:$0x11]  }
  0x49   : > { %v541_v17 = vrot.slane %v539_v62, 1 }
  0x4a   : > { %6400 = vmatmul.mubr.msk.bf16.gmra.mrb[20].mxu0 %vm583_vm2, %v2258_v21  ;;  %v7540_v21 = vld [vmem:[%s7270_s7 + $0xa8] sm:$0xff]   ;;  %v2730_v11 = vsel %vm2721_vm4, %v2727_v37, %v2729_v4  ;;  %v2732_v59 = vsel %vm2721_vm4, %v2729_v4, %v2731_v13  ;;  %v571_v4 = vshll.u32 %v7568_v51, 16 }
  0x4b   : > { %6429 = vmatprep.mubr.msk.bf16.mxu0 %vm583_vm2, %v2724_v26  ;;  %v547_v26 = vshll.u32 %v7536_v7, 16  ;;  %v542_v31 = vsel %vm386_vm1, %v537_v49, %v541_v17  ;;  %v555_v35 = vshll.u32 %v7540_v21, 16  ;;  %v559_v56 = vshrl.u32 %v7540_v21, 16 }
  0x4c   : > { %v573_v60 = vrot.slane %v571_v4, 1  ;;  %v579_v49 = vshll.u32 %v7582_v5, 16 }
  0x4d   : > { %v549_v37 = vrot.slane %v547_v26, 1  ;;  %v557_v47 = vrot.slane %v555_v35, 1  ;;  %v2741_v26 = vrot.slane %v7423_v27, 2 }
  0x4f   : > { %6204 = vmatmul.mubr.msk.bf16.gmra.mrb[24].mxu1 %vm583_vm2, %v502_v29  ;;  %v2733_v29 = vrot.slane %v7366_v22, 2  ;;  %v545_v22 = vor.u32 %v543_v30, %v541_v17  ;;  %v561_v6 = vor.u32 %v559_v56, %v557_v47  ;;  %v581_v30 = vrot.slane %v579_v49, 1  ;;  %v7086_v56 = vld [vmem:[%s7270_s7 + $0x88] sm:$0xff]  }
  0x50   : > { %6207 = vmatprep.mubr.msk.bf16.mxu1 %vm583_vm2, %v510_v12  ;;  %v551_v12 = vshrl.u32 %v7536_v7, 16 }
  0x51   : > { %v2734_v28 = vsel %vm2721_vm4, %v2731_v13, %v2733_v29  ;;  %v550_v43 = vsel %vm386_vm1, %v545_v22, %v549_v37 }
  0x52   : > { %6430 = vmatmul.mubr.msk.bf16.vlgmr.msra.gmra.mrb[0].mxu0 %vm583_vm2, %v2726_v46  ;;  %v553_v46 = vor.u32 %v551_v12, %v549_v37 }
  0x53   : > { %6478 = vmatpush3.bf16.msra.mxu0 %v3415_v55  ;;  %6433 = vmatprep.mubr.msk.bf16.mxu0 %vm583_vm2, %v2728_v34  ;;  %v2736_v55 = vsel %vm2721_vm4, %v2733_v29, %v2735_v36  ;;  %v563_v34 = vshll.u32 %v7563_v41, 16  ;;  %v2743_v29 = vrot.slane %v7436_v45, 2  ;;  %v7083_v36 = vld [vmem:[%s7270_s7 + $0x70] sm:$0xff]   ;;  %v2745_v45 = vrot.slane %v7452_v2, 2 }
  0x54   : > { %7021 = vmatprep.subr.msk.bf16.mxu0 %vm656_vm0, %v7546_v23  ;;  %v558_v62 = vsel %vm386_vm1, %v553_v46, %v557_v47  ;;  %v2747_v37 = vrot.slane %v7083_v36, 2  ;;  %v7085_v47 = vld [vmem:[%s7270_s7 + $0x80] sm:$0xff]   ;;  %v1290_v2 = vsel %vm656_vm0, %v7318_v39, 0 }
  0x55   : > { %v565_v13 = vrot.slane %v563_v34, 1  ;;  %v2744_v35 = vsel %vm2721_vm4, %v2741_v26, %v2743_v29  ;;  %v2746_v22 = vsel %vm2721_vm4, %v2743_v29, %v2745_v45  ;;  %v2751_v34 = vrot.slane %v7085_v47, 2  ;;  %v7094_v29 = vld [vmem:[%s7270_s7 + $0xc8] ss:$0 sps:$4 sm:$0x33]   ;;  %v7703_v47 = vld [vmem:[%s7270_s7 + $0x30] sm:$0xff]  }
  0x56   : > { %v2748_v46 = vsel %vm2721_vm4, %v2745_v45, %v2747_v37 }
  0x57   : > { %6208 = vmatmul.mubr.msk.bf16.gmra.mrb[28].mxu1 %vm583_vm2, %v518_v63  ;;  %v567_v63 = vshrl.u32 %v7563_v41, 16 }
  0x58   : > { %6211 = vmatprep.mubr.msk.bf16.mxu1 %vm583_vm2, %v526_v1  ;;  %v2739_v1 = vrot.slane %v7411_v8, 2  ;;  %v566_v8 = vsel %vm386_vm1, %v561_v6, %v565_v13 }
  0x59   : > { %v569_v17 = vor.u32 %v567_v63, %v565_v13  ;;  %v7088_v63 = vld [vmem:[%s7270_s7 + $0x98] sm:$0xff]  }
  0x5a   : > { %6434 = vmatmul.mubr.msk.bf16.gmra.mrb[4].mxu0 %vm583_vm2, %v2730_v11  ;;  %v2740_v11 = vsel %vm2721_vm4, %v2737_v57, %v2739_v1  ;;  %v2742_v12 = vsel %vm2721_vm4, %v2739_v1, %v2741_v26  ;;  %v7087_v57 = vld [vmem:[%s7270_s7 + $0x90] sm:$0xff]   ;;  %v7089_v1 = vld [vmem:[%s7270_s7 + $0xa0] sm:$0xff]   ;;  %v2757_v13 = vrot.slane %v7088_v63, 2 }
  0x5b   : > { %6437 = vmatprep.mubr.msk.bf16.mxu0 %vm583_vm2, %v2732_v59  ;;  %v575_v59 = vshrl.u32 %v7568_v51, 16  ;;  %v2759_v6 = vrot.slane %v7089_v1, 2  ;;  %v7744_v1 = vld [vmem:[%s7270_s7 + $0x50] sm:$0xff]  }
  0x5f   : > { %6212 = vmatmul.mubr.msk.bf16.gmra.mrb[32].mxu1 %vm583_vm2, %v534_v18  ;;  %v574_v18 = vsel %vm386_vm1, %v569_v17, %v573_v60  ;;  %v7091_v17 = vld [vmem:[%s7270_s7 + $0xb0] sm:$0xff]  }
  0x60   : > { %6215 = vmatprep.mubr.msk.bf16.mxu1 %vm583_vm2, %v542_v31  ;;  %v577_v31 = vor.u32 %v575_v59, %v573_v60 }
  0x62   : > { %6438 = vmatmul.mubr.msk.bf16.gmra.mrb[8].mxu0 %vm583_vm2, %v2734_v28  ;;  %v582_v27 = vsel %vm386_vm1, %v577_v31, %v581_v30  ;;  %v7084_v28 = vld [vmem:[%s7270_s7 + $0x78] sm:$0xff]  }
  0x63   : > { %6441 = vmatprep.mubr.msk.bf16.mxu0 %vm583_vm2, %v2736_v55  ;;  %v2749_v55 = vrot.slane %v7084_v28, 2 }
  0x65   : > { %v2752_v39 = vsel %vm2721_vm4, %v2749_v55, %v2751_v34 }
  0x67   : > { %6216 = vmatmul.mubr.msk.bf16.gmra.mrb[36].mxu1 %vm583_vm2, %v550_v43  ;;  %v2750_v43 = vsel %vm2721_vm4, %v2747_v37, %v2749_v55  ;;  %v7691_v37 = vld [vmem:[%s7270_s7 + $0x28] sm:$0xff]  }
  0x68   : > { %6219 = vmatprep.mubr.msk.bf16.mxu1 %vm583_vm2, %v558_v62  ;;  %v2755_v62 = vrot.slane %v7087_v57, 2  ;;  %v3298_v28 = vrot.slane %v7691_v37, 2  ;;  %v7728_v57 = vld [vmem:[%s7270_s7 + $0x40] sm:$0xff]  }
  0x6a   : > { %6442 = vmatmul.mubr.msk.bf16.gmra.mrb[12].mxu0 %vm583_vm2, %v2738_v15  ;;  %v2760_v15 = vsel %vm2721_vm4, %v2757_v13, %v2759_v6 }
  0x6b   : > { %6445 = vmatprep.mubr.msk.bf16.mxu0 %vm583_vm2, %v2740_v11  ;;  %v2763_v11 = vrot.slane %v7091_v17, 2  ;;  %v7760_v17 = vld [vmem:[%s7270_s7 + $0x60] sm:$0xff]  }
  0x6f   : > { %6220 = vmatmul.mubr.msk.bf16.gmra.mrb[40].mxu1 %vm583_vm2, %v566_v8  ;;  %v7093_v8 = vld [vmem:[%s7270_s7 + $0xc0] sm:$0xff]  }
  0x70   : > { %6223 = vmatprep.mubr.msk.bf16.mxu1 %vm583_vm2, %v574_v18  ;;  %v2767_v26 = vrot.slane %v7093_v8, 2  ;;  %v3120_v18 = vld [vmem:[%s7270_s7 + $0x14] sm:$0xf] }
  0x72   : > { %6446 = vmatmul.mubr.msk.bf16.gmra.mrb[16].mxu0 %vm583_vm2, %v2742_v12  ;;  %v7675_v12 = vld [vmem:[%s7270_s7 + $0x18] sm:$0xff]  }
  0x73   : > { %6449 = vmatprep.mubr.msk.bf16.mxu0 %vm583_vm2, %v2744_v35 }
  0x77   : > { %6224 = vmatmul.mubr.msk.bf16.gmra.mrb[44].mxu1 %vm583_vm2, %v582_v27  ;;  %v7687_v27 = vld [vmem:[%s7270_s7 + $0x20] sm:$0xff]  }
  0x78   : > { %6229 = vmatprep.mubr.msk.bf16.mxu1 %vm583_vm2, %v7275_v9  ;;  %v7619_v9 = vld [vmem:[%s9371_s1 + $0x6] sm:$0x3] }
  0x7a   : > { %6450 = vmatmul.mubr.msk.bf16.gmra.mrb[20].mxu0 %vm583_vm2, %v2746_v22  ;;  %v3296_v22 = vrot.slane %v7687_v27, 2 }
  0x7b   : > { %6453 = vmatprep.mubr.msk.bf16.mxu0 %vm583_vm2, %v2748_v46 }
  0x7c   : > { %v3299_v55 = vsel %vm2721_vm4, %v3296_v22, %v3298_v28 }
  0x7f   : > { %6230 = vmatmul.mubr.msk.bf16.vlgmr.msra.gmra.mrb[0].mxu1 %vm583_vm2, %v7278_v10  ;;  %v2753_v10 = vrot.slane %v7086_v56, 2  ;;  %v3300_v56 = vrot.slane %v7703_v47, 2 }
  0x80   : > { %6278 = vmatpush3.bf16.msra.mxu1 %v1290_v2  ;;  %6233 = vmatprep.mubr.msk.bf16.mxu1 %vm583_vm2, %v7295_v19  ;;  %v3994_v2 = vsel %vm656_vm0, %v7546_v23, 0 }
  0x81   : > { %7016 = vmatprep.subr.msk.bf16.mxu1 %vm656_vm0, %v7619_v9  ;;  %v2754_v19 = vsel %vm2721_vm4, %v2751_v34, %v2753_v10  ;;  %v2756_v4 = vsel %vm2721_vm4, %v2753_v10, %v2755_v62  ;;  %v7709_v34 = vld [vmem:[%s7270_s7 + $0x38] sm:$0xff]   ;;  %v3301_v23 = vsel %vm2721_vm4, %v3298_v28, %v3300_v56 }
  0x82   : > { %6454 = vmatmul.mubr.msk.bf16.gmra.mrb[24].mxu0 %vm583_vm2, %v2750_v43  ;;  %v7714_v43 = vld [vmem:[%s9371_s1 + $0x10] sm:$0x3] }
  0x83   : > { %6457 = vmatprep.mubr.msk.bf16.mxu0 %vm583_vm2, %v2752_v39  ;;  %v3302_v39 = vrot.slane %v7709_v34, 2 }
  0x85   : > { %v3303_v10 = vsel %vm2721_vm4, %v3300_v56, %v3302_v39 }
  0x87   : > { %6234 = vmatmul.mubr.msk.bf16.gmra.mrb[4].mxu1 %vm583_vm2, %v7309_v33  ;;  %v2758_v33 = vsel %vm2721_vm4, %v2755_v62, %v2757_v13  ;;  %v7732_v62 = vld [vmem:[%s7270_s7 + $0x48] sm:$0xff]  }
  0x88   : > { %6237 = vmatprep.mubr.msk.bf16.mxu1 %vm583_vm2, %v7327_v48  ;;  %v7090_v48 = vld [vmem:[%s7270_s7 + $0xa8] sm:$0xff]   ;;  %v3306_v63 = vrot.slane %v7732_v62, 2 }
  0x89   : > { %v2761_v60 = vrot.slane %v7090_v48, 2 }
  0x8a   : > { %6458 = vmatmul.mubr.msk.bf16.gmra.mrb[28].mxu0 %vm583_vm2, %v2754_v19  ;;  %v3304_v19 = vrot.slane %v7728_v57, 2 }
  0x8b   : > { %6461 = vmatprep.mubr.msk.bf16.mxu0 %vm583_vm2, %v2756_v4  ;;  %v2764_v49 = vsel %vm2721_vm4, %v2761_v60, %v2763_v11 }
  0x8c   : > { %v3305_v4 = vsel %vm2721_vm4, %v3302_v39, %v3304_v19  ;;  %v3307_v13 = vsel %vm2721_vm4, %v3304_v19, %v3306_v63  ;;  %v7801_v39 = vld [vmem:[%s7270_s7 + $0x88] sm:$0xff]  }
  0x8f   : > { %6238 = vmatmul.mubr.msk.bf16.gmra.mrb[8].mxu1 %vm583_vm2, %v7336_v54  ;;  %v2762_v54 = vsel %vm2721_vm4, %v2759_v6, %v2761_v60  ;;  %v7748_v6 = vld [vmem:[%s7270_s7 + $0x58] sm:$0xff]  }
  0x90   : > { %6241 = vmatprep.mubr.msk.bf16.mxu1 %vm583_vm2, %v7347_v0  ;;  %v7092_v0 = vld [vmem:[%s7270_s7 + $0xb8] sm:$0xff]   ;;  %v3310_v48 = vrot.slane %v7748_v6, 2 }
  0x91   : > { %v2765_v59 = vrot.slane %v7092_v0, 2  ;;  %v3312_v0 = vrot.slane %v7760_v17, 2 }
  0x92   : > { %6462 = vmatmul.mubr.msk.bf16.gmra.mrb[32].mxu0 %vm583_vm2, %v2758_v33  ;;  %v3308_v33 = vrot.slane %v7744_v1, 2 }
  0x93   : > { %6465 = vmatprep.mubr.msk.bf16.mxu0 %vm583_vm2, %v2760_v15  ;;  %v2768_v30 = vsel %vm2721_vm4, %v2765_v59, %v2767_v26 }
  0x94   : > { %v3309_v15 = vsel %vm2721_vm4, %v3306_v63, %v3308_v33  ;;  %v3311_v60 = vsel %vm2721_vm4, %v3308_v33, %v3310_v48 }
  0x97   : > { %6242 = vmatmul.mubr.msk.bf16.gmra.mrb[12].mxu1 %vm583_vm2, %v7375_v32  ;;  %v3119_v32 = vld [vmem:[%s7270_s7 + $0x10] sm:$0xc] }
  0x98   : > { %6245 = vmatprep.mubr.msk.bf16.mxu1 %vm583_vm2, %v7391_v50  ;;  %v2766_v50 = vsel %vm2721_vm4, %v2763_v11, %v2765_v59  ;;  %v7672_v31 = vcombine.low %v3119_v32, %v3120_v18  ;;  %v7764_v11 = vld [vmem:[%s7270_s7 + $0x68] sm:$0xff]   ;;  %v7778_v32 = vld [vmem:[%s7270_s7 + $0x70] sm:$0xff]  }
  0x99   : > { %v3314_v59 = vrot.slane %v7764_v11, 2 }
  0x9a   : > { %6466 = vmatmul.mubr.msk.bf16.gmra.mrb[36].mxu0 %vm583_vm2, %v2762_v54  ;;  %v3293_v35 = vrot.slane %v7672_v31, 2  ;;  %v1161_v54 = vld [vmem:[%s7270_s7] sm:$0xe] }
  0x9b   : > { %6469 = vmatprep.mubr.msk.bf16.mxu0 %vm583_vm2, %v2764_v49  ;;  %v7124_v49 = vld [vmem:[%s7270_s7 + $0x4] sm:$0xf] }
  0x9c   : > { %v5719_v8 = vcombine.low %v1161_v54, %v7124_v49  ;;  %v7130_v54 = vld [vmem:[%s9371_s1 + $0x8] sm:$0x3]  ;;  %v7825_v49 = vld [vmem:[%s7270_s7 + $0x98] sm:$0xff]  }
  0x9e   : > { %v1168_v18 = vrot.slane %v5719_v8, 1 }
  0x9f   : > { %6246 = vmatmul.mubr.msk.bf16.gmra.mrb[16].mxu1 %vm583_vm2, %v7402_v61  ;;  %v2769_v61 = vrot.slane %v7094_v29, 2 }
  0xa0   : > { %6249 = vmatprep.mubr.msk.bf16.mxu1 %vm583_vm2, %v7419_v24  ;;  %v3294_v24 = vrot.slane %v7675_v12, 2 }
  0xa1   : > { %v2770_v36 = vsel %vm2721_vm4, %v2767_v26, %v2769_v61  ;;  %v3313_v26 = vsel %vm2721_vm4, %v3310_v48, %v3312_v0  ;;  %v7783_v61 = vld [vmem:[%s7270_s7 + $0x78] sm:$0xff]  }
  0xa2   : > { %6470 = vmatmul.mubr.msk.bf16.gmra.mrb[40].mxu0 %vm583_vm2, %v2766_v50  ;;  %v3295_v45 = vsel %vm2721_vm4, %v3293_v35, %v3294_v24  ;;  %v3297_v46 = vsel %vm2721_vm4, %v3294_v24, %v3296_v22  ;;  %v7125_v50 = vld [vmem:[%s7270_s7 + $0x8] sm:$0xff]   ;;  %v3316_v35 = vrot.slane %v7778_v32, 2 }
  0xa3   : > { %6473 = vmatprep.mubr.msk.bf16.mxu0 %vm583_vm2, %v2768_v30  ;;  %v1169_v29 = vrot.slane %v7125_v50, 1  ;;  %v3315_v30 = vsel %vm2721_vm4, %v3312_v0, %v3314_v59  ;;  %v7202_v50 = vmov 0  }
  0xa4   : > { %v3317_v28 = vsel %vm2721_vm4, %v3314_v59, %v3316_v35  ;;  %7043 = vset.pattern.permute.xlu1 %v7202_v50  ;;  %7042 = vset.pattern.permute.xlu0 %v7202_v50 }
  0xa5   : > { %v1170_v24 = vsel %vm1167_vm5, %v1168_v18, %v1169_v29  ;;  %v3326_v18 = vrot.slane %v7825_v49, 2 }
  0xa7   : > { %6250 = vmatmul.mubr.msk.bf16.gmra.mrb[20].mxu1 %vm583_vm2, %v7429_v38 }
  0xa8   : > { %6253 = vmatprep.mubr.msk.bf16.mxu1 %vm583_vm2, %v7447_v58 }
  0xaa   : > { %6474 = vmatmul.mubr.msk.bf16.gmra.mrb[44].mxu0 %vm583_vm2, %v2770_v36  ;;  %v3318_v36 = vrot.slane %v7783_v61, 2 }
  0xab   : > { %6479 = vmatprep.mubr.msk.bf16.mxu0 %vm583_vm2, %v3295_v45  ;;  %v7126_v45 = vld [vmem:[%s7270_s7 + $0x10] sm:$0xff]  }
  0xac   : > { %v1171_v22 = vrot.slane %v7126_v45, 1  ;;  %v3319_v56 = vsel %vm2721_vm4, %v3316_v35, %v3318_v36 }
  0xaf   : > { %6254 = vmatmul.mubr.msk.bf16.gmra.mrb[24].mxu1 %vm583_vm2, %v7455_v14 }
  0xb0   : > { %6257 = vmatprep.mubr.msk.bf16.mxu1 %vm583_vm2, %v7471_v40 }
  0xb2   : > { %6480 = vmatmul.mubr.msk.bf16.vlgmr.msra.gmra.mrb[0].mxu0 %vm583_vm2, %v3297_v46  ;;  %v7796_v46 = vld [vmem:[%s7270_s7 + $0x80] sm:$0xff]  }
  0xb3   : > { %6528 = vmatpush3.bf16.msra.mxu0 %v3994_v2  ;;  %6483 = vmatprep.mubr.msk.bf16.mxu0 %vm583_vm2, %v3299_v55  ;;  %v7127_v2 = vld [vmem:[%s7270_s7 + $0x18] sm:$0xff]   ;;  %v3320_v19 = vrot.slane %v7796_v46, 2 }
  0xb4   : > { %7022 = vmatprep.subr.msk.bf16.mxu0 %vm656_vm0, %v7714_v43  ;;  %v1173_v55 = vrot.slane %v7127_v2, 1 }
  0xb5   : > { %v3321_v48 = vsel %vm2721_vm4, %v3318_v36, %v3320_v19  ;;  %v7132_v36 = vld [vmem:[%s7270_s7 + $0x38] sm:$0xff]  }
  0xb6   : > { %v1174_v63 = vsel %vm1167_vm5, %v1171_v22, %v1173_v55  ;;  %v1181_v45 = vrot.slane %v7132_v36, 1  ;;  %v4679_v36 = vld [vmem:[%s9372_s2 + $0x30] sm:$0xff] }
  0xb7   : > { %6258 = vmatmul.mubr.msk.bf16.gmra.mrb[28].mxu1 %vm583_vm2, %v7476_v52 }
  0xb8   : > { %6261 = vmatprep.mubr.msk.bf16.mxu1 %vm583_vm2, %v7493_v16 }
  0xba   : > { %6484 = vmatmul.mubr.msk.bf16.gmra.mrb[4].mxu0 %vm583_vm2, %v3301_v23  ;;  %v1172_v23 = vsel %vm1167_vm5, %v1169_v29, %v1171_v22  ;;  %v7131_v29 = vld [vmem:[%s7270_s7 + $0x30] sm:$0xff]  }
  0xbb   : > { %6487 = vmatprep.mubr.msk.bf16.mxu0 %vm583_vm2, %v3303_v10  ;;  %v1861_v10 = vsel %vm656_vm0, %v7619_v9, 0 }
  0xbf   : > { %6262 = vmatmul.mubr.msk.bf16.gmra.mrb[32].mxu1 %vm583_vm2, %v7499_v25 }
  0xc0   : > { %6265 = vmatprep.mubr.msk.bf16.mxu1 %vm583_vm2, %v7514_v42 }
  0xc2   : > { %6488 = vmatmul.mubr.msk.bf16.gmra.mrb[8].mxu0 %vm583_vm2, %v3305_v4  ;;  %v3322_v4 = vrot.slane %v7801_v39, 2 }
  0xc3   : > { %6491 = vmatprep.mubr.msk.bf16.mxu0 %vm583_vm2, %v3307_v13  ;;  %v7128_v13 = vld [vmem:[%s7270_s7 + $0x20] sm:$0xff]  }
  0xc4   : > { %v1175_v33 = vrot.slane %v7128_v13, 1  ;;  %v3323_v0 = vsel %vm2721_vm4, %v3320_v19, %v3322_v4  ;;  %v7133_v13 = vld [vmem:[%s7270_s7 + $0x40] sm:$0xff]  }
  0xc6   : > { %v1176_v8 = vsel %vm1167_vm5, %v1173_v55, %v1175_v33  ;;  %v4675_v55 = vld [vmem:[%s9372_s2 + $0x10] sm:$0xff] }
  0xc7   : > { %6266 = vmatmul.mubr.msk.bf16.gmra.mrb[36].mxu1 %vm583_vm2, %v7517_v44  ;;  %4733 = vperm.xlu1 %7043, %v4675_v55   ;;  %v7898_v55 = vld [vmem:[%s7270_s7 + $0xc0] sm:$0xff]  }
  0xc8   : > { %6269 = vmatprep.mubr.msk.bf16.mxu1 %vm583_vm2, %v7536_v7 }
  0xca   : > { %6492 = vmatmul.mubr.msk.bf16.gmra.mrb[12].mxu0 %vm583_vm2, %v3309_v15  ;;  %v7816_v15 = vld [vmem:[%s7270_s7 + $0x90] sm:$0xff]  }
  0xcb   : > { %6495 = vmatprep.mubr.msk.bf16.mxu0 %vm583_vm2, %v3311_v60  ;;  %v7129_v60 = vld [vmem:[%s7270_s7 + $0x28] sm:$0xff]   ;;  %v3324_v59 = vrot.slane %v7816_v15, 2 }
  0xcc   : > { %v1177_v9 = vrot.slane %v7129_v60, 1  ;;  %v7868_v60 = vld [vmem:[%s7270_s7 + $0xb0] sm:$0xff]  }
  0xcd   : > { %v3325_v35 = vsel %vm2721_vm4, %v3322_v4, %v3324_v59  ;;  %v3327_v22 = vsel %vm2721_vm4, %v3324_v59, %v3326_v18  ;;  %v4674_v4 = vld [vmem:[%s9372_s2 + $0x8] sm:$0xff]  ;;  %v3332_v50 = vrot.slane %v7868_v60, 2 }
  0xcf   : > { %6270 = vmatmul.mubr.msk.bf16.gmra.mrb[40].mxu1 %vm583_vm2, %v7540_v21 }
  0xd0   : > { %6273 = vmatprep.mubr.msk.bf16.mxu1 %vm583_vm2, %v7563_v41 }
  0xd2   : > { %6496 = vmatmul.mubr.msk.bf16.gmra.mrb[16].mxu0 %vm583_vm2, %v3313_v26  ;;  %v1178_v26 = vsel %vm1167_vm5, %v1175_v33, %v1177_v9  ;;  %v1183_v33 = vrot.slane %v7133_v13, 1 }
  0xd3   : > { %6499 = vmatprep.mubr.msk.bf16.mxu0 %vm583_vm2, %v3315_v30  ;;  %v1179_v30 = vrot.slane %v7131_v29, 1 }
  0xd4   : > { %v1184_v59 = vsel %vm1167_vm5, %v1181_v45, %v1183_v33 }
  0xd5   : > { %v1180_v2 = vsel %vm1167_vm5, %v1177_v9, %v1179_v30  ;;  %v7134_v9 = vld [vmem:[%s7270_s7 + $0x48] sm:$0xff]  }
  0xd7   : > { %6274 = vmatmul.mubr.msk.bf16.gmra.mrb[44].mxu1 %vm583_vm2, %v7568_v51 }
  0xd8   : > { %6279 = vmatprep.mubr.msk.bf16.mxu1 %vm583_vm2, %v1170_v24  ;;  %v7838_v24 = vld [vmem:[%s7270_s7 + $0xa0] sm:$0xff]  }
  0xda   : > { %6500 = vmatmul.mubr.msk.bf16.gmra.mrb[20].mxu0 %vm583_vm2, %v3317_v28  ;;  %v7843_v28 = vld [vmem:[%s7270_s7 + $0xa8] sm:$0xff]  }
  0xdb   : > { %6503 = vmatprep.mubr.msk.bf16.mxu0 %vm583_vm2, %v3319_v56  ;;  %v4673_v56 = vld [vmem:[%s9372_s2] sm:$0xff]  ;;  %v3330_v19 = vrot.slane %v7843_v28, 2 }
  0xdc   : > { %4723 = vperm.xlu0 %7042, %v4673_v56   ;;  %v1189_v56 = vrot.slane %v7429_v38, 1  ;;  %v3336_v38 = vrot.slane %v7898_v55, 2 }
  0xdf   : > { %6280 = vmatmul.mubr.msk.bf16.vlgmr.msra.gmra.mrb[0].mxu1 %vm583_vm2, %v1172_v23  ;;  %v3328_v23 = vrot.slane %v7838_v24, 2 }
  0xe0   : > { %6328 = vmatpush3.bf16.msra.mxu1 %v1861_v10  ;;  %6283 = vmatprep.mubr.msk.bf16.mxu1 %vm583_vm2, %v1174_v63  ;;  %v1182_v10 = vsel %vm1167_vm5, %v1179_v30, %v1181_v45  ;;  %v4676_v63 = vld [vmem:[%s9372_s2 + $0x18] sm:$0xff]  ;;  %v7135_v45 = vld [vmem:[%s7270_s7 + $0x50] sm:$0xff]  }
  0xe1   : > { %7018 = vmatprep.subr.msk.bf16.mxu1 %vm656_vm0, %v7130_v54  ;;  %v1185_v54 = vrot.slane %v7134_v9, 1  ;;  %4738 = vperm.xlu1 %7043, %v4676_v63   ;;  %v3701_v9 = vshll.u32 %v7672_v31, 16 }
  0xe2   : > { %6504 = vmatmul.mubr.msk.bf16.gmra.mrb[24].mxu0 %vm583_vm2, %v3321_v48  ;;  %v3329_v48 = vsel %vm2721_vm4, %v3326_v18, %v3328_v23  ;;  %4728 = vperm.xlu0 %7042, %v4674_v4   ;;  %v4677_v18 = vld [vmem:[%s9372_s2 + $0x20] sm:$0xff]  ;;  %v4682_v4 = vld [vmem:[%s9372_s2 + $0x48] sm:$0xff] }
  0xe3   : > { %6507 = vmatprep.mubr.msk.bf16.mxu0 %vm583_vm2, %v3323_v0  ;;  %v3331_v0 = vsel %vm2721_vm4, %v3328_v23, %v3330_v19  ;;  %v1186_v29 = vsel %vm1167_vm5, %v1183_v33, %v1185_v54  ;;  %v7902_v23 = vld [vmem:[%s7270_s7 + $0xc8] sm:$0xff]  }
  0xe4   : > { %v3338_v33 = vrot.slane %v7902_v23, 2 }
  0xe6   : > { %4743 = vperm.xlu0 %7042, %v4677_v18   ;;  %v1191_v18 = vrot.slane %v7447_v58, 1  ;;  %v4686_v58 = vld [vmem:[%s9372_s2 + $0x68] sm:$0xff] }
  0xe7   : > { %6284 = vmatmul.mubr.msk.bf16.gmra.mrb[4].mxu1 %vm583_vm2, %v1176_v8  ;;  %v7873_v8 = vld [vmem:[%s7270_s7 + $0xb8] sm:$0xff]  }
  0xe8   : > { %6287 = vmatprep.mubr.msk.bf16.mxu1 %vm583_vm2, %v1178_v26  ;;  %v4678_v26 = vld [vmem:[%s9372_s2 + $0x28] sm:$0xff]  ;;  %v3334_v30 = vrot.slane %v7873_v8, 2 }
  0xe9   : > { %4748 = vperm.xlu1 %7043, %v4678_v26   ;;  %v4683_v26 = vld [vmem:[%s9372_s2 + $0x50] sm:$0xff] }
  0xea   : > { %6508 = vmatmul.mubr.msk.bf16.gmra.mrb[28].mxu0 %vm583_vm2, %v3325_v35  ;;  %v4680_v35 = vld [vmem:[%s9372_s2 + $0x38] sm:$0xff]  ;;  %4753 = vperm.xlu0 %7042, %v4679_v36   ;;  %v3703_v36 = vrot.slane %v3701_v9, 3  ;;  %v4687_v9 = vld [vmem:[%s9372_s2 + $0x70] sm:$0xff] }
  0xeb   : > { %6511 = vmatprep.mubr.msk.bf16.mxu0 %vm583_vm2, %v3327_v22  ;;  %v1187_v22 = vrot.slane %v7135_v45, 1 }
  0xed   : > { %4758 = vperm.xlu1 %7043, %v4680_v35   ;;  %v1188_v63 = vsel %vm1167_vm5, %v1185_v54, %v1187_v22  ;;  %v1190_v13 = vsel %vm1167_vm5, %v1187_v22, %v1189_v56  ;;  %v3706_v54 = vshrl.u32 %v7675_v12, 16 }
  0xef   : > { %6288 = vmatmul.mubr.msk.bf16.gmra.mrb[8].mxu1 %vm583_vm2, %v1180_v2  ;;  %v3333_v2 = vsel %vm2721_vm4, %v3330_v19, %v3332_v50  ;;  %v4681_v19 = vld [vmem:[%s9372_s2 + $0x40] sm:$0xff]  ;;  %v3708_v45 = vrot.slane %v3706_v54, 2 }
  0xf0   : > { %6291 = vmatprep.mubr.msk.bf16.mxu1 %vm583_vm2, %v1182_v10  ;;  %v3335_v10 = vsel %vm2721_vm4, %v3332_v50, %v3334_v30  ;;  %4763 = vperm.xlu0 %7042, %v4681_v19   ;;  %v3339_v50 = vsel %vm2721_vm4, %v3336_v38, %v3338_v33 }
  0xf1   : > { %4768 = vperm.xlu1 %7043, %v4682_v4   ;;  %v3718_v4 = vshll.u32 %v7687_v27, 16 }
  0xf2   : > { %6512 = vmatmul.mubr.msk.bf16.gmra.mrb[32].mxu0 %vm583_vm2, %v3329_v48  ;;  %v3698_v48 = vshrl.u32 %v7672_v31, 16  ;;  %v3337_v31 = vsel %vm2721_vm4, %v3334_v30, %v3336_v38  ;;  %v4685_v30 = vld [vmem:[%s9372_s2 + $0x60] sm:$0xff]  ;;  %v3724_v38 = vshrl.u32 %v7691_v37, 16 }
  0xf3   : > { %6515 = vmatprep.mubr.msk.bf16.mxu0 %vm583_vm2, %v3331_v0  ;;  %v3709_v0 = vshll.u32 %v7675_v12, 16  ;;  %v7120_v12 = vld [vmem:[%s7270_s7 + $0xd0] ss:$0 sps:$4 sm:$0x33]  }
  0xf4   : > { %v3700_v35 = vrot.slane %v3698_v48, 2  ;;  %4773 = vperm.xlu0 %7042, %v4683_v26   ;;  %v4688_v48 = vld [vmem:[%s9372_s2 + $0x78] sm:$0xff] }
  0xf5   : > { %v3711_v22 = vrot.slane %v3709_v0, 3 }
  0xf6   : > { %v3704_v19 = vor.u32 %v3703_v36, %v3700_v35  ;;  %v3733_v35 = vshrl.u32 %v7703_v47, 16  ;;  %v3736_v36 = vshll.u32 %v7703_v47, 16  ;;  %v1199_v47 = vrot.slane %v7493_v16, 1  ;;  %v4694_v16 = vld [vmem:[%s9372_s2 + $0xa8] sm:$0xff] }
  0xf7   : > { %6292 = vmatmul.mubr.msk.bf16.gmra.mrb[12].mxu1 %vm583_vm2, %v1184_v59  ;;  %v4684_v59 = vld [vmem:[%s9372_s2 + $0x58] sm:$0xff] }
  0xf8   : > { %6295 = vmatprep.mubr.msk.bf16.mxu1 %vm583_vm2, %v1186_v29  ;;  %v1193_v29 = vrot.slane %v7455_v14, 1  ;;  %4778 = vperm.xlu1 %7043, %v4684_v59   ;;  %v3340_v14 = vrot.slane %v7120_v12, 2  ;;  %v1197_v59 = vrot.slane %v7476_v52, 1 }
  0xf9   : > { %4783 = vperm.xlu0 %7042, %v4685_v30  }
  0xfa   : > { %6516 = vmatmul.mubr.msk.bf16.gmra.mrb[36].mxu0 %vm583_vm2, %v3333_v2  ;;  %v1192_v2 = vsel %vm1167_vm5, %v1189_v56, %v1191_v18  ;;  %v3712_v56 = vor.u32 %v3711_v22, %v3708_v45  ;;  %v3341_v54 = vsel %vm2721_vm4, %v3338_v33, %v3340_v14  ;;  %v4689_v33 = vld [vmem:[%s9372_s2 + $0x80] sm:$0xff]  ;;  %v3745_v22 = vshll.u32 %v7709_v34, 16 }
  0xfb   : > { %6519 = vmatprep.mubr.msk.bf16.mxu0 %vm583_vm2, %v3335_v10  ;;  %v1194_v10 = vsel %vm1167_vm5, %v1191_v18, %v1193_v29  ;;  %v3726_v18 = vrot.slane %v3724_v38, 2  ;;  %v3735_v14 = vrot.slane %v3733_v35, 2 }
  0xfc   : > { %4788 = vperm.xlu1 %7043, %v4686_v58   ;;  %v3713_v26 = vsel %vm3696_vm6, %v3704_v19, %v3712_v56  ;;  %v4691_v58 = vld [vmem:[%s9372_s2 + $0x90] sm:$0xff]  ;;  %v3747_v38 = vrot.slane %v3745_v22, 3  ;;  %v3778_v22 = vshrl.u32 %v7748_v6, 16 }
  0xfd   : > { %4793 = vperm.xlu0 %7042, %v4687_v9   ;;  %v3754_v9 = vshll.u32 %v7728_v57, 16 }
  0xff   : > { %6296 = vmatmul.mubr.msk.bf16.gmra.mrb[16].mxu1 %vm583_vm2, %v1188_v63  ;;  %v3715_v63 = vshrl.u32 %v7687_v27, 16  ;;  %v1195_v27 = vrot.slane %v7471_v40, 1  ;;  %v4690_v40 = vld [vmem:[%s9372_s2 + $0x88] sm:$0xff] }
 0x100   : > { %6299 = vmatprep.mubr.msk.bf16.mxu1 %vm583_vm2, %v1190_v13  ;;  %v3727_v13 = vshll.u32 %v7691_v37, 16  ;;  %v3720_v37 = vrot.slane %v3718_v4, 3  ;;  %4798 = vperm.xlu1 %7043, %v4688_v48   ;;  %v3751_v48 = vshrl.u32 %v7728_v57, 16  ;;  %v1203_v57 = vrot.slane %v7514_v42, 1  ;;  %v4698_v42 = vld [vmem:[%s9372_s2 + $0xc8] sm:$0xff] }
 0x101   : > { %v3717_v0 = vrot.slane %v3715_v63, 2  ;;  %v1198_v12 = vsel %vm1167_vm5, %v1195_v27, %v1197_v59  ;;  %4803 = vperm.xlu0 %7042, %v4689_v33   ;;  %v4398_v63 = vsel %vm656_vm0, %v7714_v43, 0 }
 0x102   : > { %6520 = vmatmul.mubr.msk.bf16.gmra.mrb[40].mxu0 %vm583_vm2, %v3337_v31  ;;  %v3729_v31 = vrot.slane %v3727_v13, 3  ;;  %v1200_v13 = vsel %vm1167_vm5, %v1197_v59, %v1199_v47  ;;  %v4695_v59 = vld [vmem:[%s9372_s2 + $0xb0] sm:$0xff] }
 0x103   : > { %6523 = vmatprep.mubr.msk.bf16.mxu0 %vm583_vm2, %v3339_v50  ;;  %v1196_v50 = vsel %vm1167_vm5, %v1193_v29, %v1195_v27  ;;  %v3721_v52 = vor.u32 %v3720_v37, %v3717_v0  ;;  %v3742_v29 = vshrl.u32 %v7709_v34, 16  ;;  %v1201_v34 = vrot.slane %v7499_v25, 1  ;;  %v4693_v25 = vld [vmem:[%s9372_s2 + $0xa0] sm:$0xff]  ;;  %v4696_v37 = vld [vmem:[%s9372_s2 + $0xb8] sm:$0xff] }
 0x104   : > { %4808 = vperm.xlu1 %7043, %v4690_v40   ;;  %v3730_v45 = vor.u32 %v3729_v31, %v3726_v18  ;;  %v3763_v0 = vshll.u32 %v7732_v62, 16  ;;  %v3753_v18 = vrot.slane %v3751_v48, 2  ;;  %v1205_v31 = vrot.slane %v7517_v44, 1 }
 0x105   : > { %v3722_v30 = vsel %vm3696_vm6, %v3712_v56, %v3721_v52  ;;  %v3744_v19 = vrot.slane %v3742_v29, 2  ;;  %4813 = vperm.xlu0 %7042, %v4691_v58   ;;  %v1202_v56 = vsel %vm1167_vm5, %v1199_v47, %v1201_v34  ;;  %v4700_v58 = vld [vmem:[%s9372_s2 + $0xd8] sm:$0xff]  ;;  %v4699_v47 = vld [vmem:[%s9372_s2 + $0xd0] sm:$0xff]  ;;  %v3799_v48 = vshll.u32 %v7764_v11, 16 }
 0x106   : > { %v3731_v4 = vsel %vm3696_vm6, %v3721_v52, %v3730_v45  ;;  %v3765_v33 = vrot.slane %v3763_v0, 3  ;;  %v1204_v52 = vsel %vm1167_vm5, %v1201_v34, %v1203_v57  ;;  %v1206_v35 = vsel %vm1167_vm5, %v1203_v57, %v1205_v31 }
 0x107   : > { %6300 = vmatmul.mubr.msk.bf16.gmra.mrb[20].mxu1 %vm583_vm2, %v1192_v2  ;;  %v4692_v2 = vld [vmem:[%s9372_s2 + $0x98] sm:$0xff]  ;;  %v3748_v27 = vor.u32 %v3747_v38, %v3744_v19  ;;  %v3787_v38 = vshrl.u32 %v7760_v17, 16 }
 0x108   : > { %6303 = vmatprep.mubr.msk.bf16.mxu1 %vm583_vm2, %v1194_v10  ;;  %v3738_v10 = vrot.slane %v3736_v36, 3  ;;  %4818 = vperm.xlu1 %7043, %v4692_v2   ;;  %v3769_v36 = vshrl.u32 %v7744_v1, 16  ;;  %v3781_v2 = vshll.u32 %v7748_v6, 16 }
 0x109   : > { %4823 = vperm.xlu0 %7042, %v4693_v25  }
 0x10a   : > { %6524 = vmatmul.mubr.msk.bf16.gmra.mrb[44].mxu0 %vm583_vm2, %v3341_v54  ;;  %v3739_v43 = vor.u32 %v3738_v10, %v3735_v14  ;;  %v3760_v54 = vshrl.u32 %v7732_v62, 16  ;;  %v3756_v62 = vrot.slane %v3754_v9, 3  ;;  %v3771_v14 = vrot.slane %v3769_v36, 2  ;;  %v4703_v9 = vld [vmem:[%s9372_s2 + $0xf0] sm:$0xff] }
 0x10b   : > { %6529 = vmatprep.mubr.msk.bf16.mxu0 %vm583_vm2, %v3713_v26  ;;  %v1209_v10 = vrot.slane %v7540_v21, 1  ;;  %v4701_v21 = vld [vmem:[%s9372_s2 + $0xe0] sm:$0xff] }
 0x10c   : > { %4828 = vperm.xlu1 %7043, %v4694_v16   ;;  %v3740_v26 = vsel %vm3696_vm6, %v3730_v45, %v3739_v43  ;;  %v3762_v40 = vrot.slane %v3760_v54, 2  ;;  %v3757_v44 = vor.u32 %v3756_v62, %v3753_v18  ;;  %v3772_v45 = vshll.u32 %v7744_v1, 16 }
 0x10d   : > { %4833 = vperm.xlu0 %7042, %v4695_v59   ;;  %v1207_v1 = vrot.slane %v7536_v7, 1  ;;  %v3790_v7 = vshll.u32 %v7760_v17, 16  ;;  %v4704_v17 = vld [vmem:[%s9372_s2 + $0xf8] sm:$0xff]  ;;  %v3789_v54 = vrot.slane %v3787_v38, 2  ;;  %v4711_v38 = vld [vmem:[%s9372_s2 + $0x130] sm:$0xff] }
 0x10e   : > { %v3766_v29 = vor.u32 %v3765_v33, %v3762_v40  ;;  %v3774_v6 = vrot.slane %v3772_v45, 3  ;;  %v3808_v40 = vshll.u32 %v7778_v32, 16  ;;  %v1739_v45 = vrot.slane %v7298_v20, 1  ;;  %v4709_v20 = vld [vmem:[%s9372_s2 + $0x120] sm:$0xff] }
 0x10f   : > { %6304 = vmatmul.mubr.msk.bf16.gmra.mrb[24].mxu1 %vm583_vm2, %v1196_v50  ;;  %v3749_v50 = vsel %vm3696_vm6, %v3739_v43, %v3748_v27  ;;  %v1208_v19 = vsel %vm1167_vm5, %v1205_v31, %v1207_v1  ;;  %v1210_v25 = vsel %vm1167_vm5, %v1207_v1, %v1209_v10  ;;  %v3792_v0 = vrot.slane %v3790_v7, 3  ;;  %v4705_v31 = vld [vmem:[%s9372_s2 + $0x100] sm:$0xff] }
 0x110   : > { %6307 = vmatprep.mubr.msk.bf16.mxu1 %vm583_vm2, %v1198_v12  ;;  %4838 = vperm.xlu1 %7043, %v4696_v37   ;;  %v4697_v12 = vld [vmem:[%s9372_s2 + $0xc0] sm:$0xff]  ;;  %v3767_v34 = vsel %vm3696_vm6, %v3757_v44, %v3766_v29  ;;  %v3775_v16 = vor.u32 %v3774_v6, %v3771_v14  ;;  %v1213_v37 = vrot.slane %v7568_v51, 1  ;;  %v3823_v6 = vshrl.u32 %v7796_v46, 16 }
 0x111   : > { %4843 = vperm.xlu0 %7042, %v4697_v12   ;;  %v3793_v62 = vor.u32 %v3792_v0, %v3789_v54  ;;  %v4708_v12 = vld [vmem:[%s9372_s2 + $0x118] sm:$0xff] }
 0x112   : > { %6530 = vmatmul.mubr.msk.bf16.vlgmr.msra.gmra.mrb[0].mxu0 %vm583_vm2, %v3722_v30  ;;  %v3758_v30 = vsel %vm3696_vm6, %v3748_v27, %v3757_v44  ;;  %v1211_v27 = vrot.slane %v7563_v41, 1  ;;  %v4706_v41 = vld [vmem:[%s9372_s2 + $0x108] sm:$0xff]  ;;  %v4707_v44 = vld [vmem:[%s9372_s2 + $0x110] sm:$0xff] }
 0x113   : > { %6578 = vmatpush3.bf16.msra.mxu0 %v4398_v63  ;;  %6533 = vmatprep.mubr.msk.bf16.mxu0 %vm583_vm2, %v3731_v4  ;;  %v3780_v63 = vrot.slane %v3778_v22, 2  ;;  %v3783_v4 = vrot.slane %v3781_v2, 3 }
 0x114   : > { %4848 = vperm.xlu1 %7043, %v4698_v42   ;;  %v1212_v18 = vsel %vm1167_vm5, %v1209_v10, %v1211_v27  ;;  %v1214_v51 = vsel %vm1167_vm5, %v1211_v27, %v1213_v37  ;;  %v3817_v42 = vshll.u32 %v7783_v61, 16  ;;  %v3826_v10 = vshll.u32 %v7796_v46, 16  ;;  %v7137_v46 = vld [vmem:[%s7270_s7 + $0x18] sm:$0xff]   ;;  %v4713_v27 = vld [vmem:[%s9372_s2 + $0x140] sm:$0xff] }
 0x115   : > { %4853 = vperm.xlu0 %7042, %v4699_v47   ;;  %v3784_v43 = vor.u32 %v3783_v4, %v3780_v63  ;;  %v3832_v63 = vshrl.u32 %v7801_v39, 16  ;;  %v3835_v4 = vshll.u32 %v7801_v39, 16  ;;  %v1742_v7 = vrot.slane %v7137_v46, 1 }
 0x116   : > { %v3819_v47 = vrot.slane %v3817_v42, 3  ;;  %v3828_v39 = vrot.slane %v3826_v10, 3 }
 0x117   : > { %6308 = vmatmul.mubr.msk.bf16.gmra.mrb[28].mxu1 %vm583_vm2, %v1200_v13  ;;  %v4702_v13 = vld [vmem:[%s9372_s2 + $0xe8] sm:$0xff]  ;;  %v3785_v59 = vsel %vm3696_vm6, %v3775_v16, %v3784_v43 }
 0x118   : > { %6311 = vmatprep.mubr.msk.bf16.mxu1 %vm583_vm2, %v1202_v56  ;;  %4858 = vperm.xlu1 %7043, %v4700_v58   ;;  %v3796_v56 = vshrl.u32 %v7764_v11, 16  ;;  %v3776_v11 = vsel %vm3696_vm6, %v3766_v29, %v3775_v16  ;;  %v7136_v29 = vld [vmem:[%s7270_s7 + $0x10] sm:$0xff]   ;;  %v7138_v16 = vld [vmem:[%s7270_s7 + $0x20] sm:$0xff]  }
 0x119   : > { %4863 = vperm.xlu0 %7042, %v4701_v21   ;;  %v1740_v22 = vrot.slane %v7136_v29, 1  ;;  %v3825_v21 = vrot.slane %v3823_v6, 2  ;;  %v3868_v29 = vshrl.u32 %v7843_v28, 16 }
 0x11a   : > { %6534 = vmatmul.mubr.msk.bf16.gmra.mrb[4].mxu0 %vm583_vm2, %v3740_v26  ;;  %v3798_v57 = vrot.slane %v3796_v56, 2  ;;  %v3801_v26 = vrot.slane %v3799_v48, 3  ;;  %v3834_v56 = vrot.slane %v3832_v63, 2  ;;  %v3837_v48 = vrot.slane %v3835_v4, 3 }
 0x11b   : > { %6537 = vmatprep.mubr.msk.bf16.mxu0 %vm583_vm2, %v3749_v50  ;;  %v3805_v50 = vshrl.u32 %v7778_v32, 16  ;;  %v1215_v32 = vrot.slane %v7582_v5, 1  ;;  %v4710_v5 = vld [vmem:[%s9372_s2 + $0x128] sm:$0xff]  ;;  %v1741_v14 = vsel %vm1167_vm5, %v1739_v45, %v1740_v22  ;;  %v3829_v54 = vor.u32 %v3828_v39, %v3825_v21 }
 0x11c   : > { %4868 = vperm.xlu1 %7043, %v4702_v13   ;;  %v3802_v33 = vor.u32 %v3801_v26, %v3798_v57  ;;  %v3850_v57 = vshrl.u32 %v7825_v49, 16  ;;  %v3853_v26 = vshll.u32 %v7825_v49, 16  ;;  %v3870_v6 = vrot.slane %v3868_v29, 2  ;;  %v7143_v21 = vld [vmem:[%s7270_s7 + $0x48] sm:$0xff]   ;;  %v8215_v29 = vld [vmem:[%s7270_s7 + $0x70] sm:$0xff]  }
 0x11d   : > { %4873 = vperm.xlu0 %7042, %v4703_v9   ;;  %v3807_v36 = vrot.slane %v3805_v50, 2  ;;  %v1216_v1 = vsel %vm1167_vm5, %v1213_v37, %v1215_v32  ;;  %v4714_v9 = vld [vmem:[%s9372_s2 + $0x148] sm:$0xff]  ;;  %v3844_v37 = vshll.u32 %v7816_v15, 16  ;;  %v7140_v50 = vld [vmem:[%s7270_s7 + $0x30] sm:$0xff]   ;;  %v1754_v39 = vrot.slane %v7143_v21, 1 }
 0x11e   : > { %v3803_v2 = vsel %vm3696_vm6, %v3793_v62, %v3802_v33  ;;  %v3855_v42 = vrot.slane %v3853_v26, 3  ;;  %v7145_v26 = vld [vmem:[%s7270_s7 + $0x58] sm:$0xff]  }
 0x11f   : > { %6312 = vmatmul.mubr.msk.bf16.gmra.mrb[32].mxu1 %vm583_vm2, %v1204_v52  ;;  %v3814_v52 = vshrl.u32 %v7783_v61, 16  ;;  %v3810_v61 = vrot.slane %v3808_v40, 3  ;;  %v1748_v40 = vrot.slane %v7140_v50, 1 }
 0x120   : > { %6315 = vmatprep.mubr.msk.bf16.mxu1 %vm583_vm2, %v1206_v35  ;;  %4878 = vperm.xlu1 %7043, %v4704_v17   ;;  %v3794_v35 = vsel %vm3696_vm6, %v3784_v43, %v3793_v62  ;;  %v1743_v17 = vsel %vm1167_vm5, %v1740_v22, %v1742_v7  ;;  %v4715_v62 = vld [vmem:[%s9372_s2 + $0x150] sm:$0xff]  ;;  %v3871_v22 = vshll.u32 %v7843_v28, 16 }
 0x121   : > { %4883 = vperm.xlu0 %7042, %v4705_v31   ;;  %v3816_v58 = vrot.slane %v3814_v52, 2  ;;  %v3852_v52 = vrot.slane %v3850_v57, 2  ;;  %v3907_v57 = vshll.u32 %v7902_v23, 16 }
 0x122   : > { %6538 = vmatmul.mubr.msk.bf16.gmra.mrb[8].mxu0 %vm583_vm2, %v3758_v30  ;;  %v3811_v30 = vor.u32 %v3810_v61, %v3807_v36  ;;  %v3859_v36 = vshrl.u32 %v7838_v24, 16  ;;  %v3862_v61 = vshll.u32 %v7838_v24, 16  ;;  %v7141_v24 = vld [vmem:[%s7270_s7 + $0x38] sm:$0xff]   ;;  %v3873_v10 = vrot.slane %v3871_v22, 3 }
 0x123   : > { %6541 = vmatprep.mubr.msk.bf16.mxu0 %vm583_vm2, %v3767_v34  ;;  %v3820_v34 = vor.u32 %v3819_v47, %v3816_v58  ;;  %v3856_v45 = vor.u32 %v3855_v42, %v3852_v52  ;;  %v4719_v58 = vld [vmem:[%s9372_s2 + $0x170] sm:$0xff]  ;;  %v1750_v47 = vrot.slane %v7141_v24, 1  ;;  %v1764_v22 = vrot.slane %v8215_v29, 1 }
 0x124   : > { %4888 = vperm.xlu1 %7043, %v4706_v41   ;;  %v3812_v13 = vsel %vm3696_vm6, %v3802_v33, %v3811_v30  ;;  %v3864_v28 = vrot.slane %v3862_v61, 3  ;;  %v3874_v46 = vor.u32 %v3873_v10, %v3870_v6 }
 0x125   : > { %4893 = vperm.xlu0 %7042, %v4707_v44   ;;  %v3821_v43 = vsel %vm3696_vm6, %v3811_v30, %v3820_v34  ;;  %v3830_v49 = vsel %vm3696_vm6, %v3820_v34, %v3829_v54  ;;  %v4717_v44 = vld [vmem:[%s9372_s2 + $0x160] sm:$0xff]  ;;  %v1751_v34 = vsel %vm1167_vm5, %v1748_v40, %v1750_v47 }
 0x127   : > { %6316 = vmatmul.mubr.msk.bf16.gmra.mrb[36].mxu1 %vm583_vm2, %v1208_v19  ;;  %v4712_v19 = vld [vmem:[%s9372_s2 + $0x138] sm:$0xff] }
 0x128   : > { %6319 = vmatprep.mubr.msk.bf16.mxu1 %vm583_vm2, %v1210_v25  ;;  %4898 = vperm.xlu1 %7043, %v4708_v12   ;;  %v1744_v25 = vrot.slane %v7138_v16, 1  ;;  %v4718_v12 = vld [vmem:[%s9372_s2 + $0x168] sm:$0xff] }
 0x129   : > { %4903 = vperm.xlu0 %7042, %v4709_v20   ;;  %v7142_v20 = vld [vmem:[%s7270_s7 + $0x40] sm:$0xff]  }
 0x12a   : > { %6542 = vmatmul.mubr.msk.bf16.gmra.mrb[12].mxu0 %vm583_vm2, %v3776_v11  ;;  %v1745_v0 = vsel %vm1167_vm5, %v1742_v7, %v1744_v25  ;;  %v3841_v11 = vshrl.u32 %v7816_v15, 16  ;;  %v7139_v15 = vld [vmem:[%s7270_s7 + $0x28] sm:$0xff]   ;;  %v1752_v30 = vrot.slane %v7142_v20, 1  ;;  %v3886_v7 = vshrl.u32 %v7873_v8, 16  ;;  %v7150_v20 = vld [vmem:[%s7270_s7 + $0x18] sm:$0xff]  }
 0x12b   : > { %6545 = vmatprep.mubr.msk.bf16.mxu0 %vm583_vm2, %v3785_v59  ;;  %v3838_v59 = vor.u32 %v3837_v48, %v3834_v56  ;;  %v1746_v41 = vrot.slane %v7139_v15, 1  ;;  %v7144_v56 = vld [vmem:[%s7270_s7 + $0x50] sm:$0xff]  }
 0x12c   : > { %4908 = vperm.xlu1 %7043, %v4710_v5   ;;  %v3843_v31 = vrot.slane %v3841_v11, 2  ;;  %v3861_v5 = vrot.slane %v3859_v36, 2  ;;  %v1753_v4 = vsel %vm1167_vm5, %v1750_v47, %v1752_v30  ;;  %v1756_v48 = vrot.slane %v7144_v56, 1 }
 0x12d   : > { %4913 = vperm.xlu0 %7042, %v4711_v38   ;;  %v3839_v33 = vsel %vm3696_vm6, %v3829_v54, %v3838_v59  ;;  %v1749_v32 = vsel %vm1167_vm5, %v1746_v41, %v1748_v40  ;;  %v3880_v38 = vshll.u32 %v7868_v60, 16  ;;  %v3898_v11 = vshll.u32 %v7898_v55, 16 }
 0x12e   : > { %v3865_v63 = vor.u32 %v3864_v28, %v3861_v5  ;;  %v1757_v54 = vsel %vm1167_vm5, %v1754_v39, %v1756_v48 }
 0x12f   : > { %6320 = vmatmul.mubr.msk.bf16.gmra.mrb[40].mxu1 %vm583_vm2, %v1212_v18  ;;  %v4716_v18 = vld [vmem:[%s9372_s2 + $0x158] sm:$0xff] }
 0x130   : > { %6323 = vmatprep.mubr.msk.bf16.mxu1 %vm583_vm2, %v1214_v51  ;;  %4918 = vperm.xlu1 %7043, %v4712_v19   ;;  %v3846_v51 = vrot.slane %v3844_v37, 3  ;;  %v3877_v19 = vshrl.u32 %v7868_v60, 16  ;;  %v3866_v16 = vsel %vm3696_vm6, %v3856_v45, %v3865_v63  ;;  %v3875_v60 = vsel %vm3696_vm6, %v3865_v63, %v3874_v46 }
 0x131   : > { %4923 = vperm.xlu0 %7042, %v4713_v27  }
 0x132   : > { %6546 = vmatmul.mubr.msk.bf16.gmra.mrb[16].mxu0 %vm583_vm2, %v3794_v35  ;;  %v3847_v35 = vor.u32 %v3846_v51, %v3843_v31 }
 0x133   : > { %6549 = vmatprep.mubr.msk.bf16.mxu0 %vm583_vm2, %v3803_v2  ;;  %v4720_v2 = vld [vmem:[%s9372_s2 + $0x178] sm:$0xff] }
 0x134   : > { %4928 = vperm.xlu1 %7043, %v4714_v9  }
 0x135   : > { %4933 = vperm.xlu0 %7042, %v4715_v62  }
 0x137   : > { %6324 = vmatmul.mubr.msk.bf16.gmra.mrb[44].mxu1 %vm583_vm2, %v1216_v1  ;;  %v3848_v1 = vsel %vm3696_vm6, %v3838_v59, %v3847_v35  ;;  %v3904_v59 = vshrl.u32 %v7902_v23, 16  ;;  %v3909_v23 = vrot.slane %v3907_v57, 3 }
 0x138   : > { %6329 = vmatprep.mubr.msk.bf16.mxu1 %vm583_vm2, %v1741_v14  ;;  %4938 = vperm.xlu1 %7043, %v4716_v18   ;;  %v3857_v14 = vsel %vm3696_vm6, %v3847_v35, %v3856_v45  ;;  %v1758_v18 = vrot.slane %v7145_v26, 1  ;;  %v7147_v35 = vld [vmem:[%s7270_s7 + $0x68] sm:$0xff]  }
 0x139   : > { %4943 = vperm.xlu0 %7042, %v4717_v44   ;;  %v3906_v50 = vrot.slane %v3904_v59, 2  ;;  %v4269_v44 = vld [vmem:[%s7270_s7 + $0x10] sm:$0x8]  ;;  %v8269_v59 = vld [vmem:[%s7270_s7 + $0xa0] sm:$0xff]  }
 0x13a   : > { %6550 = vmatmul.mubr.msk.bf16.gmra.mrb[20].mxu0 %vm583_vm2, %v3812_v13  ;;  %v3889_v13 = vshll.u32 %v7873_v8, 16  ;;  %v1755_v8 = vsel %vm1167_vm5, %v1752_v30, %v1754_v39  ;;  %v1759_v40 = vsel %vm1167_vm5, %v1756_v48, %v1758_v18  ;;  %v4277_v30 = vrot.slane %v7150_v20, 3  ;;  %v8246_v39 = vld [vmem:[%s7270_s7 + $0x88] sm:$0xff]  }
 0x13b   : > { %6553 = vmatprep.mubr.msk.bf16.mxu0 %vm583_vm2, %v3821_v43  ;;  %v3882_v43 = vrot.slane %v3880_v38, 3  ;;  %v7153_v38 = vld [vmem:[%s7270_s7 + $0x20] sm:$0xff]   ;;  %v1776_v57 = vrot.slane %v8269_v59, 1 }
 0x13c   : > { %4948 = vperm.xlu1 %7043, %v4718_v12   ;;  %v3891_v9 = vrot.slane %v3889_v13, 3  ;;  %v3910_v12 = vor.u32 %v3909_v23, %v3906_v50  ;;  %v7154_v13 = vld [vmem:[%s7270_s7 + $0x28] sm:$0xff]  }
 0x13d   : > { %4953 = vperm.xlu0 %7042, %v4719_v58   ;;  %v7149_v58 = vld [vmem:[%s7270_s7 + $0x14] sm:$0xf]  ;;  %v4281_v21 = vrot.slane %v7154_v13, 3 }
 0x13e   : > { %v5923_v24 = vcombine.low %v4269_v44, %v7149_v58  ;;  %v2260_v58 = vshrl.u32 %v8215_v29, 16 }
 0x13f   : > { %6330 = vmatmul.mubr.msk.bf16.vlgmr.msra.gmra.mrb[0].mxu1 %vm583_vm2, %v1743_v17  ;;  %v3888_v17 = vrot.slane %v3886_v7, 2 }
 0x140   : > { %6628 = vmatpush3.bf16.msra.mxu1 %v7255_v3  ;;  %6333 = vmatprep.mubr.msk.bf16.mxu1 %vm583_vm2, %v1745_v0  ;;  %v1747_v3 = vsel %vm1167_vm5, %v1744_v25, %v1746_v41  ;;  %v3879_v25 = vrot.slane %v3877_v19, 2  ;;  %v3895_v0 = vshrl.u32 %v7898_v55, 16  ;;  %v3900_v41 = vrot.slane %v3898_v11, 3  ;;  %v8200_v55 = vld [vmem:[%s7270_s7 + $0xd0] ss:$0 sps:$4 sm:$0x77]  }
 0x141   : > { %4958 = vperm.xlu1 %7043, %v4720_v2   ;;  %v3892_v37 = vor.u32 %v3891_v9, %v3888_v17  ;;  %v3913_v42 = vshrl.u32 %v8200_v55, 16  ;;  %v4276_v28 = vrot.slane %v5923_v24, 3  ;;  %v7157_v17 = vld [vmem:[%s7270_s7 + $0x30] sm:$0xff]   ;;  %v2263_v24 = vshll.u32 %v8215_v29, 16 }
 0x142   : > { %6554 = vmatmul.mubr.msk.bf16.gmra.mrb[24].mxu0 %vm583_vm2, %v3830_v49  ;;  %v3883_v27 = vor.u32 %v3882_v43, %v3879_v25  ;;  %v3897_v15 = vrot.slane %v3895_v0, 2  ;;  %v7146_v49 = vld [vmem:[%s7270_s7 + $0x60] sm:$0xff]   ;;  %v8251_v43 = vld [vmem:[%s7270_s7 + $0x90] sm:$0xff]   ;;  %v4283_v9 = vrot.slane %v7157_v17, 3  ;;  %v8264_v0 = vld [vmem:[%s7270_s7 + $0x98] sm:$0xff]  }
 0x143   : > { %6557 = vmatprep.mubr.msk.bf16.mxu0 %vm583_vm2, %v3839_v33  ;;  %v1760_v31 = vrot.slane %v7146_v49, 1  ;;  %v3915_v61 = vrot.slane %v3913_v42, 2  ;;  %v1772_v56 = vrot.slane %v8251_v43, 1  ;;  %v1774_v11 = vrot.slane %v8264_v0, 1  ;;  %v7162_v49 = vld [vmem:[%s7270_s7 + $0x48] sm:$0xff]  }
 0x144   : > { %v3884_v62 = vsel %vm3696_vm6, %v3874_v46, %v3883_v27  ;;  %v3893_v51 = vsel %vm3696_vm6, %v3883_v27, %v3892_v37  ;;  %v3901_v33 = vor.u32 %v3900_v41, %v3897_v15  ;;  %v4279_v46 = vrot.slane %v7153_v38, 3  ;;  %v7158_v27 = vld [vmem:[%s7270_s7 + $0x38] sm:$0xff]  }
 0x145   : > { %v1761_v52 = vsel %vm1167_vm5, %v1758_v18, %v1760_v31  ;;  %v1775_v18 = vsel %vm1167_vm5, %v1772_v56, %v1774_v11  ;;  %v1777_v41 = vsel %vm1167_vm5, %v1774_v11, %v1776_v57  ;;  %v2287_v11 = vshrl.u32 %v8246_v39, 16 }
 0x146   : > { %v3902_v36 = vsel %vm3696_vm6, %v3892_v37, %v3901_v33  ;;  %v3911_v2 = vsel %vm3696_vm6, %v3901_v33, %v3910_v12  ;;  %v4280_v25 = vsel %vm4275_vm7, %v4277_v30, %v4279_v46  ;;  %v4282_v48 = vsel %vm4275_vm7, %v4279_v46, %v4281_v21 }
 0x147   : > { %6334 = vmatmul.mubr.msk.bf16.gmra.mrb[4].mxu1 %vm583_vm2, %v1747_v3  ;;  %v3916_v3 = vshll.u32 %v8200_v55, 16  ;;  %v4284_v37 = vsel %vm4275_vm7, %v4281_v21, %v4283_v9 }
 0x148   : > { %6337 = vmatprep.mubr.msk.bf16.mxu1 %vm583_vm2, %v1749_v32  ;;  %v1762_v32 = vrot.slane %v7147_v35, 1  ;;  %v7166_v35 = vld [vmem:[%s7270_s7 + $0x58] sm:$0xff]  }
 0x149   : > { %v3918_v45 = vrot.slane %v3916_v3, 3  ;;  %v7165_v3 = vld [vmem:[%s7270_s7 + $0x50] sm:$0xff]  }
 0x14a   : > { %6558 = vmatmul.mubr.msk.bf16.gmra.mrb[28].mxu0 %vm583_vm2, %v3848_v1  ;;  %v1763_v47 = vsel %vm1167_vm5, %v1760_v31, %v1762_v32  ;;  %v1765_v5 = vsel %vm1167_vm5, %v1762_v32, %v1764_v22  ;;  %v4289_v31 = vrot.slane %v7162_v49, 3  ;;  %v4293_v32 = vrot.slane %v7166_v35, 3 }
 0x14b   : > { %6561 = vmatprep.mubr.msk.bf16.mxu0 %vm583_vm2, %v3857_v14  ;;  %v3919_v1 = vor.u32 %v3918_v45, %v3915_v61  ;;  %v8228_v14 = vld [vmem:[%s7270_s7 + $0x78] sm:$0xff]  }
 0x14c   : > { %v1766_v6 = vrot.slane %v8228_v14, 1  ;;  %v2272_v38 = vshll.u32 %v8228_v14, 16 }
 0x14d   : > { %v3920_v10 = vsel %vm3696_vm6, %v3910_v12, %v3919_v1  ;;  %v4291_v12 = vrot.slane %v7165_v3, 3  ;;  %v2305_v3 = vshrl.u32 %v8264_v0, 16 }
 0x14e   : > { %v1767_v19 = vsel %vm1167_vm5, %v1764_v22, %v1766_v6  ;;  %v8305_v22 = vld [vmem:[%s7270_s7 + $0xc0] sm:$0xff]  }
 0x14f   : > { %6338 = vmatmul.mubr.msk.bf16.gmra.mrb[8].mxu1 %vm583_vm2, %v1751_v34  ;;  %v8233_v34 = vld [vmem:[%s7270_s7 + $0x80] sm:$0xff]   ;;  %v4292_v45 = vsel %vm4275_vm7, %v4289_v31, %v4291_v12 }
 0x150   : > { %6341 = vmatprep.mubr.msk.bf16.mxu1 %vm583_vm2, %v1753_v4  ;;  %v1768_v63 = vrot.slane %v8233_v34, 1  ;;  %v4278_v4 = vsel %vm4275_vm7, %v4276_v28, %v4277_v30  ;;  %v7169_v28 = vld [vmem:[%s7270_s7 + $0x60] sm:$0xff]   ;;  %v2278_v13 = vshrl.u32 %v8233_v34, 16  ;;  %v2281_v21 = vshll.u32 %v8233_v34, 16 }
 0x151   : > { %v4295_v20 = vrot.slane %v7169_v28, 3 }
 0x152   : > { %6562 = vmatmul.mubr.msk.bf16.gmra.mrb[32].mxu0 %vm583_vm2, %v3866_v16  ;;  %v1769_v7 = vsel %vm1167_vm5, %v1766_v6, %v1768_v63  ;;  %v1770_v16 = vrot.slane %v8246_v39, 1  ;;  %v2262_v6 = vrot.slane %v2260_v58, 1  ;;  %v2307_v58 = vrot.slane %v2305_v3, 1  ;;  %v7182_v3 = vld [vmem:[%s7270_s7 + $0xc0] sm:$0xff]  }
 0x153   : > { %6565 = vmatprep.mubr.msk.bf16.mxu0 %vm583_vm2, %v3875_v60  ;;  %v4296_v46 = vsel %vm4275_vm7, %v4293_v32, %v4295_v20 }
 0x154   : > { %v1771_v60 = vsel %vm1167_vm5, %v1768_v63, %v1770_v16  ;;  %v7170_v63 = vld [vmem:[%s7270_s7 + $0x68] sm:$0xff]  }
 0x157   : > { %6342 = vmatmul.mubr.msk.bf16.gmra.mrb[12].mxu1 %vm583_vm2, %v1755_v8  ;;  %v1773_v8 = vsel %vm1167_vm5, %v1770_v16, %v1772_v56 }
 0x158   : > { %6345 = vmatprep.mubr.msk.bf16.mxu1 %vm583_vm2, %v1757_v54  ;;  %v4285_v54 = vrot.slane %v7158_v27, 3  ;;  %v7172_v27 = vld [vmem:[%s7270_s7 + $0x78] sm:$0xff]  }
 0x15a   : > { %6566 = vmatmul.mubr.msk.bf16.gmra.mrb[36].mxu0 %vm583_vm2, %v3884_v62  ;;  %v4286_v26 = vsel %vm4275_vm7, %v4283_v9, %v4285_v54  ;;  %v7161_v62 = vld [vmem:[%s7270_s7 + $0x40] sm:$0xff]   ;;  %v2280_v9 = vrot.slane %v2278_v13, 1 }
 0x15b   : > { %6569 = vmatprep.mubr.msk.bf16.mxu0 %vm583_vm2, %v3893_v51  ;;  %v4287_v15 = vrot.slane %v7161_v62, 3  ;;  %v8282_v51 = vld [vmem:[%s7270_s7 + $0xa8] sm:$0xff]  }
 0x15c   : > { %v1778_v50 = vrot.slane %v8282_v51, 1 }
 0x15d   : > { %v4288_v23 = vsel %vm4275_vm7, %v4285_v54, %v4287_v15  ;;  %v4301_v54 = vrot.slane %v7172_v27, 3  ;;  %v2350_v27 = vshrl.u32 %v8305_v22, 16 }
 0x15e   : > { %v1779_v42 = vsel %vm1167_vm5, %v1776_v57, %v1778_v50 }
 0x15f   : > { %6346 = vmatmul.mubr.msk.bf16.gmra.mrb[16].mxu1 %vm583_vm2, %v1759_v40  ;;  %v8287_v40 = vld [vmem:[%s7270_s7 + $0xb0] sm:$0xff]  }
 0x160   : > { %6349 = vmatprep.mubr.msk.bf16.mxu1 %vm583_vm2, %v1761_v52  ;;  %v1780_v33 = vrot.slane %v8287_v40, 1  ;;  %v4290_v52 = vsel %vm4275_vm7, %v4287_v15, %v4289_v31  ;;  %v7173_v31 = vld [vmem:[%s7270_s7 + $0x80] sm:$0xff]  }
 0x162   : > { %6570 = vmatmul.mubr.msk.bf16.gmra.mrb[40].mxu0 %vm583_vm2, %v3902_v36  ;;  %v1781_v44 = vsel %vm1167_vm5, %v1778_v50, %v1780_v33  ;;  %v8300_v36 = vld [vmem:[%s7270_s7 + $0xb8] sm:$0xff]  }
 0x163   : > { %6573 = vmatprep.mubr.msk.bf16.mxu0 %vm583_vm2, %v3911_v2  ;;  %v1782_v61 = vrot.slane %v8300_v36, 1  ;;  %v1784_v2 = vrot.slane %v8305_v22, 1 }
 0x165   : > { %v1783_v1 = vsel %vm1167_vm5, %v1780_v33, %v1782_v61  ;;  %v1785_v30 = vsel %vm1167_vm5, %v1782_v61, %v1784_v2  ;;  %v2317_v61 = vshll.u32 %v8269_v59, 16 }
 0x167   : > { %6350 = vmatmul.mubr.msk.bf16.gmra.mrb[20].mxu1 %vm583_vm2, %v1763_v47  ;;  %v4294_v47 = vsel %vm4275_vm7, %v4291_v12, %v4293_v32  ;;  %v2308_v12 = vshll.u32 %v8264_v0, 16  ;;  %v2314_v32 = vshrl.u32 %v8269_v59, 16  ;;  %v2319_v28 = vrot.slane %v2317_v61, 2 }
 0x168   : > { %6353 = vmatprep.mubr.msk.bf16.mxu1 %vm583_vm2, %v1765_v5  ;;  %v7123_v5 = vld [vmem:[%s7270_s7 + $0xc8] ss:$0 sps:$4 sm:$0x11]  }
 0x169   : > { %v1786_v29 = vrot.slane %v7123_v5, 1  ;;  %v2316_v5 = vrot.slane %v2314_v32, 1 }
 0x16a   : > { %6574 = vmatmul.mubr.msk.bf16.gmra.mrb[44].mxu0 %vm583_vm2, %v3920_v10  ;;  %v2265_v10 = vrot.slane %v2263_v24, 2  ;;  %v2310_v24 = vrot.slane %v2308_v12, 2  ;;  %v4319_v12 = vrot.slane %v7182_v3, 3 }
 0x16b   : > { %6579 = vmatprep.mubr.msk.bf16.mxu0 %vm583_vm2, %v4278_v4  ;;  %v4297_v4 = vrot.slane %v7170_v63, 3 }
 0x16c   : > { %v2311_v59 = vor.u32 %v2310_v24, %v2307_v58  ;;  %v4323_v24 = vrot.slane %v8200_v55, 3 }
 0x16d   : > { %v4298_v16 = vsel %vm4275_vm7, %v4295_v20, %v4297_v4  ;;  %v7176_v20 = vld [vmem:[%s7270_s7 + $0x98] sm:$0xff]  }
 0x16f   : > { %6354 = vmatmul.mubr.msk.bf16.gmra.mrb[24].mxu1 %vm583_vm2, %v1767_v19  ;;  %v2269_v19 = vshrl.u32 %v8228_v14, 16 }
 0x170   : > { %6357 = vmatprep.mubr.msk.bf16.mxu1 %vm583_vm2, %v1769_v7  ;;  %v2266_v7 = vor.u32 %v2265_v10, %v2262_v6  ;;  %v2323_v6 = vshrl.u32 %v8282_v51, 16  ;;  %v2326_v10 = vshll.u32 %v8282_v51, 16 }
 0x171   : > { %v2271_v56 = vrot.slane %v2269_v19, 1  ;;  %v2335_v19 = vshll.u32 %v8287_v40, 16 }
 0x172   : > { %6580 = vmatmul.mubr.msk.bf16.vlgmr.msra.gmra.mrb[0].mxu0 %vm583_vm2, %v4280_v25  ;;  %v1787_v25 = vsel %vm1167_vm5, %v1784_v2, %v1786_v29  ;;  %v2267_v17 = vsel %vm2142_vm3, %v7485_v53, %v2266_v7  ;;  %v2296_v53 = vshrl.u32 %v8251_v43, 16  ;;  %v2332_v29 = vshrl.u32 %v8287_v40, 16 }
 0x173   : > { %6583 = vmatprep.mubr.msk.bf16.mxu0 %vm583_vm2, %v4282_v48  ;;  %v2274_v48 = vrot.slane %v2272_v38, 2  ;;  %v2328_v13 = vrot.slane %v2326_v10, 2 }
 0x175   : > { %v2275_v34 = vor.u32 %v2274_v48, %v2271_v56  ;;  %v2337_v56 = vrot.slane %v2335_v19, 2  ;;  %v7178_v48 = vld [vmem:[%s7270_s7 + $0xa8] sm:$0xff]  }
 0x177   : > { %6358 = vmatmul.mubr.msk.bf16.gmra.mrb[28].mxu1 %vm583_vm2, %v1771_v60  ;;  %v7171_v60 = vld [vmem:[%s7270_s7 + $0x70] sm:$0xff]   ;;  %v2276_v15 = vsel %vm2142_vm3, %v2266_v7, %v2275_v34  ;;  %v2325_v7 = vrot.slane %v2323_v6, 1 }
 0x178   : > { %6361 = vmatprep.mubr.msk.bf16.mxu1 %vm583_vm2, %v1773_v8  ;;  %v4299_v14 = vrot.slane %v7171_v60, 3  ;;  %v2283_v8 = vrot.slane %v2281_v21, 2  ;;  %v7177_v21 = vld [vmem:[%s7270_s7 + $0xa0] sm:$0xff]   ;;  %v4313_v60 = vrot.slane %v7178_v48, 3 }
 0x179   : > { %v4311_v51 = vrot.slane %v7177_v21, 3  ;;  %v2329_v40 = vor.u32 %v2328_v13, %v2325_v7 }
 0x17a   : > { %6584 = vmatmul.mubr.msk.bf16.gmra.mrb[4].mxu0 %vm583_vm2, %v4284_v37  ;;  %v2290_v37 = vshll.u32 %v8246_v39, 16  ;;  %v4300_v57 = vsel %vm4275_vm7, %v4297_v4, %v4299_v14  ;;  %v4302_v62 = vsel %vm4275_vm7, %v4299_v14, %v4301_v54  ;;  %v4303_v39 = vrot.slane %v7173_v31, 3 }
 0x17b   : > { %6587 = vmatprep.mubr.msk.bf16.mxu0 %vm583_vm2, %v4286_v26  ;;  %v2284_v26 = vor.u32 %v2283_v8, %v2280_v9  ;;  %v2320_v4 = vor.u32 %v2319_v28, %v2316_v5  ;;  %v2341_v14 = vshrl.u32 %v8300_v36, 16 }
 0x17c   : > { %v2292_v49 = vrot.slane %v2290_v37, 2 }
 0x17d   : > { %v2285_v50 = vsel %vm2142_vm3, %v2275_v34, %v2284_v26  ;;  %v4314_v34 = vsel %vm4275_vm7, %v4311_v51, %v4313_v60  ;;  %v2343_v37 = vrot.slane %v2341_v14, 1 }
 0x17f   : > { %6362 = vmatmul.mubr.msk.bf16.gmra.mrb[32].mxu1 %vm583_vm2, %v1775_v18  ;;  %v2299_v18 = vshll.u32 %v8251_v43, 16 }
 0x180   : > { %6365 = vmatprep.mubr.msk.bf16.mxu1 %vm583_vm2, %v1777_v41  ;;  %v2289_v41 = vrot.slane %v2287_v11, 1  ;;  %v2330_v11 = vsel %vm2142_vm3, %v2320_v4, %v2329_v40 }
 0x181   : > { %v2301_v33 = vrot.slane %v2299_v18, 2  ;;  %v2352_v18 = vrot.slane %v2350_v27, 1 }
 0x182   : > { %6588 = vmatmul.mubr.msk.bf16.gmra.mrb[8].mxu0 %vm583_vm2, %v4288_v23  ;;  %v2298_v23 = vrot.slane %v2296_v53, 1  ;;  %v2293_v43 = vor.u32 %v2292_v49, %v2289_v41  ;;  %v7181_v49 = vld [vmem:[%s7270_s7 + $0xc8] ss:$0 sps:$4 sm:$0x33]  }
 0x183   : > { %6591 = vmatprep.mubr.msk.bf16.mxu0 %vm583_vm2, %v4290_v52  ;;  %v7174_v52 = vld [vmem:[%s7270_s7 + $0x88] sm:$0xff]   ;;  %v2359_v31 = vshrl.u32 %v7181_v49, 16 }
 0x184   : > { %v2302_v35 = vor.u32 %v2301_v33, %v2298_v23  ;;  %v2294_v2 = vsel %vm2142_vm3, %v2284_v26, %v2293_v43 }
 0x187   : > { %6366 = vmatmul.mubr.msk.bf16.gmra.mrb[36].mxu1 %vm583_vm2, %v1779_v42  ;;  %v4305_v42 = vrot.slane %v7174_v52, 3 }
 0x188   : > { %6369 = vmatprep.mubr.msk.bf16.mxu1 %vm583_vm2, %v1781_v44  ;;  %v4304_v44 = vsel %vm4275_vm7, %v4301_v54, %v4303_v39  ;;  %v2353_v54 = vshll.u32 %v8305_v22, 16 }
 0x18a   : > { %6592 = vmatmul.mubr.msk.bf16.gmra.mrb[12].mxu0 %vm583_vm2, %v4292_v45  ;;  %v4306_v45 = vsel %vm4275_vm7, %v4303_v39, %v4305_v42  ;;  %v2362_v39 = vshll.u32 %v7181_v49, 16 }
 0x18b   : > { %6595 = vmatprep.mubr.msk.bf16.mxu0 %vm583_vm2, %v4294_v47  ;;  %v7175_v47 = vld [vmem:[%s7270_s7 + $0x90] sm:$0xff]  }
 0x18c   : > { %v4307_v0 = vrot.slane %v7175_v47, 3 }
 0x18e   : > { %v4308_v63 = vsel %vm4275_vm7, %v4305_v42, %v4307_v0  ;;  %v2361_v42 = vrot.slane %v2359_v31, 1 }
 0x18f   : > { %6370 = vmatmul.mubr.msk.bf16.gmra.mrb[40].mxu1 %vm583_vm2, %v1783_v1  ;;  %v2303_v1 = vsel %vm2142_vm3, %v2293_v43, %v2302_v35  ;;  %v2364_v43 = vrot.slane %v2362_v39, 2 }
 0x190   : > { %6373 = vmatprep.mubr.msk.bf16.mxu1 %vm583_vm2, %v1785_v30  ;;  %v4309_v30 = vrot.slane %v7176_v20, 3  ;;  %v4724_v20 = vpop.permute.xlu0 %4723 }
 0x191   : > { %v2365_v61 = vor.u32 %v2364_v43, %v2361_v42 }
 0x192   : > { %6596 = vmatmul.mubr.msk.bf16.gmra.mrb[16].mxu0 %vm583_vm2, %v4296_v46  ;;  %v4310_v38 = vsel %vm4275_vm7, %v4307_v0, %v4309_v30  ;;  %v2312_v46 = vsel %vm2142_vm3, %v2302_v35, %v2311_v59  ;;  %v4312_v9 = vsel %vm4275_vm7, %v4309_v30, %v4311_v51  ;;  %v7183_v35 = vld [vmem:[%s7270_s7 + $0xc8] sm:$0xff]   ;;  %v4734_v30 = vpop.permute.xlu1 %4733 }
 0x193   : > { %6599 = vmatprep.mubr.msk.bf16.mxu0 %vm583_vm2, %v4298_v16  ;;  %v2321_v16 = vsel %vm2142_vm3, %v2311_v59, %v2320_v4  ;;  %v4321_v32 = vrot.slane %v7183_v35, 3 }
 0x195   : > { %v4324_v47 = vsel %vm4275_vm7, %v4321_v32, %v4323_v24 }
 0x197   : > { %6374 = vmatmul.mubr.msk.bf16.gmra.mrb[44].mxu1 %vm583_vm2, %v1787_v25  ;;  %v2334_v25 = vrot.slane %v2332_v29, 1  ;;  %v4739_v29 = vpop.permute.xlu1 %4738 }
 0x198   : > { %6403 = vmatprep.mubr.msk.bf16.mxu1 %vm583_vm2, %v2267_v17  ;;  %v2344_v17 = vshll.u32 %v8300_v36, 16  ;;  %v7179_v36 = vld [vmem:[%s7270_s7 + $0xb0] sm:$0xff]  }
 0x199   : > { %v2338_v8 = vor.u32 %v2337_v56, %v2334_v25  ;;  %v4315_v26 = vrot.slane %v7179_v36, 3 }
 0x19a   : > { %6600 = vmatmul.mubr.msk.bf16.gmra.mrb[20].mxu0 %vm583_vm2, %v4300_v57  ;;  %v2346_v57 = vrot.slane %v2344_v17, 2 }
 0x19b   : > { %6603 = vmatprep.mubr.msk.bf16.mxu0 %vm583_vm2, %v4302_v62  ;;  %v2339_v53 = vsel %vm2142_vm3, %v2329_v40, %v2338_v8  ;;  %v2355_v62 = vrot.slane %v2353_v54, 2  ;;  %v4749_v7 = vpop.permute.xlu1 %4748 }
 0x19c   : > { %v2347_v41 = vor.u32 %v2346_v57, %v2343_v37 }
 0x19d   : > { %v2356_v23 = vor.u32 %v2355_v62, %v2352_v18 }
 0x19e   : > { %v2348_v52 = vsel %vm2142_vm3, %v2338_v8, %v2347_v41 }
 0x19f   : > { %6404 = vmatmul.mubr.msk.bf16.vlgmr.msra.gmra.mrb[24].mxu1 %vm583_vm2, %v2276_v15  ;;  %v7180_v15 = vld [vmem:[%s7270_s7 + $0xb8] sm:$0xff]   ;;  %v2366_v58 = vsel %vm2142_vm3, %v2356_v23, %v2365_v61 }
 0x1a0   : > { %6407 = vmatprep.mubr.msk.bf16.mxu1 %vm583_vm2, %v2285_v50  ;;  %v4317_v22 = vrot.slane %v7180_v15, 3  ;;  %v4316_v50 = vsel %vm4275_vm7, %v4313_v60, %v4315_v26 }
 0x1a2   : > { %6604 = vmatmul.mubr.msk.bf16.gmra.mrb[24].mxu0 %vm583_vm2, %v4304_v44  ;;  %v4318_v33 = vsel %vm4275_vm7, %v4315_v26, %v4317_v22  ;;  %v2357_v44 = vsel %vm2142_vm3, %v2347_v41, %v2356_v23 }
 0x1a3   : > { %6607 = vmatprep.mubr.msk.bf16.mxu0 %vm583_vm2, %v4306_v45  ;;  %v4320_v45 = vsel %vm4275_vm7, %v4317_v22, %v4319_v12 }
 0x1a7   : > { %6408 = vmatmul.mubr.msk.bf16.gmra.mrb[28].mxu1 %vm583_vm2, %v2294_v2  ;;  %v4322_v2 = vsel %vm4275_vm7, %v4319_v12, %v4321_v32 }
 0x1a8   : > { %6411 = vmatprep.mubr.msk.bf16.mxu1 %vm583_vm2, %v2303_v1 }
 0x1aa   : > { %6608 = vmatmul.mubr.msk.bf16.gmra.mrb[28].mxu0 %vm583_vm2, %v4308_v63  ;;  %v4729_v63 = vpop.permute.xlu0 %4728 }
 0x1ab   : > { %6611 = vmatprep.mubr.msk.bf16.mxu0 %vm583_vm2, %v4310_v38 }
 0x1ae   : > { %v4744_v55 = vpop.permute.xlu0 %4743 }
 0x1af   : > { %6412 = vmatmul.mubr.msk.bf16.gmra.mrb[32].mxu1 %vm583_vm2, %v2312_v46 }
 0x1b0   : > { %6415 = vmatprep.mubr.msk.bf16.mxu1 %vm583_vm2, %v2321_v16  ;;  %v4759_v16 = vpop.permute.xlu1 %4758 }
 0x1b2   : > { %6612 = vmatmul.mubr.msk.bf16.gmra.mrb[32].mxu0 %vm583_vm2, %v4312_v9  ;;  %v4754_v21 = vpop.permute.xlu0 %4753 }
 0x1b3   : > { %6615 = vmatprep.mubr.msk.bf16.mxu0 %vm583_vm2, %v4314_v34 }
 0x1b4   : > { %v4769_v40 = vpop.permute.xlu1 %4768 }
 0x1b6   : > { %v4764_v60 = vpop.permute.xlu0 %4763 }
 0x1b7   : > { %6416 = vmatmul.mubr.msk.bf16.gmra.mrb[36].mxu1 %vm583_vm2, %v2330_v11 }
 0x1b8   : > { %6419 = vmatprep.mubr.msk.bf16.mxu1 %vm583_vm2, %v2339_v53  ;;  %v4779_v54 = vpop.permute.xlu1 %4778 }
 0x1ba   : > { %6616 = vmatmul.mubr.msk.bf16.gmra.mrb[36].mxu0 %vm583_vm2, %v4316_v50  ;;  %v4774_v8 = vpop.permute.xlu0 %4773 }
 0x1bb   : > { %6619 = vmatprep.mubr.msk.bf16.mxu0 %vm583_vm2, %v4318_v33 }
 0x1bc   : > { %v4789_v36 = vpop.permute.xlu1 %4788 }
 0x1be   : > { %v4784_v11 = vpop.permute.xlu0 %4783 }
 0x1bf   : > { %6420 = vmatmul.mubr.msk.bf16.gmra.mrb[40].mxu1 %vm583_vm2, %v2348_v52 }
 0x1c0   : > { %6423 = vmatprep.mubr.msk.bf16.mxu1 %vm583_vm2, %v2357_v44  ;;  %v4799_v18 = vpop.permute.xlu1 %4798 }
 0x1c2   : > { %6620 = vmatmul.mubr.msk.bf16.gmra.mrb[40].mxu0 %vm583_vm2, %v4320_v45  ;;  %v4794_v53 = vpop.permute.xlu0 %4793 }
 0x1c3   : > { %6623 = vmatprep.mubr.msk.bf16.mxu0 %vm583_vm2, %v4322_v2 }
 0x1c4   : > { %v8441_v49 = vpop.permute.xlu1 %4808 }
 0x1c6   : > { %v8437_v62 = vpop.permute.xlu0 %4803 }
 0x1c7   : > { %6424 = vmatmul.mubr.msk.bf16.gmra.mrb[44].mxu1 %vm583_vm2, %v2366_v58 }
 0x1c8   : > { %v4819_v44 = vpop.permute.xlu1 %4818 }
 0x1ca   : > { %6624 = vmatmul.mubr.msk.bf16.gmra.mrb[44].mxu0 %vm583_vm2, %v4324_v47  ;;  %v4814_v3 = vpop.permute.xlu0 %4813 }
 0x212   : > { %v6331_v0 = vpop.f32.mrb[0].mxu1 }
 0x213   : > { %v1897_v1 = vpop.f32.mrb[1].mxu1 }
 0x214   : > { %v6332_v5 = vpop.f32.mrb[2].mxu1 }
 0x215   : > { %v1900_v28 = vpop.f32.mrb[3].mxu1 }
 0x21a   : > { %v6335_v59 = vpop.f32.mrb[4].mxu1 }
 0x21b   : > { %v1913_v6 = vpop.f32.mrb[5].mxu1 }
 0x21c   : > { %v6336_v10 = vpop.f32.mrb[6].mxu1 }
 0x21d   : > { %v1916_v4 = vpop.f32.mrb[7].mxu1 }
 0x222   : > { %v6339_v19 = vpop.f32.mrb[8].mxu1 }
 0x223   : > { %v1929_v38 = vpop.f32.mrb[9].mxu1 }
 0x224   : > { %v6340_v46 = vpop.f32.mrb[10].mxu1 }
 0x225   : > { %v8411_v13 = vpop.f32.mrb[11].mxu1 }
 0x22a   : > { %v8413_v51 = vpop.f32.mrb[12].mxu1 }
 0x22b   : > { %v8415_v25 = vpop.f32.mrb[13].mxu1 }
 0x22c   : > { %v8417_v56 = vpop.f32.mrb[14].mxu1 }
 0x22d   : > { %v8419_v48 = vpop.f32.mrb[15].mxu1 }
 0x232   : > { %v8421_v14 = vpop.f32.mrb[16].mxu1 }
 0x233   : > { %v8423_v17 = vpop.f32.mrb[17].mxu1 }
 0x234   : > { %v8425_v9 = vpop.f32.mrb[18].mxu1 }
 0x235   : > { %v8427_v27 = vpop.f32.mrb[19].mxu1 }
 0x23a   : > { %v8429_v34 = vpop.f32.mrb[20].mxu1 }
 0x23b   : > { %v8431_v37 = vpop.f32.mrb[21].mxu1 }
 0x23c   : > { %v8433_v57 = vpop.f32.mrb[22].mxu1 }
 0x23d   : > { %v8435_v26 = vpop.f32.mrb[23].mxu1 }
 0x245   : > { %v6581_v15 = vpop.f32.mrb[0].mxu0 }
 0x246   : > { %v8439_v22 = vadd.f32 %v6581_v15, %v6331_v0  ;;  %v4434_v41 = vpop.f32.mrb[1].mxu0  ;;  %v4824_v0 = vpop.permute.xlu0 %4823 }
 0x247   : > { %v8443_v31 = vadd.f32 %v4434_v41, %v1897_v1  ;;  %v6582_v39 = vpop.f32.mrb[2].mxu0 }
 0x248   : > { %v8446_v50 = vmul.f32 %v8439_v22, %v4734_v30  ;;  %v8448_v23 = vadd.f32 %v6582_v39, %v6332_v5  ;;  %v4437_v33 = vpop.f32.mrb[3].mxu0 }
 0x249   : > { %v8451_v52 = vmul.f32 %v8443_v31, %v4724_v20  ;;  %v8453_v42 = vadd.f32 %v4437_v33, %v1900_v28  ;;  %v4829_v20 = vpop.permute.xlu1 %4828 }
 0x24a   : > { %v8456_v43 = vmul.f32 %v8448_v23, %v4739_v29 }
 0x24b   : > { %v8459_v12 = vmul.f32 %v8453_v42, %v4729_v63 }
 0x24d   : > { %v6585_v35 = vpop.f32.mrb[4].mxu0 }
 0x24e   : > { %v8461_v32 = vadd.f32 %v6585_v35, %v6335_v59  ;;  %v4450_v61 = vpop.f32.mrb[5].mxu0 }
 0x24f   : > { %v8463_v45 = vadd.f32 %v4450_v61, %v1913_v6  ;;  %v6586_v2 = vpop.f32.mrb[6].mxu0 }
 0x250   : > { %v8466_v58 = vmul.f32 %v8461_v32, %v4754_v21  ;;  %v8468_v24 = vadd.f32 %v6586_v2, %v6336_v10  ;;  %v4453_v47 = vpop.f32.mrb[7].mxu0  ;;  %v4834_v10 = vpop.permute.xlu0 %4833 }
 0x251   : > { %v8471_v1 = vmul.f32 %v8463_v45, %v4744_v55  ;;  %v8473_v5 = vadd.f32 %v4453_v47, %v1916_v4 }
 0x252   : > { %v8476_v28 = vmul.f32 %v8468_v24, %v4759_v16  ;;  %v4839_v16 = vpop.permute.xlu1 %4838 }
 0x253   : > { %v8479_v30 = vmul.f32 %v8473_v5, %v4749_v7 }
 0x254   : > { %9435 = vst [vmem:[#allocation4_spill] sm:$0xff] %v8476_v28  ;;  %v4844_v39 = vpop.permute.xlu0 %4843 }
 0x255   : > { %v6589_v59 = vpop.f32.mrb[8].mxu0 }
 0x256   : > { %v8481_v6 = vadd.f32 %v6589_v59, %v6339_v19  ;;  %v4466_v63 = vpop.f32.mrb[9].mxu0  ;;  %v4849_v35 = vpop.permute.xlu1 %4848 }
 0x257   : > { %v8483_v29 = vadd.f32 %v4466_v63, %v1929_v38  ;;  %v6590_v21 = vpop.f32.mrb[10].mxu0 }
 0x258   : > { %v8486_v55 = vmul.f32 %v8481_v6, %v4774_v8  ;;  %v8488_v4 = vadd.f32 %v6590_v21, %v6340_v46  ;;  %v4469_v15 = vpop.f32.mrb[11].mxu0  ;;  %v4854_v59 = vpop.permute.xlu0 %4853 }
 0x259   : > { %v8491_v41 = vmul.f32 %v8483_v29, %v4764_v60  ;;  %v8494_v7 = vadd.f32 %v4469_v15, %v8411_v13 }
 0x25a   : > { %9436 = vst [vmem:[#allocation5_spill] sm:$0xff] %v8486_v55  ;;  %v8497_v19 = vmul.f32 %v8488_v4, %v4779_v54  ;;  %v4859_v63 = vpop.permute.xlu1 %4858 }
 0x25b   : > { %9437 = vst [vmem:[#allocation6_spill] sm:$0xff] %v8491_v41  ;;  %v8500_v38 = vmul.f32 %v8494_v7, %v4769_v40 }
 0x25c   : > { %9438 = vst [vmem:[#allocation7_spill] sm:$0xff] %v8497_v19 }
 0x25d   : > { %9439 = vst [vmem:[#allocation8_spill] sm:$0xff] %v8500_v38  ;;  %v6593_v33 = vpop.f32.mrb[12].mxu0 }
 0x25e   : > { %v8503_v8 = vadd.f32 %v6593_v33, %v8413_v51  ;;  %v4482_v46 = vpop.f32.mrb[13].mxu0 }
 0x25f   : > { %v8506_v61 = vadd.f32 %v4482_v46, %v8415_v25  ;;  %v6594_v60 = vpop.f32.mrb[14].mxu0  ;;  %v4864_v46 = vpop.permute.xlu0 %4863 }
 0x260   : > { %v8509_v13 = vmul.f32 %v8503_v8, %v4794_v53  ;;  %v8512_v54 = vadd.f32 %v6594_v60, %v8417_v56  ;;  %v4485_v2 = vpop.f32.mrb[15].mxu0 }
 0x261   : > { %v8515_v40 = vmul.f32 %v8506_v61, %v4784_v11  ;;  %v8518_v47 = vadd.f32 %v4485_v2, %v8419_v48 }
 0x262   : > { %9440 = vst [vmem:[#allocation9_spill] sm:$0xff] %v8509_v13  ;;  %v8521_v51 = vmul.f32 %v8512_v54, %v4799_v18 }
 0x263   : > { %9441 = vst [vmem:[#allocation10_spill] sm:$0xff] %v8515_v40  ;;  %v8524_v25 = vmul.f32 %v8518_v47, %v4789_v36 }
 0x264   : > { %9442 = vst [vmem:[#allocation11_spill] sm:$0xff] %v8521_v51 }
 0x265   : > { %9443 = vst [vmem:[#allocation12_spill] sm:$0xff] %v8524_v25  ;;  %v6597_v53 = vpop.f32.mrb[16].mxu0 }
 0x266   : > { %v8527_v21 = vadd.f32 %v6597_v53, %v8421_v14  ;;  %v4498_v56 = vpop.f32.mrb[17].mxu0 }
 0x267   : > { %v8530_v15 = vadd.f32 %v4498_v56, %v8423_v17  ;;  %v6598_v11 = vpop.f32.mrb[18].mxu0  ;;  %v4869_v17 = vpop.permute.xlu1 %4868 }
 0x268   : > { %v8533_v48 = vmul.f32 %v8527_v21, %v4814_v3  ;;  %v8536_v18 = vadd.f32 %v6598_v11, %v8425_v9  ;;  %v4501_v33 = vpop.f32.mrb[19].mxu0  ;;  %v4874_v56 = vpop.permute.xlu0 %4873 }
 0x269   : > { %v8540_v36 = vmul.f32 %v8530_v15, %v8437_v62  ;;  %v8543_v14 = vadd.f32 %v4501_v33, %v8427_v27 }
 0x26a   : > { %9444 = vst [vmem:[#allocation13_spill] sm:$0xff] %v8533_v48  ;;  %v8546_v60 = vmul.f32 %v8536_v18, %v4819_v44 }
 0x26b   : > { %9445 = vst [vmem:[#allocation14_spill] sm:$0xff] %v8540_v36  ;;  %v8550_v3 = vmul.f32 %v8543_v14, %v8441_v49  ;;  %v4879_v49 = vpop.permute.xlu1 %4878 }
 0x26c   : > { %9446 = vst [vmem:[#allocation15_spill] sm:$0xff] %v8546_v60 }
 0x26d   : > { %9447 = vst [vmem:[#allocation16_spill] sm:$0xff] %v8550_v3  ;;  %v6601_v2 = vpop.f32.mrb[20].mxu0 }
 0x26e   : > { %v8553_v9 = vadd.f32 %v6601_v2, %v8429_v34  ;;  %v4514_v53 = vpop.f32.mrb[21].mxu0 }
 0x26f   : > { %v8556_v62 = vadd.f32 %v4514_v53, %v8431_v37  ;;  %v6602_v11 = vpop.f32.mrb[22].mxu0  ;;  %v4889_v51 = vpop.permute.xlu1 %4888 }
 0x270   : > { %v8559_v27 = vmul.f32 %v8553_v9, %v4834_v10  ;;  %v8562_v44 = vadd.f32 %v6602_v11, %v8433_v57  ;;  %v4517_v33 = vpop.f32.mrb[23].mxu0  ;;  %v4884_v57 = vpop.permute.xlu0 %4883 }
 0x271   : > { %v8565_v48 = vmul.f32 %v8556_v62, %v4824_v0  ;;  %v8568_v34 = vadd.f32 %v4517_v33, %v8435_v26 }
 0x272   : > { %9448 = vst [vmem:[#allocation17_spill] sm:$0xff] %v8559_v27  ;;  %v6405_v60 = vpop.f32.mrb[24].mxu1  ;;  %v8571_v37 = vmul.f32 %v8562_v44, %v4839_v16 }
 0x273   : > { %9449 = vst [vmem:[#allocation18_spill] sm:$0xff] %v8565_v48  ;;  %v2572_v2 = vpop.f32.mrb[25].mxu1  ;;  %v8574_v10 = vmul.f32 %v8568_v34, %v4829_v20 }
 0x274   : > { %9450 = vst [vmem:[#allocation19_spill] sm:$0xff] %v8571_v37  ;;  %v6406_v53 = vpop.f32.mrb[26].mxu1 }
 0x275   : > { %9451 = vst [vmem:[#allocation20_spill] sm:$0xff] %v8574_v10  ;;  %v2575_v27 = vpop.f32.mrb[27].mxu1  ;;  %v6605_v11 = vpop.f32.mrb[24].mxu0 }
 0x276   : > { %v8576_v3 = vadd.f32 %v6605_v11, %v6405_v60  ;;  %v4530_v36 = vpop.f32.mrb[25].mxu0 }
 0x277   : > { %v8578_v0 = vadd.f32 %v4530_v36, %v2572_v2  ;;  %v6606_v48 = vpop.f32.mrb[26].mxu0  ;;  %v4894_v36 = vpop.permute.xlu0 %4893 }
 0x278   : > { %v8581_v26 = vmul.f32 %v8576_v3, %v4854_v59  ;;  %v8583_v33 = vadd.f32 %v6606_v48, %v6406_v53  ;;  %v4533_v16 = vpop.f32.mrb[27].mxu0 }
 0x279   : > { %v8586_v20 = vmul.f32 %v8578_v0, %v4844_v39  ;;  %v8588_v10 = vadd.f32 %v4533_v16, %v2575_v27 }
 0x27a   : > { %9452 = vst [vmem:[#allocation21_spill] sm:$0xff] %v8581_v26  ;;  %v6409_v37 = vpop.f32.mrb[28].mxu1  ;;  %v8591_v60 = vmul.f32 %v8583_v33, %v4859_v63  ;;  %v4899_v26 = vpop.permute.xlu1 %4898 }
 0x27b   : > { %9453 = vst [vmem:[#allocation22_spill] sm:$0xff] %v8586_v20  ;;  %v2588_v13 = vpop.f32.mrb[29].mxu1  ;;  %v8594_v2 = vmul.f32 %v8588_v10, %v4849_v35  ;;  %v4904_v20 = vpop.permute.xlu0 %4903 }
 0x27c   : > { %9454 = vst [vmem:[#allocation23_spill] sm:$0xff] %v8591_v60  ;;  %v6410_v11 = vpop.f32.mrb[30].mxu1 }
 0x27d   : > { %9455 = vst [vmem:[#allocation24_spill] sm:$0xff] %v8594_v2  ;;  %v2591_v59 = vpop.f32.mrb[31].mxu1  ;;  %v6609_v48 = vpop.f32.mrb[28].mxu0 }
 0x27e   : > { %v8596_v53 = vadd.f32 %v6609_v48, %v6409_v37  ;;  %v4546_v25 = vpop.f32.mrb[29].mxu0 }
 0x27f   : > { %v8598_v40 = vadd.f32 %v4546_v25, %v2588_v13  ;;  %v6610_v39 = vpop.f32.mrb[30].mxu0  ;;  %v4909_v25 = vpop.permute.xlu1 %4908 }
 0x280   : > { %v8601_v27 = vmul.f32 %v8596_v53, %v4874_v56  ;;  %v8603_v16 = vadd.f32 %v6610_v39, %v6410_v11  ;;  %v4549_v63 = vpop.f32.mrb[31].mxu0  ;;  %v4914_v55 = vpop.permute.xlu0 %4913 }
 0x281   : > { %v8606_v35 = vmul.f32 %v8598_v40, %v4864_v46  ;;  %v8608_v2 = vadd.f32 %v4549_v63, %v2591_v59 }
 0x282   : > { %9456 = vst [vmem:[#allocation25_spill] sm:$0xff] %v8601_v27  ;;  %v6413_v60 = vpop.f32.mrb[32].mxu1  ;;  %v8611_v37 = vmul.f32 %v8603_v16, %v4879_v49 }
 0x283   : > { %9457 = vst [vmem:[#allocation26_spill] sm:$0xff] %v8606_v35  ;;  %v2604_v19 = vpop.f32.mrb[33].mxu1  ;;  %v8614_v48 = vmul.f32 %v8608_v2, %v4869_v17  ;;  %v4919_v35 = vpop.permute.xlu1 %4918 }
 0x284   : > { %9458 = vst [vmem:[#allocation27_spill] sm:$0xff] %v8611_v37  ;;  %v6414_v13 = vpop.f32.mrb[34].mxu1 }
 0x285   : > { %9459 = vst [vmem:[#allocation28_spill] sm:$0xff] %v8614_v48  ;;  %v2607_v56 = vpop.f32.mrb[35].mxu1  ;;  %v6613_v11 = vpop.f32.mrb[32].mxu0 }
 0x286   : > { %v8616_v39 = vadd.f32 %v6613_v11, %v6413_v60  ;;  %v4562_v27 = vpop.f32.mrb[33].mxu0 }
 0x287   : > { %v8618_v38 = vadd.f32 %v4562_v27, %v2604_v19  ;;  %v6614_v46 = vpop.f32.mrb[34].mxu0  ;;  %v4929_v28 = vpop.permute.xlu1 %4928 }
 0x288   : > { %9460 = vst [vmem:[#allocation29_spill] sm:$0xff] %v8616_v39  ;;  %v8621_v59 = vmul.f32 %v8616_v39, %v4894_v36  ;;  %v8623_v63 = vadd.f32 %v6614_v46, %v6414_v13  ;;  %v4565_v49 = vpop.f32.mrb[35].mxu0 }
 0x289   : > { %v8626_v17 = vmul.f32 %v8618_v38, %v4884_v57  ;;  %v8628_v48 = vadd.f32 %v4565_v49, %v2607_v56 }
 0x28a   : > { %9461 = vst [vmem:[#allocation30_spill] sm:$0xff] %v8621_v59  ;;  %9462 = vst [vmem:[#allocation31_spill] sm:$0xff] %v8623_v63  ;;  %v6417_v37 = vpop.f32.mrb[36].mxu1  ;;  %v8631_v11 = vmul.f32 %v8623_v63, %v4899_v26  ;;  %v4924_v59 = vpop.permute.xlu0 %4923 }
 0x28b   : > { %9463 = vst [vmem:[#allocation32_spill] sm:$0xff] %v8626_v17  ;;  %v2620_v60 = vpop.f32.mrb[37].mxu1  ;;  %v8634_v27 = vmul.f32 %v8628_v48, %v4889_v51 }
 0x28c   : > { %9464 = vst [vmem:[#allocation33_spill] sm:$0xff] %v8631_v11  ;;  %v6418_v19 = vpop.f32.mrb[38].mxu1 }
 0x28d   : > { %9465 = vst [vmem:[#allocation34_spill] sm:$0xff] %v8634_v27  ;;  %v2623_v36 = vpop.f32.mrb[39].mxu1  ;;  %v6617_v13 = vpop.f32.mrb[36].mxu0 }
 0x28e   : > { %v8636_v46 = vadd.f32 %v6617_v13, %v6417_v37  ;;  %v4578_v41 = vpop.f32.mrb[37].mxu0 }
 0x28f   : > { %v8638_v39 = vadd.f32 %v4578_v41, %v2620_v60  ;;  %v6618_v57 = vpop.f32.mrb[38].mxu0  ;;  %v4934_v41 = vpop.permute.xlu0 %4933 }
 0x290   : > { %9466 = vst [vmem:[#allocation35_spill] sm:$0xff] %v8636_v46  ;;  %v8641_v56 = vmul.f32 %v8636_v46, %v4914_v55  ;;  %v8643_v49 = vadd.f32 %v6618_v57, %v6418_v19  ;;  %v4581_v26 = vpop.f32.mrb[39].mxu0 }
 0x291   : > { %9467 = vst [vmem:[#allocation36_spill] sm:$0xff] %v8638_v39  ;;  %v8646_v51 = vmul.f32 %v8638_v39, %v4904_v20  ;;  %v8648_v27 = vadd.f32 %v4581_v26, %v2623_v36 }
 0x292   : > { %9468 = vst [vmem:[#allocation37_spill] sm:$0xff] %v8641_v56  ;;  %9469 = vst [vmem:[#allocation38_spill] sm:$0xff] %v8643_v49  ;;  %v6421_v11 = vpop.f32.mrb[40].mxu1  ;;  %v8651_v37 = vmul.f32 %v8643_v49, %v4919_v35  ;;  %v4939_v56 = vpop.permute.xlu1 %4938 }
 0x293   : > { %9470 = vst [vmem:[#allocation39_spill] sm:$0xff] %v8646_v51  ;;  %9471 = vst [vmem:[#allocation40_spill] sm:$0xff] %v8648_v27  ;;  %v2636_v17 = vpop.f32.mrb[41].mxu1  ;;  %v8654_v60 = vmul.f32 %v8648_v27, %v4909_v25  ;;  %v4944_v51 = vpop.permute.xlu0 %4943 }
 0x294   : > { %9472 = vst [vmem:[#allocation41_spill] sm:$0xff] %v8651_v37  ;;  %v6422_v13 = vpop.f32.mrb[42].mxu1 }
 0x295   : > { %9473 = vst [vmem:[#allocation42_spill] sm:$0xff] %v8654_v60  ;;  %v2639_v55 = vpop.f32.mrb[43].mxu1  ;;  %v6621_v19 = vpop.f32.mrb[40].mxu0 }
 0x296   : > { %v8656_v57 = vadd.f32 %v6621_v19, %v6421_v11  ;;  %v4594_v46 = vpop.f32.mrb[41].mxu0 }
 0x297   : > { %v8658_v63 = vadd.f32 %v4594_v46, %v2636_v17  ;;  %v6622_v20 = vpop.f32.mrb[42].mxu0  ;;  %v4949_v46 = vpop.permute.xlu1 %4948 }
 0x298   : > { %9474 = vst [vmem:[#allocation43_spill] sm:$0xff] %v8656_v57  ;;  %v8661_v36 = vmul.f32 %v8656_v57, %v4934_v41  ;;  %v8663_v26 = vadd.f32 %v6622_v20, %v6422_v13  ;;  %v4597_v35 = vpop.f32.mrb[43].mxu0  ;;  %v4954_v57 = vpop.permute.xlu0 %4953 }
 0x299   : > { %9475 = vst [vmem:[#allocation44_spill] sm:$0xff] %v8658_v63  ;;  %v8666_v25 = vmul.f32 %v8658_v63, %v4924_v59  ;;  %v8668_v60 = vadd.f32 %v4597_v35, %v2639_v55 }
 0x29a   : > { %9476 = vst [vmem:[#allocation45_spill] sm:$0xff] %v8661_v36  ;;  %9477 = vst [vmem:[#allocation46_spill] sm:$0xff] %v8663_v26  ;;  %v6425_v37 = vpop.f32.mrb[44].mxu1  ;;  %v8671_v11 = vmul.f32 %v8663_v26, %v4939_v56 }
 0x29b   : > { %9478 = vst [vmem:[#allocation47_spill] sm:$0xff] %v8666_v25  ;;  %9479 = vst [vmem:[#allocation48_spill] sm:$0xff] %v8668_v60  ;;  %v2652_v49 = vpop.f32.mrb[45].mxu1  ;;  %v8674_v19 = vmul.f32 %v8668_v60, %v4929_v28 }
 0x29c   : > { %9480 = vst [vmem:[#allocation49_spill] sm:$0xff] %v8671_v11  ;;  %v6426_v17 = vpop.f32.mrb[46].mxu1  ;;  %v4959_v11 = vpop.permute.xlu1 %4958 }
 0x29d   : > { %v2655_v41 = vpop.f32.mrb[47].mxu1  ;;  %v6625_v13 = vpop.f32.mrb[44].mxu0 }
 0x29e   : > { %v8676_v20 = vadd.f32 %v6625_v13, %v6425_v37  ;;  %v4610_v36 = vpop.f32.mrb[45].mxu0 }
 0x29f   : > { %v8678_v27 = vadd.f32 %v4610_v36, %v2652_v49  ;;  %v6626_v59 = vpop.f32.mrb[46].mxu0  ;;  %5012 = sbr.rel (%p5948_p4) target bundleno = 678 (0x2a6), region = 44  ;;  %v7203_v49 = vmov (!%p5948_p4), 0.0  }
 0x2a0   : > { %9481 = vst [vmem:[#allocation50_spill] sm:$0xff] %v8676_v20  ;;  %v8681_v55 = vmul.f32 %v8676_v20, %v4954_v57  ;;  %v8683_v35 = vadd.f32 %v6626_v59, %v6426_v17  ;;  %v4613_v56 = vpop.f32.mrb[47].mxu0  ;;  %5014 = vst.msk [vmem:[#allocation2] sm:$0x1] (!%p5948_p4), %vm5013_vm8, %v7203_v49 }
 0x2a1   : > { %9482 = vst [vmem:[#allocation51_spill] sm:$0xff] %v8678_v27  ;;  %v8686_v25 = vmul.f32 %v8678_v27, %v4944_v51  ;;  %v8688_v28 = vadd.f32 %v4613_v56, %v2655_v41  ;;  %5015 = vst.msk [vmem:[#allocation3] sm:$0x1] (!%p5948_p4), %vm5013_vm8, %v7203_v49 }
 0x2a2   : > { %9483 = vst [vmem:[#allocation52_spill] sm:$0xff] %v8681_v55  ;;  %9484 = vst [vmem:[#allocation53_spill] sm:$0xff] %v8683_v35  ;;  %v8691_v37 = vmul.f32 %v8683_v35, %v4959_v11 }
 0x2a3   : > { %9485 = vst [vmem:[#allocation54_spill] sm:$0xff] %v8688_v28  ;;  %v8694_v13 = vmul.f32 %v8688_v28, %v4949_v46 }
 0x2a4   : > { %9486 = vst [vmem:[#allocation55_spill] sm:$0xff] %v8691_v37 }
 0x2a5   : > { %9487 = vst [vmem:[#allocation56_spill] sm:$0xff] %v8694_v13 }
 0x2a6 PF: > { %vm5017_vm9 = vcmask 64512   ;;  %s5274_s7 = smul.u32 384, %s7240_s19  ;;  %vm5120_vm10 = vcmask 57344   ;;  %p5949_p5 = scmp.ne.s32.totalorder %s7240_s19, 1 }
 0x2a7   : > { %v5018_v51 = vsel %vm5017_vm9, %v8451_v52, 0.0  ;;  %v5019_v57 = vsel %vm5017_vm9, %v8459_v12, 0.0  ;;  %v5021_v36 = vsel %vm5017_vm9, %v8446_v50, 0.0  ;;  %v5023_v17 = vsel %vm5017_vm9, %v8456_v43, 0.0  ;;  %s9105_s19 = smov (!%p5949_p5), 0  }
 0x2a8   : > { %v5020_v11 = vadd.f32 %v5019_v57, %v5018_v51  ;;  %v5025_v41 = vsel %vm5017_vm9, %v8471_v1, 0.0  ;;  %v5027_v56 = vsel %vm5017_vm9, %v8479_v30, 0.0  ;;  %s8713_s8 = scalar_lea.vmem %s9375_s5, %s5274_s7  ;;  %v5029_v51 = vsel %vm5017_vm9, %v8466_v58, 0.0  ;;  %v9488_v57 = vld [vmem:[#allocation29_spill] sm:$0xff] }
 0x2a9   : > { %5276 = vst.msk [vmem:[%s8713_s8] sm:$0xff] %vm5017_vm9, %v8443_v31  ;;  %5277 = vst.msk [vmem:[%s8713_s8 + $0x8] sm:$0xff] %vm5017_vm9, %v8453_v42 }
 0x2aa   : > { %v5022_v46 = vadd.f32 %v5021_v36, %v5020_v11  ;;  %5278 = vst.msk [vmem:[%s8713_s8 + $0x10] sm:$0xff] %vm5017_vm9, %v8439_v22  ;;  %5279 = vst.msk [vmem:[%s8713_s8 + $0x18] sm:$0xff] %vm5017_vm9, %v8448_v23  ;;  %v9489_v36 = vld [vmem:[#allocation31_spill] sm:$0xff]  ;;  %v9490_v11 = vld [vmem:[#allocation40_spill] sm:$0xff] }
 0x2ab   : > { %5280 = vst.msk [vmem:[%s8713_s8 + $0x20] sm:$0xff] %vm5017_vm9, %v8463_v45  ;;  %5281 = vst.msk [vmem:[%s8713_s8 + $0x28] sm:$0xff] %vm5017_vm9, %v8473_v5 }
 0x2ac   : > { %v5024_v59 = vadd.f32 %v5023_v17, %v5022_v46  ;;  %5282 = vst.msk [vmem:[%s8713_s8 + $0x30] sm:$0xff] %vm5017_vm9, %v8461_v32  ;;  %5283 = vst.msk [vmem:[%s8713_s8 + $0x38] sm:$0xff] %vm5017_vm9, %v8468_v24  ;;  %v9491_v17 = vld [vmem:[#allocation35_spill] sm:$0xff]  ;;  %v9492_v46 = vld [vmem:[#allocation38_spill] sm:$0xff] }
 0x2ad   : > { %5284 = vst.msk [vmem:[%s8713_s8 + $0x40] sm:$0xff] %vm5017_vm9, %v8483_v29  ;;  %5285 = vst.msk [vmem:[%s8713_s8 + $0x48] sm:$0xff] %vm5017_vm9, %v8494_v7 }
 0x2ae   : > { %v5026_v49 = vadd.f32 %v5025_v41, %v5024_v59  ;;  %5286 = vst.msk [vmem:[%s8713_s8 + $0x50] sm:$0xff] %vm5017_vm9, %v8481_v6  ;;  %5287 = vst.msk [vmem:[%s8713_s8 + $0x58] sm:$0xff] %vm5017_vm9, %v8488_v4  ;;  %v9493_v41 = vld [vmem:[#allocation43_spill] sm:$0xff] }
 0x2af   : > { %5288 = vst.msk [vmem:[%s8713_s8 + $0x60] sm:$0xff] %vm5017_vm9, %v8506_v61  ;;  %5289 = vst.msk [vmem:[%s8713_s8 + $0x68] sm:$0xff] %vm5017_vm9, %v8518_v47 }
 0x2b0   : > { %5290 = vst.msk [vmem:[%s8713_s8 + $0x70] sm:$0xff] %vm5017_vm9, %v8503_v8  ;;  %5291 = vst.msk [vmem:[%s8713_s8 + $0x78] sm:$0xff] %vm5017_vm9, %v8512_v54  ;;  %v5028_v59 = vadd.f32 %v5027_v56, %v5026_v49  ;;  %v9499_v49 = vld [vmem:[#allocation10_spill] sm:$0xff] }
 0x2b1   : > { %5292 = vst.msk [vmem:[%s8713_s8 + $0x80] sm:$0xff] %vm5017_vm9, %v8530_v15  ;;  %5293 = vst.msk [vmem:[%s8713_s8 + $0x88] sm:$0xff] %vm5017_vm9, %v8543_v14  ;;  %v5041_v55 = vsel %vm5017_vm9, %v9499_v49, 0.0 }
 0x2b2   : > { %5294 = vst.msk [vmem:[%s8713_s8 + $0x90] sm:$0xff] %vm5017_vm9, %v8527_v21  ;;  %5295 = vst.msk [vmem:[%s8713_s8 + $0x98] sm:$0xff] %vm5017_vm9, %v8536_v18 }
 0x2b3   : > { %5296 = vst.msk [vmem:[%s8713_s8 + $0xa0] sm:$0xff] %vm5017_vm9, %v8556_v62  ;;  %5297 = vst.msk [vmem:[%s8713_s8 + $0xa8] sm:$0xff] %vm5017_vm9, %v8568_v34 }
 0x2b4   : > { %5298 = vst.msk [vmem:[%s8713_s8 + $0xb0] sm:$0xff] %vm5017_vm9, %v8553_v9  ;;  %5299 = vst.msk [vmem:[%s8713_s8 + $0xb8] sm:$0xff] %vm5017_vm9, %v8562_v44 }
 0x2b5   : > { %5300 = vst.msk [vmem:[%s8713_s8 + $0xc0] sm:$0xff] %vm5017_vm9, %v8578_v0  ;;  %5301 = vst.msk [vmem:[%s8713_s8 + $0xc8] sm:$0xff] %vm5017_vm9, %v8588_v10 }
 0x2b6   : > { %5302 = vst.msk [vmem:[%s8713_s8 + $0xd0] sm:$0xff] %vm5017_vm9, %v8576_v3  ;;  %5303 = vst.msk [vmem:[%s8713_s8 + $0xd8] sm:$0xff] %vm5017_vm9, %v8583_v33 }
 0x2b7   : > { %5304 = vst.msk [vmem:[%s8713_s8 + $0xe0] sm:$0xff] %vm5017_vm9, %v8598_v40  ;;  %5305 = vst.msk [vmem:[%s8713_s8 + $0xe8] sm:$0xff] %vm5017_vm9, %v8608_v2 }
 0x2b8   : > { %5306 = vst.msk [vmem:[%s8713_s8 + $0xf0] sm:$0xff] %vm5017_vm9, %v8596_v53  ;;  %5307 = vst.msk [vmem:[%s8713_s8 + $0xf8] sm:$0xff] %vm5017_vm9, %v8603_v16 }
 0x2b9   : > { %5308 = vst.msk [vmem:[%s8713_s8 + $0x100] sm:$0xff] %vm5017_vm9, %v8618_v38  ;;  %5309 = vst.msk [vmem:[%s8713_s8 + $0x108] sm:$0xff] %vm5017_vm9, %v8628_v48 }
 0x2ba   : > { %5310 = vst.msk [vmem:[%s8713_s8 + $0x110] sm:$0xff] %vm5017_vm9, %v9488_v57  ;;  %5311 = vst.msk [vmem:[%s8713_s8 + $0x118] sm:$0xff] %vm5017_vm9, %v9489_v36  ;;  %v9498_v36 = vld [vmem:[#allocation7_spill] sm:$0xff] }
 0x2bb   : > { %5312 = vst.msk [vmem:[%s8713_s8 + $0x120] sm:$0xff] %vm5017_vm9, %v8638_v39  ;;  %5313 = vst.msk [vmem:[%s8713_s8 + $0x128] sm:$0xff] %vm5017_vm9, %v9490_v11  ;;  %v9496_v11 = vld [vmem:[#allocation8_spill] sm:$0xff] }
 0x2bc   : > { %5314 = vst.msk [vmem:[%s8713_s8 + $0x130] sm:$0xff] %vm5017_vm9, %v9491_v17  ;;  %5315 = vst.msk [vmem:[%s8713_s8 + $0x138] sm:$0xff] %vm5017_vm9, %v9492_v46  ;;  %v9495_v46 = vld [vmem:[#allocation6_spill] sm:$0xff] }
 0x2bd   : > { %5316 = vst.msk [vmem:[%s8713_s8 + $0x140] sm:$0xff] %vm5017_vm9, %v8658_v63  ;;  %5317 = vst.msk [vmem:[%s8713_s8 + $0x148] sm:$0xff] %vm5017_vm9, %v8668_v60  ;;  %v9494_v60 = vld [vmem:[#allocation4_spill] sm:$0xff] }
 0x2be   : > { %5318 = vst.msk [vmem:[%s8713_s8 + $0x150] sm:$0xff] %vm5017_vm9, %v9493_v41  ;;  %5319 = vst.msk [vmem:[%s8713_s8 + $0x158] sm:$0xff] %vm5017_vm9, %v8663_v26  ;;  %v5031_v63 = vsel %vm5017_vm9, %v9494_v60, 0.0  ;;  %v5030_v41 = vadd.f32 %v5029_v51, %v5028_v59  ;;  %v5033_v26 = vsel %vm5017_vm9, %v9495_v46, 0.0  ;;  %v9500_v59 = vld [vmem:[#allocation12_spill] sm:$0xff] }
 0x2bf   : > { %5320 = vst.msk [vmem:[%s8713_s8 + $0x160] sm:$0xff] %vm5017_vm9, %v8678_v27  ;;  %5321 = vst.msk [vmem:[%s8713_s8 + $0x168] sm:$0xff] %vm5017_vm9, %v8688_v28  ;;  %v5035_v27 = vsel %vm5017_vm9, %v9496_v11, 0.0  ;;  %v9497_v28 = vld [vmem:[#allocation5_spill] sm:$0xff]  ;;  %v5043_v57 = vsel %vm5017_vm9, %v9500_v59, 0.0 }
 0x2c0   : > { %5322 = vst.msk [vmem:[%s8713_s8 + $0x170] sm:$0xff] %vm5017_vm9, %v8676_v20  ;;  %5323 = vst.msk [vmem:[%s8713_s8 + $0x178] sm:$0xff] %vm5017_vm9, %v8683_v35  ;;  %v5032_v17 = vadd.f32 %v5031_v63, %v5030_v41  ;;  %v5037_v37 = vsel %vm5017_vm9, %v9497_v28, 0.0  ;;  %v5039_v35 = vsel %vm5017_vm9, %v9498_v36, 0.0  ;;  %v5123_v63 = vmul.f32 %v8443_v31, %v8451_v52 }
 0x2c1   : > { %v5127_v52 = vmul.f32 %v8463_v45, %v8471_v1  ;;  %v5129_v45 = vmul.f32 %v8461_v32, %v8466_v58  ;;  %v5131_v32 = vmul.f32 %v8483_v29, %v9495_v46  ;;  %v5133_v29 = vmul.f32 %v8481_v6, %v9497_v28 }
 0x2c2   : > { %v5034_v39 = vadd.f32 %v5033_v26, %v5032_v17  ;;  %v5124_v26 = vmul.f32 %v8453_v42, %v8459_v12  ;;  %v9502_v17 = vld [vmem:[#allocation11_spill] sm:$0xff]  ;;  %v5171_v13 = vsel %vm5017_vm9, %v5123_v63, 0.0  ;;  %v5135_v6 = vmul.f32 %v8506_v61, %v9499_v49 }
 0x2c3   : > { %v5178_v1 = vsel %vm5017_vm9, %v5127_v52, 0.0  ;;  %v5182_v58 = vsel %vm5017_vm9, %v5129_v45, 0.0  ;;  %v9507_v52 = vld [vmem:[#allocation18_spill] sm:$0xff]  ;;  %v5186_v46 = vsel %vm5017_vm9, %v5131_v32, 0.0  ;;  %v5190_v28 = vsel %vm5017_vm9, %v5133_v29, 0.0  ;;  %v9512_v32 = vld [vmem:[#allocation24_spill] sm:$0xff] }
 0x2c4   : > { %v5036_v20 = vadd.f32 %v5035_v27, %v5034_v39  ;;  %v5125_v39 = vmul.f32 %v8439_v22, %v8446_v50  ;;  %v9501_v27 = vld [vmem:[#allocation9_spill] sm:$0xff]  ;;  %v5172_v42 = vsel %vm5017_vm9, %v5124_v26, 0.0  ;;  %v9503_v50 = vld [vmem:[#allocation14_spill] sm:$0xff]  ;;  %v5194_v49 = vsel %vm5017_vm9, %v5135_v6, 0.0 }
 0x2c5   : > { %v5049_v12 = vsel %vm5017_vm9, %v9503_v50, 0.0  ;;  %v9505_v26 = vld [vmem:[#allocation13_spill] sm:$0xff]  ;;  %v5137_v61 = vmul.f32 %v8503_v8, %v9501_v27  ;;  %v5139_v8 = vmul.f32 %v8530_v15, %v9503_v50 }
 0x2c6   : > { %v5038_v56 = vadd.f32 %v5037_v37, %v5036_v20  ;;  %v5045_v20 = vsel %vm5017_vm9, %v9501_v27, 0.0  ;;  %v5174_v22 = vsel %vm5017_vm9, %v5125_v39, 0.0  ;;  %v5053_v39 = vsel %vm5017_vm9, %v9505_v26, 0.0  ;;  %v9517_v6 = vld [vmem:[#allocation25_spill] sm:$0xff] }
 0x2c7   : > { %v5198_v27 = vsel %vm5017_vm9, %v5137_v61, 0.0  ;;  %v5141_v15 = vmul.f32 %v8527_v21, %v9505_v26  ;;  %v5202_v50 = vsel %vm5017_vm9, %v5139_v8, 0.0  ;;  %v5143_v21 = vmul.f32 %v8556_v62, %v9507_v52  ;;  %v9522_v8 = vld [vmem:[#allocation33_spill] sm:$0xff] }
 0x2c8   : > { %v5040_v51 = vadd.f32 %v5039_v35, %v5038_v56  ;;  %v5126_v35 = vmul.f32 %v8448_v23, %v8456_v43  ;;  %v5047_v56 = vsel %vm5017_vm9, %v9502_v17, 0.0  ;;  %v5128_v23 = vmul.f32 %v8473_v5, %v8479_v30 }
 0x2c9   : > { %v5130_v5 = vmul.f32 %v8468_v24, %v9494_v60  ;;  %v5132_v24 = vmul.f32 %v8494_v7, %v9496_v11  ;;  %v5134_v7 = vmul.f32 %v8488_v4, %v9498_v36  ;;  %v5136_v4 = vmul.f32 %v8518_v47, %v9500_v59 }
 0x2ca   : > { %v5042_v41 = vadd.f32 %v5041_v55, %v5040_v51  ;;  %v5173_v55 = vadd.f32 %v5172_v42, %v5171_v13  ;;  %v5176_v43 = vsel %vm5017_vm9, %v5126_v35, 0.0  ;;  %v9504_v51 = vld [vmem:[#allocation16_spill] sm:$0xff]  ;;  %v5180_v30 = vsel %vm5017_vm9, %v5128_v23, 0.0  ;;  %v9506_v35 = vld [vmem:[#allocation15_spill] sm:$0xff] }
 0x2cb   : > { %v5051_v63 = vsel %vm5017_vm9, %v9504_v51, 0.0  ;;  %v5184_v60 = vsel %vm5017_vm9, %v5130_v5, 0.0  ;;  %v5188_v11 = vsel %vm5017_vm9, %v5132_v24, 0.0  ;;  %v5192_v36 = vsel %vm5017_vm9, %v5134_v7, 0.0 }
 0x2cc   : > { %v5044_v37 = vadd.f32 %v5043_v57, %v5042_v41  ;;  %v5175_v41 = vadd.f32 %v5174_v22, %v5173_v55  ;;  %v5057_v22 = vsel %vm5017_vm9, %v9507_v52, 0.0  ;;  %v5138_v47 = vmul.f32 %v8512_v54, %v9502_v17 }
 0x2cd   : > { %v5196_v59 = vsel %vm5017_vm9, %v5136_v4, 0.0  ;;  %v5140_v54 = vmul.f32 %v8543_v14, %v9504_v51  ;;  %v5142_v14 = vmul.f32 %v8536_v18, %v9506_v35  ;;  %v5206_v26 = vsel %vm5017_vm9, %v5141_v15, 0.0 }
 0x2ce   : > { %v5046_v31 = vadd.f32 %v5045_v20, %v5044_v37  ;;  %v5177_v13 = vadd.f32 %v5176_v43, %v5175_v41  ;;  %v9509_v41 = vld [vmem:[#allocation17_spill] sm:$0xff]  ;;  %v5200_v17 = vsel %vm5017_vm9, %v5138_v47, 0.0  ;;  %v5210_v52 = vsel %vm5017_vm9, %v5143_v21, 0.0  ;;  %v9527_v21 = vld [vmem:[#allocation47_spill] sm:$0xff] }
 0x2cf   : > { %v5204_v51 = vsel %vm5017_vm9, %v5140_v54, 0.0  ;;  %v5145_v62 = vmul.f32 %v8553_v9, %v9509_v41 }
 0x2d0   : > { %v5048_v57 = vadd.f32 %v5047_v56, %v5046_v31  ;;  %v5055_v56 = vsel %vm5017_vm9, %v9506_v35, 0.0  ;;  %v5179_v31 = vadd.f32 %v5178_v1, %v5177_v13  ;;  %v5208_v35 = vsel %vm5017_vm9, %v5142_v14, 0.0 }
 0x2d2   : > { %v5050_v20 = vadd.f32 %v5049_v12, %v5048_v57  ;;  %v5181_v12 = vadd.f32 %v5180_v30, %v5179_v31  ;;  %v9508_v57 = vld [vmem:[#allocation20_spill] sm:$0xff]  ;;  %v9511_v30 = vld [vmem:[#allocation22_spill] sm:$0xff] }
 0x2d3   : > { %v5059_v23 = vsel %vm5017_vm9, %v9508_v57, 0.0  ;;  %v5144_v18 = vmul.f32 %v8568_v34, %v9508_v57  ;;  %v5147_v9 = vmul.f32 %v8578_v0, %v9511_v30 }
 0x2d4   : > { %v5052_v37 = vadd.f32 %v5051_v63, %v5050_v20  ;;  %v5183_v43 = vadd.f32 %v5182_v58, %v5181_v12  ;;  %v5061_v20 = vsel %vm5017_vm9, %v9509_v41, 0.0  ;;  %v5067_v58 = vsel %vm5017_vm9, %v9512_v32, 0.0 }
 0x2d5   : > { %v5212_v57 = vsel %vm5017_vm9, %v5144_v18, 0.0  ;;  %v5214_v41 = vsel %vm5017_vm9, %v5145_v62, 0.0 }
 0x2d6   : > { %v5054_v42 = vadd.f32 %v5053_v39, %v5052_v37  ;;  %v5185_v45 = vadd.f32 %v5184_v60, %v5183_v43  ;;  %v9510_v39 = vld [vmem:[#allocation19_spill] sm:$0xff] }
 0x2d7   : > { %v5063_v13 = vsel %vm5017_vm9, %v9510_v39, 0.0  ;;  %v9514_v43 = vld [vmem:[#allocation23_spill] sm:$0xff]  ;;  %v5146_v34 = vmul.f32 %v8562_v44, %v9510_v39  ;;  %v5148_v44 = vmul.f32 %v8588_v10, %v9512_v32 }
 0x2d8   : > { %v5056_v55 = vadd.f32 %v5055_v56, %v5054_v42  ;;  %v5187_v37 = vadd.f32 %v5186_v46, %v5185_v45  ;;  %v5065_v56 = vsel %vm5017_vm9, %v9511_v30, 0.0  ;;  %v5218_v30 = vsel %vm5017_vm9, %v5147_v9, 0.0 }
 0x2d9   : > { %v5216_v39 = vsel %vm5017_vm9, %v5146_v34, 0.0  ;;  %v5150_v10 = vmul.f32 %v8583_v33, %v9514_v43  ;;  %v5220_v32 = vsel %vm5017_vm9, %v5148_v44, 0.0  ;;  %v5105_v34 = vsel %vm5017_vm9, %v8686_v25, 0.0 }
 0x2da   : > { %v5058_v63 = vadd.f32 %v5057_v22, %v5056_v55  ;;  %v5189_v31 = vadd.f32 %v5188_v11, %v5187_v37  ;;  %v9513_v55 = vld [vmem:[#allocation21_spill] sm:$0xff]  ;;  %v9516_v11 = vld [vmem:[#allocation28_spill] sm:$0xff] }
 0x2db   : > { %v5069_v24 = vsel %vm5017_vm9, %v9513_v55, 0.0  ;;  %v5149_v0 = vmul.f32 %v8576_v3, %v9513_v55  ;;  %v5152_v33 = vmul.f32 %v8608_v2, %v9516_v11 }
 0x2dc   : > { %v5060_v1 = vadd.f32 %v5059_v23, %v5058_v63  ;;  %v5191_v22 = vadd.f32 %v5190_v28, %v5189_v31  ;;  %v5071_v63 = vsel %vm5017_vm9, %v9514_v43, 0.0  ;;  %v5077_v28 = vsel %vm5017_vm9, %v9517_v6, 0.0 }
 0x2dd   : > { %v5222_v55 = vsel %vm5017_vm9, %v5149_v0, 0.0  ;;  %v5224_v43 = vsel %vm5017_vm9, %v5150_v10, 0.0 }
 0x2de   : > { %v5062_v5 = vadd.f32 %v5061_v20, %v5060_v1  ;;  %v5193_v60 = vadd.f32 %v5192_v36, %v5191_v22  ;;  %v9515_v20 = vld [vmem:[#allocation26_spill] sm:$0xff]  ;;  %v9519_v22 = vld [vmem:[#allocation32_spill] sm:$0xff] }
 0x2df   : > { %v5073_v45 = vsel %vm5017_vm9, %v9515_v20, 0.0  ;;  %v5151_v3 = vmul.f32 %v8598_v40, %v9515_v20  ;;  %v5153_v40 = vmul.f32 %v8596_v53, %v9517_v6  ;;  %v5155_v53 = vmul.f32 %v8618_v38, %v9519_v22 }
 0x2e0   : > { %v5064_v42 = vadd.f32 %v5063_v13, %v5062_v5  ;;  %v5195_v29 = vadd.f32 %v5194_v49, %v5193_v60  ;;  %v5075_v13 = vsel %vm5017_vm9, %v9516_v11, 0.0  ;;  %v5228_v11 = vsel %vm5017_vm9, %v5152_v33, 0.0 }
 0x2e1   : > { %v5226_v20 = vsel %vm5017_vm9, %v5151_v3, 0.0  ;;  %v5230_v6 = vsel %vm5017_vm9, %v5153_v40, 0.0  ;;  %v9537_v3 = vld [vmem:[#allocation35_spill] sm:$0xff] }
 0x2e2   : > { %v5066_v12 = vadd.f32 %v5065_v56, %v5064_v42  ;;  %v5197_v1 = vadd.f32 %v5196_v59, %v5195_v29  ;;  %v9518_v42 = vld [vmem:[#allocation27_spill] sm:$0xff]  ;;  %v9521_v59 = vld [vmem:[#allocation30_spill] sm:$0xff] }
 0x2e3   : > { %v5079_v4 = vsel %vm5017_vm9, %v9518_v42, 0.0  ;;  %v5154_v2 = vmul.f32 %v8603_v16, %v9518_v42 }
 0x2e4   : > { %v5068_v23 = vadd.f32 %v5067_v58, %v5066_v12  ;;  %v5199_v37 = vadd.f32 %v5198_v27, %v5197_v1  ;;  %v5081_v12 = vsel %vm5017_vm9, %v9519_v22, 0.0  ;;  %v5087_v27 = vsel %vm5017_vm9, %v9522_v8, 0.0 }
 0x2e5   : > { %v5232_v42 = vsel %vm5017_vm9, %v5154_v2, 0.0  ;;  %v5234_v22 = vsel %vm5017_vm9, %v5155_v53, 0.0 }
 0x2e6   : > { %v5070_v46 = vadd.f32 %v5069_v24, %v5068_v23  ;;  %v5201_v56 = vadd.f32 %v5200_v17, %v5199_v37  ;;  %v9520_v24 = vld [vmem:[#allocation34_spill] sm:$0xff] }
 0x2e7   : > { %v5083_v60 = vsel %vm5017_vm9, %v9520_v24, 0.0  ;;  %v9524_v37 = vld [vmem:[#allocation42_spill] sm:$0xff]  ;;  %v5156_v16 = vmul.f32 %v8628_v48, %v9520_v24 }
 0x2e8   : > { %v5072_v7 = vadd.f32 %v5071_v63, %v5070_v46  ;;  %v5203_v36 = vadd.f32 %v5202_v50, %v5201_v56  ;;  %v5085_v63 = vsel %vm5017_vm9, %v9521_v59, 0.0 }
 0x2e9   : > { %v5236_v24 = vsel %vm5017_vm9, %v5156_v16, 0.0  ;;  %v9543_v16 = vld [vmem:[#allocation51_spill] sm:$0xff] }
 0x2ea   : > { %v5074_v5 = vadd.f32 %v5073_v45, %v5072_v7  ;;  %v5205_v61 = vadd.f32 %v5204_v51, %v5203_v36  ;;  %v9523_v7 = vld [vmem:[#allocation39_spill] sm:$0xff]  ;;  %v9526_v51 = vld [vmem:[#allocation41_spill] sm:$0xff] }
 0x2eb   : > { %v5089_v54 = vsel %vm5017_vm9, %v9523_v7, 0.0 }
 0x2ec   : > { %v5076_v31 = vadd.f32 %v5075_v13, %v5074_v5  ;;  %v5207_v23 = vadd.f32 %v5206_v26, %v5205_v61  ;;  %v5091_v5 = vsel %vm5017_vm9, %v9524_v37, 0.0  ;;  %v5097_v26 = vsel %vm5017_vm9, %v9527_v21, 0.0 }
 0x2ee   : > { %v5078_v58 = vadd.f32 %v5077_v28, %v5076_v31  ;;  %v5209_v29 = vadd.f32 %v5208_v35, %v5207_v23  ;;  %v9525_v28 = vld [vmem:[#allocation37_spill] sm:$0xff] }
 0x2ef   : > { %v5093_v56 = vsel %vm5017_vm9, %v9525_v28, 0.0 }
 0x2f0   : > { %v5080_v49 = vadd.f32 %v5079_v4, %v5078_v58  ;;  %v5211_v45 = vadd.f32 %v5210_v52, %v5209_v29  ;;  %v5095_v4 = vsel %vm5017_vm9, %v9526_v51, 0.0  ;;  %v9529_v52 = vld [vmem:[#allocation49_spill] sm:$0xff] }
 0x2f2   : > { %v5082_v47 = vadd.f32 %v5081_v12, %v5080_v49  ;;  %v5213_v17 = vadd.f32 %v5212_v57, %v5211_v45  ;;  %v5099_v49 = vsel %vm5017_vm9, %v8674_v19, 0.0  ;;  %v9530_v45 = vld [vmem:[#allocation56_spill] sm:$0xff] }
 0x2f4   : > { %v5084_v46 = vadd.f32 %v5083_v60, %v5082_v47  ;;  %v5215_v15 = vadd.f32 %v5214_v41, %v5213_v17  ;;  %v9528_v60 = vld [vmem:[#allocation45_spill] sm:$0xff]  ;;  %v9532_v17 = vld [vmem:[#allocation52_spill] sm:$0xff] }
 0x2f5   : > { %v5101_v23 = vsel %vm5017_vm9, %v9528_v60, 0.0 }
 0x2f6   : > { %v5086_v1 = vadd.f32 %v5085_v63, %v5084_v46  ;;  %v5217_v31 = vadd.f32 %v5216_v39, %v5215_v15  ;;  %v5103_v63 = vsel %vm5017_vm9, %v9529_v52, 0.0  ;;  %v9534_v15 = vld [vmem:[#allocation55_spill] sm:$0xff] }
 0x2f8   : > { %v5088_v13 = vadd.f32 %v5087_v27, %v5086_v1  ;;  %v5219_v36 = vadd.f32 %v5218_v30, %v5217_v31  ;;  %v5107_v1 = vsel %vm5017_vm9, %v9530_v45, 0.0 }
 0x2fa   : > { %v5090_v50 = vadd.f32 %v5089_v54, %v5088_v13  ;;  %v5221_v12 = vadd.f32 %v5220_v32, %v5219_v36  ;;  %v9531_v54 = vld [vmem:[#allocation29_spill] sm:$0xff]  ;;  %v5109_v13 = vsel %vm5017_vm9, %v9532_v17, 0.0  ;;  %v9536_v32 = vld [vmem:[#allocation40_spill] sm:$0xff] }
 0x2fb   : > { %v5157_v38 = vmul.f32 %v9531_v54, %v9521_v59 }
 0x2fc   : > { %v5092_v14 = vadd.f32 %v5091_v5, %v5090_v50  ;;  %v5223_v18 = vadd.f32 %v5222_v55, %v5221_v12  ;;  %v9533_v5 = vld [vmem:[#allocation31_spill] sm:$0xff]  ;;  %v5111_v50 = vsel %vm5017_vm9, %v9534_v15, 0.0  ;;  %v5161_v55 = vmul.f32 %v9537_v3, %v9525_v28  ;;  %v9540_v28 = vld [vmem:[#allocation48_spill] sm:$0xff] }
 0x2fd   : > { %v5158_v48 = vmul.f32 %v9533_v5, %v9522_v8  ;;  %v5238_v31 = vsel %vm5017_vm9, %v5157_v38, 0.0 }
 0x2fe   : > { %v5094_v58 = vadd.f32 %v5093_v56, %v5092_v14  ;;  %v5225_v47 = vadd.f32 %v5224_v43, %v5223_v18  ;;  %v9535_v56 = vld [vmem:[#allocation36_spill] sm:$0xff]  ;;  %v5246_v40 = vsel %vm5017_vm9, %v5161_v55, 0.0 }
 0x2ff   : > { %v5159_v59 = vmul.f32 %v9535_v56, %v9523_v7  ;;  %v5240_v36 = vsel %vm5017_vm9, %v5158_v48, 0.0  ;;  %v9538_v7 = vld [vmem:[#allocation38_spill] sm:$0xff] }
 0x300   : > { %v5096_v61 = vadd.f32 %v5095_v4, %v5094_v58  ;;  %v5227_v29 = vadd.f32 %v5226_v20, %v5225_v47  ;;  %v5160_v4 = vmul.f32 %v9536_v32, %v9524_v37  ;;  %v5162_v33 = vmul.f32 %v9538_v7, %v9526_v51  ;;  %v9539_v37 = vld [vmem:[#allocation44_spill] sm:$0xff]  ;;  %v9541_v51 = vld [vmem:[#allocation43_spill] sm:$0xff] }
 0x301   : > { %v5164_v47 = vmul.f32 %v9540_v28, %v8674_v19 }
 0x302   : > { %v5098_v35 = vadd.f32 %v5097_v26, %v5096_v61  ;;  %v5229_v57 = vadd.f32 %v5228_v11, %v5227_v29  ;;  %v5242_v26 = vsel %vm5017_vm9, %v5159_v59, 0.0  ;;  %v5244_v43 = vsel %vm5017_vm9, %v5160_v4, 0.0 }
 0x304   : > { %v5100_v62 = vadd.f32 %v5099_v49, %v5098_v35  ;;  %v5231_v9 = vadd.f32 %v5230_v6, %v5229_v57  ;;  %v5163_v35 = vmul.f32 %v9539_v37, %v9527_v21  ;;  %v9542_v21 = vld [vmem:[#allocation46_spill] sm:$0xff]  ;;  %v5252_v57 = vsel %vm5017_vm9, %v5164_v47, 0.0 }
 0x306   : > { %v5102_v46 = vadd.f32 %v5101_v23, %v5100_v62  ;;  %v5233_v44 = vadd.f32 %v5232_v42, %v5231_v9  ;;  %v5248_v62 = vsel %vm5017_vm9, %v5162_v33, 0.0  ;;  %v5250_v29 = vsel %vm5017_vm9, %v5163_v35, 0.0 }
 0x307   : > { %v5167_v42 = vmul.f32 %v9543_v16, %v8686_v25 }
 0x308   : > { %v5104_v27 = vadd.f32 %v5103_v63, %v5102_v46  ;;  %v5235_v0 = vadd.f32 %v5234_v22, %v5233_v44  ;;  %v5165_v63 = vmul.f32 %v9541_v51, %v9528_v60  ;;  %v5016_v46 = vld [vmem:[#allocation2] sm:$0x1]  ;;  %v9544_v60 = vld [vmem:[#allocation54_spill] sm:$0xff] }
 0x30a   : > { %v5106_v41 = vadd.f32 %v5105_v34, %v5104_v27  ;;  %v5237_v14 = vadd.f32 %v5236_v24, %v5235_v0  ;;  %v5166_v34 = vmul.f32 %v9542_v21, %v9529_v52  ;;  %v9545_v52 = vld [vmem:[#allocation50_spill] sm:$0xff] }
 0x30b   : > { %v5169_v22 = vmul.f32 %v9545_v52, %v9532_v17 }
 0x30c   : > { %v5108_v39 = vadd.f32 %v5107_v1, %v5106_v41  ;;  %v5239_v8 = vadd.f32 %v5238_v31, %v5237_v14  ;;  %v5254_v1 = vsel %vm5017_vm9, %v5165_v63, 0.0  ;;  %v5168_v41 = vmul.f32 %v9544_v60, %v9530_v45 }
 0x30d   : > { %v5256_v54 = vsel %vm5017_vm9, %v5166_v34, 0.0  ;;  %v5262_v24 = vsel %vm5017_vm9, %v5169_v22, 0.0 }
 0x30e   : > { %v5110_v30 = vadd.f32 %v5109_v13, %v5108_v39  ;;  %v5241_v12 = vadd.f32 %v5240_v36, %v5239_v8  ;;  %v5258_v13 = vsel %vm5017_vm9, %v5167_v42, 0.0  ;;  %v9546_v39 = vld [vmem:[#allocation53_spill] sm:$0xff]  ;;  %v5260_v5 = vsel %vm5017_vm9, %v5168_v41, 0.0 }
 0x30f   : > { %v5170_v25 = vmul.f32 %v9546_v39, %v9534_v15 }
 0x310   : > { %v5112_v10 = vadd.f32 %v5111_v50, %v5110_v30  ;;  %v5243_v49 = vadd.f32 %v5242_v26, %v5241_v12 }
 0x311   : > { %v5264_v45 = vsel %vm5017_vm9, %v5170_v25, 0.0 }
 0x312   : > { %v5113_v58 = vrot.slane %v5112_v10, 4  ;;  %v5245_v20 = vadd.f32 %v5244_v43, %v5243_v49  ;;  %v9098_v43 = vld [vmem:[%s9374_s4] sm:$0x1] (!%p5949_p5) }
 0x314   : > { %v5114_v61 = vadd.f32 %v5113_v58, %v5112_v10  ;;  %v5247_v2 = vadd.f32 %v5246_v40, %v5245_v20  ;;  %v5122_v10 = vld [vmem:[#allocation3] sm:$0x1] }
 0x316   : > { %v5115_v18 = vrot.slane %v5114_v61, 2  ;;  %v5249_v53 = vadd.f32 %v5248_v62, %v5247_v2 }
 0x318   : > { %v5116_v23 = vadd.f32 %v5115_v18, %v5114_v61  ;;  %v5251_v27 = vadd.f32 %v5250_v29, %v5249_v53  ;;  %v5337_v61 = vld [vmem:[%s9373_s3] sm:$0x1] (!%p5949_p5) }
 0x31a   : > { %v5117_v11 = vrot.slane %v5116_v23, 1  ;;  %v5253_v9 = vadd.f32 %v5252_v57, %v5251_v27 }
 0x31c   : > { %v5118_v6 = vadd.f32 %v5117_v11, %v5116_v23  ;;  %v5255_v38 = vadd.f32 %v5254_v1, %v5253_v9 }
 0x31e   : > { %v5119_v19 = vadd.f32 %v5118_v6, %v5016_v46  ;;  %v5257_v44 = vadd.f32 %v5256_v54, %v5255_v38 }
 0x320   : > { %5121 = vst.msk [vmem:[#allocation2] sm:$0x1] %vm5120_vm10, %v5119_v19  ;;  %v5259_v48 = vadd.f32 %v5258_v13, %v5257_v44 }
 0x322   : > { %v5261_v50 = vadd.f32 %v5260_v5, %v5259_v48 }
 0x324   : > { %v5263_v0 = vadd.f32 %v5262_v24, %v5261_v50 }
 0x326   : > { %v5265_v30 = vadd.f32 %v5264_v45, %v5263_v0 }
 0x327   : > { %v5328_v15 = vld [vmem:[#allocation2] sm:$0x1] (!%p5949_p5) }
 0x328   : > { %v5266_v56 = vrot.slane %v5265_v30, 4  ;;  %v5329_v8 = vmul.f32 (!%p5949_p5), 0.001953125, %v5328_v15 }
 0x32a   : > { %v5267_v59 = vadd.f32 %v5266_v56, %v5265_v30  ;;  %v5332_v3 = vmul.f32 (!%p5949_p5), %v5329_v8, %v5329_v8 }
 0x32c   : > { %v5268_v31 = vrot.slane %v5267_v59, 2 }
 0x32e   : > { %v5269_v17 = vadd.f32 %v5268_v31, %v5267_v59 }
 0x330   : > { %v5270_v14 = vrot.slane %v5269_v17, 1  ;;  %5327 = sbr.rel (%p5949_p5) target bundleno = 907 (0x38b), region = 48 }
 0x332   : > { %v5271_v32 = vadd.f32 %v5270_v14, %v5269_v17 }
 0x334   : > { %v5272_v4 = vadd.f32 %v5271_v32, %v5122_v10 }
 0x336   : > { %5273 = vst.msk [vmem:[#allocation3] sm:$0x1] %vm5120_vm10, %v5272_v4 }
 0x33d   : > { %v5330_v36 = vld [vmem:[#allocation3] sm:$0x1] }
 0x33e   : > { %v5331_v58 = vmul.f32 0.001953125, %v5330_v36 }
 0x340   : > { %v5333_v55 = vsub.f32 %v5331_v58, %v5332_v3 }
 0x342   : > { %v5334_v26 = vmax.f32 %v5333_v55, 0.0 }
 0x344   : > { %v5335_v12 = vadd.f32 1e-05, %v5334_v26 }
 0x346   : > { %7184 = vrsqrt.f32 %v5335_v12 }
 0x350   : > { %v7185_v7 = vpop.eup %7184 }
 0x351   : > { %v9093_v33 = vmul.f32 %v7185_v7, %v5337_v61 }
 0x353   : > { %v9101_v49 = vmul.f32 %v9093_v33, %v5329_v8 }
 0x355   : > { %v5341_v18 = vsub.f32 %v9098_v43, %v9101_v49 }
 0x356 LB: >> { %v5399_v37 = vlaneseq  ;;  %s5348_s13 = smul.u32 384, %s7200_s19  ;;  %s5347_s19 = sadd.s32 1, %s7200_s19   ;;  %s7200_s19 = sphi %s9105_s19, %s5347_s19  }
 0x357   : >> { %p5344_p6 = scmp.ge.s32.totalorder %s5347_s19, 2  }
 0x358   : >> { %v5400_v35 = vshrl.u32 %v5399_v37, 7  ;;  %s9114_s16 = scalar_lea.vmem %s9375_s5, %s5348_s13 }
 0x359   : >> { %v5350_v20 = vld [vmem:[%s9114_s16] sm:$0xff]  ;;  %v5351_v23 = vld [vmem:[%s9114_s16 + $0x8] sm:$0xff]  ;;  %v5352_v28 = vld [vmem:[%s9114_s16 + $0x10] sm:$0xff] }
 0x35a   : >> { %v5401_v40 = vsub.s32 0, %v5400_v35  ;;  %v5353_v2 = vld [vmem:[%s9114_s16 + $0x18] sm:$0xff]  ;;  %v5354_v11 = vld [vmem:[%s9114_s16 + $0x20] sm:$0xff]  ;;  %v5355_v51 = vld [vmem:[%s9114_s16 + $0x28] sm:$0xff] }
 0x35b   : >> { %v5356_v63 = vld [vmem:[%s9114_s16 + $0x30] sm:$0xff]  ;;  %v5357_v29 = vld [vmem:[%s9114_s16 + $0x38] sm:$0xff]  ;;  %v5358_v60 = vld [vmem:[%s9114_s16 + $0x40] sm:$0xff] }
 0x35c   : >> { %v9120_v47 = vrot.slane %v9093_v33, %v5401_v40  ;;  %v9125_v62 = vrot.slane %v5341_v18, %v5401_v40  ;;  %v5359_v41 = vld [vmem:[%s9114_s16 + $0x48] sm:$0xff]  ;;  %v5360_v54 = vld [vmem:[%s9114_s16 + $0x50] sm:$0xff]  ;;  %v5361_v44 = vld [vmem:[%s9114_s16 + $0x58] sm:$0xff] }
 0x35d   : >> { %v5362_v39 = vld [vmem:[%s9114_s16 + $0x60] sm:$0xff]  ;;  %v5363_v25 = vld [vmem:[%s9114_s16 + $0x68] sm:$0xff]  ;;  %v5364_v45 = vld [vmem:[%s9114_s16 + $0x70] sm:$0xff] }
 0x35e   : >> { %v5404_v46 = vmul.f32 %v9120_v47, %v5350_v20  ;;  %v5405_v53 = vmul.f32 %v9120_v47, %v5351_v23  ;;  %v5406_v6 = vmul.f32 %v9120_v47, %v5352_v28  ;;  %v5407_v21 = vmul.f32 %v9120_v47, %v5353_v2  ;;  %v5365_v0 = vld [vmem:[%s9114_s16 + $0x78] sm:$0xff]  ;;  %v5366_v12 = vld [vmem:[%s9114_s16 + $0x80] sm:$0xff]  ;;  %v5367_v61 = vld [vmem:[%s9114_s16 + $0x88] sm:$0xff] }
 0x35f   : >> { %v5408_v34 = vmul.f32 %v9120_v47, %v5354_v11  ;;  %v5409_v57 = vmul.f32 %v9120_v47, %v5355_v51  ;;  %v5410_v27 = vmul.f32 %v9120_v47, %v5356_v63  ;;  %v5411_v19 = vmul.f32 %v9120_v47, %v5357_v29  ;;  %v5368_v7 = vld [vmem:[%s9114_s16 + $0x90] sm:$0xff]  ;;  %v5369_v23 = vld [vmem:[%s9114_s16 + $0x98] sm:$0xff]  ;;  %v5370_v28 = vld [vmem:[%s9114_s16 + $0xa0] sm:$0xff] }
 0x360   : >> { %v5458_v16 = vadd.f32 %v9125_v62, %v5404_v46  ;;  %v5459_v42 = vadd.f32 %v9125_v62, %v5405_v53  ;;  %v5460_v1 = vadd.f32 %v9125_v62, %v5406_v6  ;;  %v5461_v9 = vadd.f32 %v9125_v62, %v5407_v21  ;;  %v5371_v2 = vld [vmem:[%s9114_s16 + $0xa8] sm:$0xff]  ;;  %v5372_v46 = vld [vmem:[%s9114_s16 + $0xb0] sm:$0xff]  ;;  %v5373_v53 = vld [vmem:[%s9114_s16 + $0xb8] sm:$0xff] }
 0x361   : >> { %v5462_v38 = vadd.f32 %v9125_v62, %v5408_v34  ;;  %v5463_v52 = vadd.f32 %v9125_v62, %v5409_v57  ;;  %v5464_v22 = vadd.f32 %v9125_v62, %v5410_v27  ;;  %v5465_v13 = vadd.f32 %v9125_v62, %v5411_v19 }
 0x362   : >> { %v5506_v5 = vmax.f32 %v5458_v16, 0.0  ;;  %v5507_v48 = vmax.f32 %v5459_v42, 0.0  ;;  %v5508_v24 = vmax.f32 %v5460_v1, 0.0  ;;  %v5509_v50 = vmax.f32 %v5461_v9, 0.0 }
 0x363   : >> { %v5510_v30 = vmax.f32 %v5462_v38, 0.0  ;;  %v5511_v56 = vmax.f32 %v5463_v52, 0.0  ;;  %v5512_v59 = vmax.f32 %v5464_v22, 0.0  ;;  %v5513_v31 = vmax.f32 %v5465_v13, 0.0  ;;  %v5374_v13 = vld [vmem:[%s9114_s16 + $0xc0] sm:$0xff] }
 0x364   : >> { %5554 = vst.msk [vmem:[%s9114_s16] sm:$0xff] %vm5017_vm9, %v5506_v5  ;;  %5555 = vst.msk [vmem:[%s9114_s16 + $0x8] sm:$0xff] %vm5017_vm9, %v5507_v48  ;;  %v5412_v17 = vmul.f32 %v9120_v47, %v5358_v60  ;;  %v5413_v14 = vmul.f32 %v9120_v47, %v5359_v41  ;;  %v5414_v10 = vmul.f32 %v9120_v47, %v5360_v54 }
 0x365   : >> { %5556 = vst.msk [vmem:[%s9114_s16 + $0x10] sm:$0xff] %vm5017_vm9, %v5508_v24  ;;  %5557 = vst.msk [vmem:[%s9114_s16 + $0x18] sm:$0xff] %vm5017_vm9, %v5509_v50  ;;  %v5415_v32 = vmul.f32 %v9120_v47, %v5361_v44  ;;  %v5416_v4 = vmul.f32 %v9120_v47, %v5362_v39  ;;  %v5417_v15 = vmul.f32 %v9120_v47, %v5363_v25  ;;  %v5375_v44 = vld [vmem:[%s9114_s16 + $0xc8] sm:$0xff]  ;;  %v5376_v39 = vld [vmem:[%s9114_s16 + $0xd0] sm:$0xff] }
 0x366   : >> { %5558 = vst.msk [vmem:[%s9114_s16 + $0x20] sm:$0xff] %vm5017_vm9, %v5510_v30  ;;  %5559 = vst.msk [vmem:[%s9114_s16 + $0x28] sm:$0xff] %vm5017_vm9, %v5511_v56  ;;  %v5418_v36 = vmul.f32 %v9120_v47, %v5364_v45  ;;  %v5419_v8 = vmul.f32 %v9120_v47, %v5365_v0  ;;  %v5466_v58 = vadd.f32 %v9125_v62, %v5412_v17  ;;  %v5377_v50 = vld [vmem:[%s9114_s16 + $0xd8] sm:$0xff]  ;;  %v5378_v45 = vld [vmem:[%s9114_s16 + $0xe0] sm:$0xff] }
 0x367   : >> { %5560 = vst.msk [vmem:[%s9114_s16 + $0x30] sm:$0xff] %vm5017_vm9, %v5512_v59  ;;  %5561 = vst.msk [vmem:[%s9114_s16 + $0x38] sm:$0xff] %vm5017_vm9, %v5513_v31  ;;  %v5467_v3 = vadd.f32 %v9125_v62, %v5413_v14  ;;  %v5468_v55 = vadd.f32 %v9125_v62, %v5414_v10  ;;  %v5469_v26 = vadd.f32 %v9125_v62, %v5415_v32  ;;  %v5379_v0 = vld [vmem:[%s9114_s16 + $0xe8] sm:$0xff]  ;;  %v5380_v17 = vld [vmem:[%s9114_s16 + $0xf0] sm:$0xff] }
 0x368   : >> { %v5470_v37 = vadd.f32 %v9125_v62, %v5416_v4  ;;  %v5471_v35 = vadd.f32 %v9125_v62, %v5417_v15  ;;  %v5472_v40 = vadd.f32 %v9125_v62, %v5418_v36  ;;  %v5473_v20 = vadd.f32 %v9125_v62, %v5419_v8  ;;  %v5381_v14 = vld [vmem:[%s9114_s16 + $0xf8] sm:$0xff] }
 0x369   : >> { %v5514_v11 = vmax.f32 %v5466_v58, 0.0  ;;  %v5515_v51 = vmax.f32 %v5467_v3, 0.0  ;;  %v5516_v63 = vmax.f32 %v5468_v55, 0.0  ;;  %v5517_v29 = vmax.f32 %v5469_v26, 0.0 }
 0x36a   : >> { %v5518_v6 = vmax.f32 %v5470_v37, 0.0  ;;  %v5519_v21 = vmax.f32 %v5471_v35, 0.0  ;;  %v5520_v34 = vmax.f32 %v5472_v40, 0.0  ;;  %v5521_v57 = vmax.f32 %v5473_v20, 0.0  ;;  %v5382_v20 = vld [vmem:[%s9114_s16 + $0x100] sm:$0xff] }
 0x36b   : >> { %5562 = vst.msk [vmem:[%s9114_s16 + $0x40] sm:$0xff] %vm5017_vm9, %v5514_v11  ;;  %5563 = vst.msk [vmem:[%s9114_s16 + $0x48] sm:$0xff] %vm5017_vm9, %v5515_v51  ;;  %v5420_v27 = vmul.f32 %v9120_v47, %v5366_v12  ;;  %v5421_v19 = vmul.f32 %v9120_v47, %v5367_v61  ;;  %v5422_v16 = vmul.f32 %v9120_v47, %v5368_v7 }
 0x36c   : >> { %5564 = vst.msk [vmem:[%s9114_s16 + $0x50] sm:$0xff] %vm5017_vm9, %v5516_v63  ;;  %5565 = vst.msk [vmem:[%s9114_s16 + $0x58] sm:$0xff] %vm5017_vm9, %v5517_v29  ;;  %v5423_v42 = vmul.f32 %v9120_v47, %v5369_v23  ;;  %v5424_v1 = vmul.f32 %v9120_v47, %v5370_v28  ;;  %v5425_v9 = vmul.f32 %v9120_v47, %v5371_v2  ;;  %v5383_v23 = vld [vmem:[%s9114_s16 + $0x108] sm:$0xff]  ;;  %v5384_v28 = vld [vmem:[%s9114_s16 + $0x110] sm:$0xff] }
 0x36d   : >> { %5566 = vst.msk [vmem:[%s9114_s16 + $0x60] sm:$0xff] %vm5017_vm9, %v5518_v6  ;;  %5567 = vst.msk [vmem:[%s9114_s16 + $0x68] sm:$0xff] %vm5017_vm9, %v5519_v21  ;;  %v5426_v60 = vmul.f32 %v9120_v47, %v5372_v46  ;;  %v5427_v41 = vmul.f32 %v9120_v47, %v5373_v53  ;;  %v5474_v54 = vadd.f32 %v9125_v62, %v5420_v27  ;;  %v5385_v29 = vld [vmem:[%s9114_s16 + $0x118] sm:$0xff]  ;;  %v5386_v46 = vld [vmem:[%s9114_s16 + $0x120] sm:$0xff] }
 0x36e   : >> { %5568 = vst.msk [vmem:[%s9114_s16 + $0x70] sm:$0xff] %vm5017_vm9, %v5520_v34  ;;  %5569 = vst.msk [vmem:[%s9114_s16 + $0x78] sm:$0xff] %vm5017_vm9, %v5521_v57  ;;  %v5475_v38 = vadd.f32 %v9125_v62, %v5421_v19  ;;  %v5476_v52 = vadd.f32 %v9125_v62, %v5422_v16  ;;  %v5477_v22 = vadd.f32 %v9125_v62, %v5423_v42  ;;  %v5387_v53 = vld [vmem:[%s9114_s16 + $0x128] sm:$0xff]  ;;  %v5388_v27 = vld [vmem:[%s9114_s16 + $0x130] sm:$0xff] }
 0x36f   : >> { %v5478_v25 = vadd.f32 %v9125_v62, %v5424_v1  ;;  %v5479_v5 = vadd.f32 %v9125_v62, %v5425_v9  ;;  %v5480_v48 = vadd.f32 %v9125_v62, %v5426_v60  ;;  %v5481_v24 = vadd.f32 %v9125_v62, %v5427_v41  ;;  %v5389_v19 = vld [vmem:[%s9114_s16 + $0x138] sm:$0xff] }
 0x370   : >> { %v5522_v30 = vmax.f32 %v5474_v54, 0.0  ;;  %v5523_v56 = vmax.f32 %v5475_v38, 0.0  ;;  %v5524_v59 = vmax.f32 %v5476_v52, 0.0  ;;  %v5525_v31 = vmax.f32 %v5477_v22, 0.0 }
 0x371   : >> { %v5526_v10 = vmax.f32 %v5478_v25, 0.0  ;;  %v5527_v32 = vmax.f32 %v5479_v5, 0.0  ;;  %v5528_v4 = vmax.f32 %v5480_v48, 0.0  ;;  %v5529_v15 = vmax.f32 %v5481_v24, 0.0  ;;  %v5390_v24 = vld [vmem:[%s9114_s16 + $0x140] sm:$0xff] }
 0x372   : >> { %5570 = vst.msk [vmem:[%s9114_s16 + $0x80] sm:$0xff] %vm5017_vm9, %v5522_v30  ;;  %5571 = vst.msk [vmem:[%s9114_s16 + $0x88] sm:$0xff] %vm5017_vm9, %v5523_v56  ;;  %v5428_v36 = vmul.f32 %v9120_v47, %v5374_v13  ;;  %v5429_v8 = vmul.f32 %v9120_v47, %v5375_v44  ;;  %v5430_v58 = vmul.f32 %v9120_v47, %v5376_v39 }
 0x373   : >> { %5572 = vst.msk [vmem:[%s9114_s16 + $0x90] sm:$0xff] %vm5017_vm9, %v5524_v59  ;;  %5573 = vst.msk [vmem:[%s9114_s16 + $0x98] sm:$0xff] %vm5017_vm9, %v5525_v31  ;;  %v5431_v3 = vmul.f32 %v9120_v47, %v5377_v50  ;;  %v5432_v55 = vmul.f32 %v9120_v47, %v5378_v45  ;;  %v5433_v26 = vmul.f32 %v9120_v47, %v5379_v0  ;;  %v5391_v50 = vld [vmem:[%s9114_s16 + $0x148] sm:$0xff]  ;;  %v5392_v45 = vld [vmem:[%s9114_s16 + $0x150] sm:$0xff] }
 0x374   : >> { %5574 = vst.msk [vmem:[%s9114_s16 + $0xa0] sm:$0xff] %vm5017_vm9, %v5526_v10  ;;  %5575 = vst.msk [vmem:[%s9114_s16 + $0xa8] sm:$0xff] %vm5017_vm9, %v5527_v32  ;;  %v5434_v12 = vmul.f32 %v9120_v47, %v5380_v17  ;;  %v5435_v61 = vmul.f32 %v9120_v47, %v5381_v14  ;;  %v5482_v7 = vadd.f32 %v9125_v62, %v5428_v36  ;;  %v5393_v31 = vld [vmem:[%s9114_s16 + $0x158] sm:$0xff]  ;;  %v5394_v17 = vld [vmem:[%s9114_s16 + $0x160] sm:$0xff] }
 0x375   : >> { %5576 = vst.msk [vmem:[%s9114_s16 + $0xb0] sm:$0xff] %vm5017_vm9, %v5528_v4  ;;  %5577 = vst.msk [vmem:[%s9114_s16 + $0xb8] sm:$0xff] %vm5017_vm9, %v5529_v15  ;;  %v5483_v37 = vadd.f32 %v9125_v62, %v5429_v8  ;;  %v5484_v35 = vadd.f32 %v9125_v62, %v5430_v58  ;;  %v5485_v40 = vadd.f32 %v9125_v62, %v5431_v3  ;;  %v5395_v14 = vld [vmem:[%s9114_s16 + $0x168] sm:$0xff]  ;;  %v5396_v36 = vld [vmem:[%s9114_s16 + $0x170] sm:$0xff] }
 0x376   : >> { %v5486_v2 = vadd.f32 %v9125_v62, %v5432_v55  ;;  %v5487_v11 = vadd.f32 %v9125_v62, %v5433_v26  ;;  %v5488_v51 = vadd.f32 %v9125_v62, %v5434_v12  ;;  %v5489_v63 = vadd.f32 %v9125_v62, %v5435_v61  ;;  %v5397_v8 = vld [vmem:[%s9114_s16 + $0x178] sm:$0xff] }
 0x377   : >> { %v5530_v6 = vmax.f32 %v5482_v7, 0.0  ;;  %v5531_v21 = vmax.f32 %v5483_v37, 0.0  ;;  %v5532_v34 = vmax.f32 %v5484_v35, 0.0  ;;  %v5533_v57 = vmax.f32 %v5485_v40, 0.0 }
 0x378   : >> { %v5534_v16 = vmax.f32 %v5486_v2, 0.0  ;;  %v5535_v42 = vmax.f32 %v5487_v11, 0.0  ;;  %v5536_v1 = vmax.f32 %v5488_v51, 0.0  ;;  %v5537_v9 = vmax.f32 %v5489_v63, 0.0 }
 0x379   : >> { %5578 = vst.msk [vmem:[%s9114_s16 + $0xc0] sm:$0xff] %vm5017_vm9, %v5530_v6  ;;  %5579 = vst.msk [vmem:[%s9114_s16 + $0xc8] sm:$0xff] %vm5017_vm9, %v5531_v21  ;;  %v5436_v60 = vmul.f32 %v9120_v47, %v5382_v20  ;;  %v5437_v41 = vmul.f32 %v9120_v47, %v5383_v23  ;;  %v5438_v54 = vmul.f32 %v9120_v47, %v5384_v28 }
 0x37a   : >> { %5580 = vst.msk [vmem:[%s9114_s16 + $0xd0] sm:$0xff] %vm5017_vm9, %v5532_v34  ;;  %5581 = vst.msk [vmem:[%s9114_s16 + $0xd8] sm:$0xff] %vm5017_vm9, %v5533_v57  ;;  %v5439_v38 = vmul.f32 %v9120_v47, %v5385_v29  ;;  %v5440_v52 = vmul.f32 %v9120_v47, %v5386_v46  ;;  %v5441_v22 = vmul.f32 %v9120_v47, %v5387_v53 }
 0x37b   : >> { %5582 = vst.msk [vmem:[%s9114_s16 + $0xe0] sm:$0xff] %vm5017_vm9, %v5534_v16  ;;  %5583 = vst.msk [vmem:[%s9114_s16 + $0xe8] sm:$0xff] %vm5017_vm9, %v5535_v42  ;;  %v5442_v13 = vmul.f32 %v9120_v47, %v5388_v27  ;;  %v5443_v44 = vmul.f32 %v9120_v47, %v5389_v19  ;;  %v5490_v39 = vadd.f32 %v9125_v62, %v5436_v60 }
 0x37c   : >> { %5584 = vst.msk [vmem:[%s9114_s16 + $0xf0] sm:$0xff] %vm5017_vm9, %v5536_v1  ;;  %5585 = vst.msk [vmem:[%s9114_s16 + $0xf8] sm:$0xff] %vm5017_vm9, %v5537_v9  ;;  %v5491_v25 = vadd.f32 %v9125_v62, %v5437_v41  ;;  %v5492_v5 = vadd.f32 %v9125_v62, %v5438_v54  ;;  %v5493_v48 = vadd.f32 %v9125_v62, %v5439_v38 }
 0x37d   : >> { %v5494_v0 = vadd.f32 %v9125_v62, %v5440_v52  ;;  %v5495_v30 = vadd.f32 %v9125_v62, %v5441_v22  ;;  %v5496_v56 = vadd.f32 %v9125_v62, %v5442_v13  ;;  %v5497_v59 = vadd.f32 %v9125_v62, %v5443_v44 }
 0x37e   : >> { %v5538_v10 = vmax.f32 %v5490_v39, 0.0  ;;  %v5539_v32 = vmax.f32 %v5491_v25, 0.0  ;;  %v5540_v4 = vmax.f32 %v5492_v5, 0.0  ;;  %v5541_v15 = vmax.f32 %v5493_v48, 0.0 }
 0x37f   : >> { %v5542_v58 = vmax.f32 %v5494_v0, 0.0  ;;  %v5543_v3 = vmax.f32 %v5495_v30, 0.0  ;;  %v5544_v55 = vmax.f32 %v5496_v56, 0.0  ;;  %v5545_v26 = vmax.f32 %v5497_v59, 0.0 }
 0x380   : >> { %5586 = vst.msk [vmem:[%s9114_s16 + $0x100] sm:$0xff] %vm5017_vm9, %v5538_v10  ;;  %5587 = vst.msk [vmem:[%s9114_s16 + $0x108] sm:$0xff] %vm5017_vm9, %v5539_v32  ;;  %v5444_v12 = vmul.f32 %v9120_v47, %v5390_v24  ;;  %v5445_v61 = vmul.f32 %v9120_v47, %v5391_v50  ;;  %v5446_v7 = vmul.f32 %v9120_v47, %v5392_v45 }
 0x381   : >> { %5588 = vst.msk [vmem:[%s9114_s16 + $0x110] sm:$0xff] %vm5017_vm9, %v5540_v4  ;;  %5589 = vst.msk [vmem:[%s9114_s16 + $0x118] sm:$0xff] %vm5017_vm9, %v5541_v15  ;;  %v5447_v37 = vmul.f32 %v9120_v47, %v5393_v31  ;;  %v5448_v35 = vmul.f32 %v9120_v47, %v5394_v17  ;;  %v5449_v40 = vmul.f32 %v9120_v47, %v5395_v14 }
 0x382   : >> { %5590 = vst.msk [vmem:[%s9114_s16 + $0x120] sm:$0xff] %vm5017_vm9, %v5542_v58  ;;  %5591 = vst.msk [vmem:[%s9114_s16 + $0x128] sm:$0xff] %vm5017_vm9, %v5543_v3  ;;  %v5450_v20 = vmul.f32 %v9120_v47, %v5396_v36  ;;  %v5451_v23 = vmul.f32 %v9120_v47, %v5397_v8  ;;  %v5498_v28 = vadd.f32 %v9125_v62, %v5444_v12 }
 0x383   : >> { %5592 = vst.msk [vmem:[%s9114_s16 + $0x130] sm:$0xff] %vm5017_vm9, %v5544_v55  ;;  %5593 = vst.msk [vmem:[%s9114_s16 + $0x138] sm:$0xff] %vm5017_vm9, %v5545_v26  ;;  %v5499_v2 = vadd.f32 %v9125_v62, %v5445_v61  ;;  %v5500_v11 = vadd.f32 %v9125_v62, %v5446_v7  ;;  %v5501_v51 = vadd.f32 %v9125_v62, %v5447_v37 }
 0x384   : >> { %v5502_v63 = vadd.f32 %v9125_v62, %v5448_v35  ;;  %v5503_v29 = vadd.f32 %v9125_v62, %v5449_v40  ;;  %v5504_v47 = vadd.f32 %v9125_v62, %v5450_v20  ;;  %v5505_v46 = vadd.f32 %v9125_v62, %v5451_v23  ;;  %5346 = sbr.rel (!%p5344_p6) target bundleno = 854 (0x356), region = 91 }
 0x385   : >> { %v5546_v53 = vmax.f32 %v5498_v28, 0.0  ;;  %v5547_v6 = vmax.f32 %v5499_v2, 0.0  ;;  %v5548_v21 = vmax.f32 %v5500_v11, 0.0  ;;  %v5549_v34 = vmax.f32 %v5501_v51, 0.0 }
 0x386   : >> { %v5550_v57 = vmax.f32 %v5502_v63, 0.0  ;;  %v5551_v27 = vmax.f32 %v5503_v29, 0.0  ;;  %v5552_v19 = vmax.f32 %v5504_v47, 0.0  ;;  %v5553_v16 = vmax.f32 %v5505_v46, 0.0 }
 0x387   : >> { %5594 = vst.msk [vmem:[%s9114_s16 + $0x140] sm:$0xff] %vm5017_vm9, %v5546_v53  ;;  %5595 = vst.msk [vmem:[%s9114_s16 + $0x148] sm:$0xff] %vm5017_vm9, %v5547_v6 }
 0x388   : >> { %5596 = vst.msk [vmem:[%s9114_s16 + $0x150] sm:$0xff] %vm5017_vm9, %v5548_v21  ;;  %5597 = vst.msk [vmem:[%s9114_s16 + $0x158] sm:$0xff] %vm5017_vm9, %v5549_v34 }
 0x389   : >> { %5598 = vst.msk [vmem:[%s9114_s16 + $0x160] sm:$0xff] %vm5017_vm9, %v5550_v57  ;;  %5599 = vst.msk [vmem:[%s9114_s16 + $0x168] sm:$0xff] %vm5017_vm9, %v5551_v27 }
 0x38a   : >> { %5600 = vst.msk [vmem:[%s9114_s16 + $0x170] sm:$0xff] %vm5017_vm9, %v5552_v19  ;;  %5601 = vst.msk [vmem:[%s9114_s16 + $0x178] sm:$0xff] %vm5017_vm9, %v5553_v16 }
 0x38b PF: > { %s15_s18 = sadd.s32 1, %s7196_s18  }
 0x38c   : > { %p12_p7 = scmp.ge.s32.totalorder %s15_s18, 4  }
 0x38e   :  { %14 = sbr.rel (!%p12_p7) target bundleno = 1 (0x1), region = 102 }

</bundles_post_ra>
